<compile_context>
chip_gen: v5e
topology: v5e:2x2
jax: 0.10.0
libtpu: 0.0.40
codegen_flags: <defaults>
</compile_context>

<pallas_src>
import numpy as np
import jax
import jax.numpy as jnp
from jax.experimental import pallas as pl
from jax.experimental.pallas import tpu as pltpu

SEQ_LEN = 32        # encoder sequence length
HIDDEN = 32         # config.hidden_size
RNN_HIDDEN = 16     # config.rnn_hidden
NUM_CLASSES = 3     # config.num_classes
NUM_SENTS = 4       # 1 statement span + 3 evidence spans
NUM_EVI = NUM_SENTS - 1

LANES = 128
assert 8 * RNN_HIDDEN <= LANES and NUM_CLASSES <= LANES


def _ceil8(n):
    return ((n + 7) // 8) * 8


# Row offsets inside the single packed weight slab (all 8-sublane aligned).
OFF_WIH = 0                                    # (H, 8R)   LSTM input weights
OFF_WHH = OFF_WIH + _ceil8(HIDDEN)             # (2R, 8R)  LSTM recurrent weights
OFF_BLSTM = OFF_WHH + _ceil8(2 * RNN_HIDDEN)   # (1, 8R)   b_ih + b_hh (both dirs)
OFF_WFF = OFF_BLSTM + 8                        # (R, C)    folded fc (fwd half)
OFF_WFR = OFF_WFF + _ceil8(RNN_HIDDEN)         # (R, C)    folded fc (rev half)
OFF_WBOT = OFF_WFR + _ceil8(RNN_HIDDEN)        # (H, C)    fc weights for comb_pool
OFF_BOUT = OFF_WBOT + _ceil8(HIDDEN)           # (1, C)    folded bias
SLAB_ROWS = OFF_BOUT + 8                       # 144 rows x 128 lanes (f32)


# ------------------------------ fused kernel ------------------------------
def fused_forward_kernel(spans_ref, hid_ref, w_ref, out_ref):
    H, R, T, S = HIDDEN, RNN_HIDDEN, NUM_SENTS, SEQ_LEN
    R2, R8 = 2 * R, 8 * R
    Bc = hid_ref.shape[0]
    NEG = float(jnp.finfo(jnp.float32).min)

    hid = hid_ref[...]                                     # (Bc, S, H)
    spans = spans_ref[...]                                 # (Bc, T, 2) int32, inclusive ends
    tok = jax.lax.broadcasted_iota(jnp.int32, (Bc, S, 1), 1)

    # -------- weight slab views (all sublane-aligned, lane-dense) --------
    w_ih = w_ref[OFF_WIH:OFF_WIH + H, 0:R8]                # (H, 8R)
    w_hh = w_ref[OFF_WHH:OFF_WHH + R2, 0:R8]               # (2R, 8R) block-diag fwd/rev
    b_lstm = w_ref[OFF_BLSTM:OFF_BLSTM + 1, 0:R8]          # (1, 8R)
    w_ffwd = w_ref[OFF_WFF:OFF_WFF + R, :]                 # (R, 128) folded fc, fwd half
    w_frev = w_ref[OFF_WFR:OFF_WFR + R, :]                 # (R, 128) folded fc, rev half
    w_bot = w_ref[OFF_WBOT:OFF_WBOT + H, :]                # (H, 128)
    b_out = w_ref[OFF_BOUT:OFF_BOUT + 1, :]                # (1, 128)

    # -------- stage 1: span token max-pooling + LSTM input projection --------
    pooled = []                                            # T x (Bc, H)
    gx = []                                                # T x (Bc, 8R)
    for t in range(T):                                     # T = 4, static
        start = spans[:, t:t + 1, 0:1]                     # (Bc, 1, 1)
        end = spans[:, t:t + 1, 1:2]                       # (Bc, 1, 1) inclusive
        mask = (tok >= start) & (tok <= end)               # (Bc, S, 1)
        p_t = jnp.max(jnp.where(mask, hid, NEG), axis=1)   # (Bc, H)
        pooled.append(p_t)
        gx.append(jnp.dot(p_t, w_ih, preferred_element_type=jnp.float32) + b_lstm)

    # -------- stage 2: bidirectional LSTM, both directions stacked in lanes ----
    # Lane layout (width 8R), gate order (i, f, o, g); per gate: [fwd | rev].
    lane = jax.lax.broadcasted_iota(jnp.int32, (1, R8), 1)
    fwd_mask = (lane % R2) < R
    # Hoisted off the serialized h-dependency chain: per-step fwd/rev input pick.
    gx_sel = [jnp.where(fwd_mask, gx[s], gx[T - 1 - s]) for s in range(T)]

    h = jnp.zeros((Bc, R2), jnp.float32)                   # [h_fwd | h_rev]
    c = jnp.zeros((Bc, R2), jnp.float32)
    h_fwd = [None] * T
    h_rev = [None] * T
    for s in range(T):                                     # static trip count
        gates = gx_sel[s] + jnp.dot(h, w_hh, preferred_element_type=jnp.float32)
        sig = jax.nn.sigmoid(gates[:, 0:3 * R2])           # i, f, o in one EUP pass
        g_g = jnp.tanh(gates[:, 3 * R2:4 * R2])
        i_g = sig[:, 0:R2]
        f_g = sig[:, R2:2 * R2]
        o_g = sig[:, 2 * R2:3 * R2]
        c = f_g * c + i_g * g_g
        h = o_g * jnp.tanh(c)
        h_fwd[s] = h[:, 0:R]                               # fwd output for time s
        h_rev[T - 1 - s] = h[:, R:R2]                      # rev output for time T-1-s

    # -------- stage 3: classifier with fc_rnn folded in (done offline) --------
    for j in range(1, T):                                  # evidence sentences
        comb = jnp.maximum(pooled[0], pooled[j])           # (Bc, H) statement+evi max
        out_ref[j - 1] = (
            jnp.dot(h_fwd[j], w_ffwd, preferred_element_type=jnp.float32)
            + jnp.dot(h_rev[j], w_frev, preferred_element_type=jnp.float32)
            + jnp.dot(comb, w_bot, preferred_element_type=jnp.float32)
            + b_out)                                       # (Bc, 128), full-tile store


# ------------------------------ parameters ------------------------------
def init_params(key):
    ks = jax.random.split(key, 12)
    s = 0.1
    H, R, C = HIDDEN, RNN_HIDDEN, NUM_CLASSES
    return {
        # self.fc = nn.Linear(hidden_size * 2, num_classes)
        "w_fc": jax.random.normal(ks[0], (C, 2 * H), jnp.float32) * s,
        "b_fc": jax.random.normal(ks[1], (C,), jnp.float32) * s,
        # self.lstm = nn.LSTM(hidden_size, rnn_hidden, 1, bidirectional=True)
        "w_ih_f": jax.random.normal(ks[2], (4 * R, H), jnp.float32) * s,
        "w_hh_f": jax.random.normal(ks[3], (4 * R, R), jnp.float32) * s,
        "b_ih_f": jax.random.normal(ks[4], (4 * R,), jnp.float32) * s,
        "b_hh_f": jax.random.normal(ks[5], (4 * R,), jnp.float32) * s,
        "w_ih_r": jax.random.normal(ks[6], (4 * R, H), jnp.float32) * s,
        "w_hh_r": jax.random.normal(ks[7], (4 * R, R), jnp.float32) * s,
        "b_ih_r": jax.random.normal(ks[8], (4 * R,), jnp.float32) * s,
        "b_hh_r": jax.random.normal(ks[9], (4 * R,), jnp.float32) * s,
        # self.fc_rnn = nn.Linear(rnn_hidden * 2, hidden_size)
        "w_fc_rnn": jax.random.normal(ks[10], (H, 2 * R), jnp.float32) * s,
        "b_fc_rnn": jax.random.normal(ks[11], (H,), jnp.float32) * s,
    }


def pack_params(p):
    """One-time offline packing of the 12 PyTorch-layout params into one slab."""
    H, R, C = HIDDEN, RNN_HIDDEN, NUM_CLASSES
    R2, R8 = 2 * R, 8 * R
    order = (0, 1, 3, 2)   # kernel gate order (i,f,o,g) from torch's (i,f,g,o)
    pn = {k: np.asarray(v, np.float32) for k, v in p.items()}

    def pack_gate_cols(f_t, r_t):
        # f_t, r_t: (X, 4R) columns in torch gate order -> (X, 8R) kernel layout.
        blocks = []
        for g in order:
            blocks.append(f_t[:, g * R:(g + 1) * R])
            blocks.append(r_t[:, g * R:(g + 1) * R])
        return np.concatenate(blocks, axis=1)

    w_ih = pack_gate_cols(pn["w_ih_f"].T, pn["w_ih_r"].T)          # (H, 8R)

    # Block-structured recurrent weights: rows [0:R] feed forward lanes only,
    # rows [R:2R] feed reverse lanes only.
    w_hh = np.zeros((R2, R8), np.float32)
    whh_f_t, whh_r_t = pn["w_hh_f"].T, pn["w_hh_r"].T               # (R, 4R)
    for gi, g in enumerate(order):
        w_hh[0:R, gi * R2:gi * R2 + R] = whh_f_t[:, g * R:(g + 1) * R]
        w_hh[R:R2, gi * R2 + R:(gi + 1) * R2] = whh_r_t[:, g * R:(g + 1) * R]

    b_f = (pn["b_ih_f"] + pn["b_hh_f"]).reshape(1, -1)
    b_r = (pn["b_ih_r"] + pn["b_hh_r"]).reshape(1, -1)
    b_lstm = pack_gate_cols(b_f, b_r)                               # (1, 8R)

    # Fold fc_rnn into fc (valid: no activation/dropout between them in forward).
    w_top = pn["w_fc"][:, :H]                                       # (C, H)
    w_bot = pn["w_fc"][:, H:]                                       # (C, H)
    wp = pn["w_fc_rnn"].T @ w_top.T                                 # (2R, C)
    bp = pn["b_fc_rnn"] @ w_top.T + pn["b_fc"]                      # (C,)

    slab = np.zeros((SLAB_ROWS, LANES), np.float32)
    slab[OFF_WIH:OFF_WIH + H, :R8] = w_ih
    slab[OFF_WHH:OFF_WHH + R2, :R8] = w_hh
    slab[OFF_BLSTM, :R8] = b_lstm[0]
    slab[OFF_WFF:OFF_WFF + R, :C] = wp[:R]
    slab[OFF_WFR:OFF_WFR + R, :C] = wp[R:]
    slab[OFF_WBOT:OFF_WBOT + H, :C] = w_bot.T
    slab[OFF_BOUT, :C] = bp
    return jnp.asarray(slab)


# ------------------------------ forward wrapper ------------------------------
def model_forward(hidden_states, spans, w_slab, *, block_b=8):
    B, S, H = hidden_states.shape
    assert B % block_b == 0
    out = pl.pallas_call(
        fused_forward_kernel,
        out_shape=jax.ShapeDtypeStruct((NUM_EVI, B, LANES), jnp.float32),
        grid=(B // block_b,),
        in_specs=[
            pl.BlockSpec((block_b, NUM_SENTS, 2), lambda g: (g, 0, 0)),   # spans
            pl.BlockSpec((block_b, S, H), lambda g: (g, 0, 0)),           # hidden states
            pl.BlockSpec((SLAB_ROWS, LANES), lambda g: (0, 0)),           # weight slab
        ],
        out_specs=pl.BlockSpec((NUM_EVI, block_b, LANES), lambda g: (0, g, 0)),
        compiler_params=pltpu.CompilerParams(dimension_semantics=("parallel",)),
    )(spans, hidden_states, w_slab)
    # (NUM_EVI, B, 128) lane-padded -> (B, NUM_EVI, NUM_CLASSES)
    return jnp.transpose(out[:, :, :NUM_CLASSES], (1, 0, 2))


# ------------------------------ pure-JAX reference ------------------------------
def reference(hidden_states, spans_np, p):
    H, R, T = HIDDEN, RNN_HIDDEN, NUM_SENTS
    outs_all = []
    for b in range(hidden_states.shape[0]):
        hid = hidden_states[b]
        pooled = []
        for i in range(T):
            s, e = int(spans_np[b, i, 0]), int(spans_np[b, i, 1]) + 1
            pooled.append(jnp.max(hid[s:e], axis=0))
        sent_pool = jnp.stack(pooled, axis=0)

        def run_dir(wih, whh, bih, bhh, order):
            h = jnp.zeros((R,), jnp.float32)
            c = jnp.zeros((R,), jnp.float32)
            hs = [None] * T
            for t in order:
                gates = wih @ sent_pool[t] + bih + whh @ h + bhh
                i_g = jax.nn.sigmoid(gates[0:R])
                f_g = jax.nn.sigmoid(gates[R:2 * R])
                g_g = jnp.tanh(gates[2 * R:3 * R])
                o_g = jax.nn.sigmoid(gates[3 * R:4 * R])
                c = f_g * c + i_g * g_g
                h = o_g * jnp.tanh(c)
                hs[t] = h
            return jnp.stack(hs, axis=0)

        hf = run_dir(p["w_ih_f"], p["w_hh_f"], p["b_ih_f"], p["b_hh_f"], range(T))
        hr = run_dir(p["w_ih_r"], p["w_hh_r"], p["b_ih_r"], p["b_hh_r"],
                     range(T - 1, -1, -1))
        sent_emb = jnp.concatenate([hf, hr], axis=1) @ p["w_fc_rnn"].T + p["b_fc_rnn"]

        outs = []
        s0, e0 = int(spans_np[b, 0, 0]), int(spans_np[b, 0, 1]) + 1
        for k in range(NUM_EVI):
            sk, ek = int(spans_np[b, k + 1, 0]), int(spans_np[b, k + 1, 1]) + 1
            comb = jnp.max(jnp.concatenate([hid[s0:e0], hid[sk:ek]], axis=0), axis=0)
            feat = jnp.concatenate([sent_emb[k + 1], comb], axis=0)
            outs.append(feat @ p["w_fc"].T + p["b_fc"])
        outs_all.append(jnp.stack(outs, axis=0))
    return jnp.stack(outs_all, axis=0)


if __name__ == "__main__":
    key = jax.random.PRNGKey(0)
    k_hid, k_param = jax.random.split(key)

    B = 16
    # synthetic stand-in for bert(context, attention_mask=mask).last_hidden_state
    hidden_states = jax.random.normal(k_hid, (B, SEQ_LEN, HIDDEN), jnp.float32)

    # per-example spans: row 0 = statement, rows 1: = evidence (inclusive ends)
    spans_np = np.zeros((B, NUM_SENTS, 2), np.int32)
    seg = SEQ_LEN // NUM_SENTS
    for b in range(B):
        for t in range(NUM_SENTS):
            s0 = t * seg
            spans_np[b, t, 0] = s0
            spans_np[b, t, 1] = s0 + 4 + (b + t) % 3
    spans = jnp.asarray(spans_np)

    params = init_params(k_param)
    w_slab = pack_params(params)      # one-time weight packing / fc_rnn->fc fold

    out = model_forward(hidden_states, spans, w_slab, block_b=8)
    out = jax.block_until_ready(out)
    assert out.shape == (B, NUM_EVI, NUM_CLASSES)

    ref = reference(hidden_states, spans_np, params)
    np.testing.assert_allclose(np.asarray(out), np.asarray(ref), rtol=2e-2, atol=2e-2)
    print("KERNEL_OK")
</pallas_src>

<mosaic_0001>
module attributes {stable_mosaic.version = 11 : i64} {
  func.func @fused_forward_kernel(%arg0: i32, %arg1: memref<8x4x2xi32, #tpu.memory_space<vmem>>, %arg2: memref<8x32x32xf32, #tpu.memory_space<vmem>>, %arg3: memref<144x128xf32, #tpu.memory_space<vmem>>, %arg4: memref<3x8x128xf32, #tpu.memory_space<vmem>>) attributes {dimension_semantics = [#tpu.dimension_semantics<parallel>], iteration_bounds = array<i64: 2>, scalar_prefetch = 0 : i64, scratch_operands = 0 : i64, tpu.core_type = #tpu.core_type<tc>, window_params = [{transform_indices = @transform_0, window_bounds = array<i64: 8, 4, 2>}, {transform_indices = @transform_1, window_bounds = array<i64: 8, 32, 32>}, {pipeline_mode = #tpu.pipeline_mode<synchronous>, transform_indices = @transform_2, window_bounds = array<i64: 144, 128>}, {transform_indices = @transform_3, window_bounds = array<i64: 3, 8, 128>}]} {
    %c0 = arith.constant 0 : index
    %c0_0 = arith.constant 0 : index
    %c0_1 = arith.constant 0 : index
    %0 = vector.load %arg2[%c0, %c0_0, %c0_1] : memref<8x32x32xf32, #tpu.memory_space<vmem>>, vector<8x32x32xf32>
    %c0_2 = arith.constant 0 : index
    %c0_3 = arith.constant 0 : index
    %c0_4 = arith.constant 0 : index
    %1 = vector.load %arg1[%c0_2, %c0_3, %c0_4] : memref<8x4x2xi32, #tpu.memory_space<vmem>>, vector<8x4x2xi32>
    %2 = tpu.iota {dimensions = array<i32: 1>} : vector<8x32x1xi32>
    %c0_5 = arith.constant 0 : index
    %c0_6 = arith.constant 0 : index
    %3 = vector.load %arg3[%c0_5, %c0_6] : memref<144x128xf32, #tpu.memory_space<vmem>>, vector<32x128xf32>
    %c32 = arith.constant 32 : index
    %c0_7 = arith.constant 0 : index
    %4 = vector.load %arg3[%c32, %c0_7] : memref<144x128xf32, #tpu.memory_space<vmem>>, vector<32x128xf32>
    %c64 = arith.constant 64 : index
    %c0_8 = arith.constant 0 : index
    %5 = vector.load %arg3[%c64, %c0_8] : memref<144x128xf32, #tpu.memory_space<vmem>>, vector<1x128xf32>
    %c72 = arith.constant 72 : index
    %c0_9 = arith.constant 0 : index
    %6 = vector.load %arg3[%c72, %c0_9] : memref<144x128xf32, #tpu.memory_space<vmem>>, vector<16x128xf32>
    %c88 = arith.constant 88 : index
    %c0_10 = arith.constant 0 : index
    %7 = vector.load %arg3[%c88, %c0_10] : memref<144x128xf32, #tpu.memory_space<vmem>>, vector<16x128xf32>
    %c104 = arith.constant 104 : index
    %c0_11 = arith.constant 0 : index
    %8 = vector.load %arg3[%c104, %c0_11] : memref<144x128xf32, #tpu.memory_space<vmem>>, vector<32x128xf32>
    %c136 = arith.constant 136 : index
    %c0_12 = arith.constant 0 : index
    %9 = vector.load %arg3[%c136, %c0_12] : memref<144x128xf32, #tpu.memory_space<vmem>>, vector<1x128xf32>
    %10 = vector.extract_strided_slice %1 {offsets = [0, 0, 0], sizes = [8, 1, 1], strides = [1, 1, 1]} : vector<8x4x2xi32> to vector<8x1x1xi32>
    %11 = vector.extract_strided_slice %1 {offsets = [0, 0, 1], sizes = [8, 1, 1], strides = [1, 1, 1]} : vector<8x4x2xi32> to vector<8x1x1xi32>
    %12 = vector.broadcast %10 : vector<8x1x1xi32> to vector<8x32x1xi32>
    %13 = arith.cmpi sge, %2, %12 : vector<8x32x1xi32>
    %14 = vector.broadcast %11 : vector<8x1x1xi32> to vector<8x32x1xi32>
    %15 = arith.cmpi sle, %2, %14 : vector<8x32x1xi32>
    %16 = arith.andi %13, %15 : vector<8x32x1xi1>
    %cst = arith.constant -3.40282347E+38 : f32
    %17 = vector.shape_cast %16 : vector<8x32x1xi1> to vector<8x32x1xi1>
    %18 = vector.broadcast %17 : vector<8x32x1xi1> to vector<8x32x32xi1>
    %19 = vector.broadcast %cst : f32 to vector<8x32x32xf32>
    %20 = arith.select %18, %0, %19 : vector<8x32x32xi1>, vector<8x32x32xf32>
    %cst_13 = arith.constant dense<0xFF800000> : vector<8x32xf32>
    %21 = vector.multi_reduction <maximumf>, %20, %cst_13 [1] : vector<8x32x32xf32> to vector<8x32xf32>
    %cst_14 = arith.constant dense<0.000000e+00> : vector<8x128xf32>
    %22 = tpu.matmul %21, %3, %cst_14 {dimension_numbers = #tpu.dot_dimension_numbers<[1], [0], [0], [1], [0, 0, 1, 1], [], []>} : vector<8x32xf32>, vector<32x128xf32>, vector<8x128xf32> -> vector<8x128xf32>
    %23 = vector.broadcast %5 : vector<1x128xf32> to vector<8x128xf32>
    %24 = arith.addf %22, %23 : vector<8x128xf32>
    %25 = vector.extract_strided_slice %1 {offsets = [0, 1, 0], sizes = [8, 1, 1], strides = [1, 1, 1]} : vector<8x4x2xi32> to vector<8x1x1xi32>
    %26 = vector.extract_strided_slice %1 {offsets = [0, 1, 1], sizes = [8, 1, 1], strides = [1, 1, 1]} : vector<8x4x2xi32> to vector<8x1x1xi32>
    %27 = vector.broadcast %25 : vector<8x1x1xi32> to vector<8x32x1xi32>
    %28 = arith.cmpi sge, %2, %27 : vector<8x32x1xi32>
    %29 = vector.broadcast %26 : vector<8x1x1xi32> to vector<8x32x1xi32>
    %30 = arith.cmpi sle, %2, %29 : vector<8x32x1xi32>
    %31 = arith.andi %28, %30 : vector<8x32x1xi1>
    %cst_15 = arith.constant -3.40282347E+38 : f32
    %32 = vector.shape_cast %31 : vector<8x32x1xi1> to vector<8x32x1xi1>
    %33 = vector.broadcast %32 : vector<8x32x1xi1> to vector<8x32x32xi1>
    %34 = vector.broadcast %cst_15 : f32 to vector<8x32x32xf32>
    %35 = arith.select %33, %0, %34 : vector<8x32x32xi1>, vector<8x32x32xf32>
    %cst_16 = arith.constant dense<0xFF800000> : vector<8x32xf32>
    %36 = vector.multi_reduction <maximumf>, %35, %cst_16 [1] : vector<8x32x32xf32> to vector<8x32xf32>
    %cst_17 = arith.constant dense<0.000000e+00> : vector<8x128xf32>
    %37 = tpu.matmul %36, %3, %cst_17 {dimension_numbers = #tpu.dot_dimension_numbers<[1], [0], [0], [1], [0, 0, 1, 1], [], []>} : vector<8x32xf32>, vector<32x128xf32>, vector<8x128xf32> -> vector<8x128xf32>
    %38 = vector.broadcast %5 : vector<1x128xf32> to vector<8x128xf32>
    %39 = arith.addf %37, %38 : vector<8x128xf32>
    %40 = vector.extract_strided_slice %1 {offsets = [0, 2, 0], sizes = [8, 1, 1], strides = [1, 1, 1]} : vector<8x4x2xi32> to vector<8x1x1xi32>
    %41 = vector.extract_strided_slice %1 {offsets = [0, 2, 1], sizes = [8, 1, 1], strides = [1, 1, 1]} : vector<8x4x2xi32> to vector<8x1x1xi32>
    %42 = vector.broadcast %40 : vector<8x1x1xi32> to vector<8x32x1xi32>
    %43 = arith.cmpi sge, %2, %42 : vector<8x32x1xi32>
    %44 = vector.broadcast %41 : vector<8x1x1xi32> to vector<8x32x1xi32>
    %45 = arith.cmpi sle, %2, %44 : vector<8x32x1xi32>
    %46 = arith.andi %43, %45 : vector<8x32x1xi1>
    %cst_18 = arith.constant -3.40282347E+38 : f32
    %47 = vector.shape_cast %46 : vector<8x32x1xi1> to vector<8x32x1xi1>
    %48 = vector.broadcast %47 : vector<8x32x1xi1> to vector<8x32x32xi1>
    %49 = vector.broadcast %cst_18 : f32 to vector<8x32x32xf32>
    %50 = arith.select %48, %0, %49 : vector<8x32x32xi1>, vector<8x32x32xf32>
    %cst_19 = arith.constant dense<0xFF800000> : vector<8x32xf32>
    %51 = vector.multi_reduction <maximumf>, %50, %cst_19 [1] : vector<8x32x32xf32> to vector<8x32xf32>
    %cst_20 = arith.constant dense<0.000000e+00> : vector<8x128xf32>
    %52 = tpu.matmul %51, %3, %cst_20 {dimension_numbers = #tpu.dot_dimension_numbers<[1], [0], [0], [1], [0, 0, 1, 1], [], []>} : vector<8x32xf32>, vector<32x128xf32>, vector<8x128xf32> -> vector<8x128xf32>
    %53 = vector.broadcast %5 : vector<1x128xf32> to vector<8x128xf32>
    %54 = arith.addf %52, %53 : vector<8x128xf32>
    %55 = vector.extract_strided_slice %1 {offsets = [0, 3, 0], sizes = [8, 1, 1], strides = [1, 1, 1]} : vector<8x4x2xi32> to vector<8x1x1xi32>
    %56 = vector.extract_strided_slice %1 {offsets = [0, 3, 1], sizes = [8, 1, 1], strides = [1, 1, 1]} : vector<8x4x2xi32> to vector<8x1x1xi32>
    %57 = vector.broadcast %55 : vector<8x1x1xi32> to vector<8x32x1xi32>
    %58 = arith.cmpi sge, %2, %57 : vector<8x32x1xi32>
    %59 = vector.broadcast %56 : vector<8x1x1xi32> to vector<8x32x1xi32>
    %60 = arith.cmpi sle, %2, %59 : vector<8x32x1xi32>
    %61 = arith.andi %58, %60 : vector<8x32x1xi1>
    %cst_21 = arith.constant -3.40282347E+38 : f32
    %62 = vector.shape_cast %61 : vector<8x32x1xi1> to vector<8x32x1xi1>
    %63 = vector.broadcast %62 : vector<8x32x1xi1> to vector<8x32x32xi1>
    %64 = vector.broadcast %cst_21 : f32 to vector<8x32x32xf32>
    %65 = arith.select %63, %0, %64 : vector<8x32x32xi1>, vector<8x32x32xf32>
    %cst_22 = arith.constant dense<0xFF800000> : vector<8x32xf32>
    %66 = vector.multi_reduction <maximumf>, %65, %cst_22 [1] : vector<8x32x32xf32> to vector<8x32xf32>
    %cst_23 = arith.constant dense<0.000000e+00> : vector<8x128xf32>
    %67 = tpu.matmul %66, %3, %cst_23 {dimension_numbers = #tpu.dot_dimension_numbers<[1], [0], [0], [1], [0, 0, 1, 1], [], []>} : vector<8x32xf32>, vector<32x128xf32>, vector<8x128xf32> -> vector<8x128xf32>
    %68 = vector.broadcast %5 : vector<1x128xf32> to vector<8x128xf32>
    %69 = arith.addf %67, %68 : vector<8x128xf32>
    %70 = tpu.iota {dimensions = array<i32: 1>} : vector<1x128xi32>
    %c32_i32 = arith.constant 32 : i32
    %c0_i32 = arith.constant 0 : i32
    %71 = arith.cmpi eq, %c32_i32, %c0_i32 : i32
    %c1_i32 = arith.constant 1 : i32
    %72 = arith.select %71, %c1_i32, %c32_i32 : i32
    %73 = vector.broadcast %72 : i32 to vector<1x128xi32>
    %74 = arith.remsi %70, %73 : vector<1x128xi32>
    %c0_i32_24 = arith.constant 0 : i32
    %75 = vector.broadcast %c0_i32_24 : i32 to vector<1x128xi32>
    %76 = arith.cmpi ne, %74, %75 : vector<1x128xi32>
    %c0_i32_25 = arith.constant 0 : i32
    %77 = vector.broadcast %c0_i32_25 : i32 to vector<1x128xi32>
    %78 = arith.cmpi slt, %74, %77 : vector<1x128xi32>
    %c0_i32_26 = arith.constant 0 : i32
    %79 = arith.cmpi slt, %72, %c0_i32_26 : i32
    %80 = vector.broadcast %79 : i1 to vector<1x128xi1>
    %81 = vector.broadcast %80 : vector<1x128xi1> to vector<1x128xi1>
    %82 = arith.xori %78, %81 : vector<1x128xi1>
    %83 = arith.andi %82, %76 : vector<1x128xi1>
    %84 = vector.broadcast %72 : i32 to vector<1x128xi32>
    %85 = arith.addi %74, %84 : vector<1x128xi32>
    %86 = arith.select %83, %85, %74 : vector<1x128xi1>, vector<1x128xi32>
    %c16_i32 = arith.constant 16 : i32
    %87 = vector.broadcast %c16_i32 : i32 to vector<1x128xi32>
    %88 = arith.cmpi slt, %86, %87 : vector<1x128xi32>
    %89 = vector.shape_cast %88 : vector<1x128xi1> to vector<1x128xi1>
    %90 = vector.broadcast %89 : vector<1x128xi1> to vector<8x128xi1>
    %91 = arith.select %90, %24, %69 : vector<8x128xi1>, vector<8x128xf32>
    %92 = vector.shape_cast %88 : vector<1x128xi1> to vector<1x128xi1>
    %93 = vector.broadcast %92 : vector<1x128xi1> to vector<8x128xi1>
    %94 = arith.select %93, %39, %54 : vector<8x128xi1>, vector<8x128xf32>
    %95 = vector.shape_cast %88 : vector<1x128xi1> to vector<1x128xi1>
    %96 = vector.broadcast %95 : vector<1x128xi1> to vector<8x128xi1>
    %97 = arith.select %96, %54, %39 : vector<8x128xi1>, vector<8x128xf32>
    %98 = vector.shape_cast %88 : vector<1x128xi1> to vector<1x128xi1>
    %99 = vector.broadcast %98 : vector<1x128xi1> to vector<8x128xi1>
    %100 = arith.select %99, %69, %24 : vector<8x128xi1>, vector<8x128xf32>
    %cst_27 = arith.constant 0.000000e+00 : f32
    %101 = vector.broadcast %cst_27 : f32 to vector<8x32xf32>
    %cst_28 = arith.constant 0.000000e+00 : f32
    %102 = vector.broadcast %cst_28 : f32 to vector<8x32xf32>
    %cst_29 = arith.constant dense<0.000000e+00> : vector<8x128xf32>
    %103 = tpu.matmul %101, %4, %cst_29 {dimension_numbers = #tpu.dot_dimension_numbers<[1], [0], [0], [1], [0, 0, 1, 1], [], []>} : vector<8x32xf32>, vector<32x128xf32>, vector<8x128xf32> -> vector<8x128xf32>
    %104 = arith.addf %91, %103 : vector<8x128xf32>
    %105 = vector.extract_strided_slice %104 {offsets = [0, 0], sizes = [8, 96], strides = [1, 1]} : vector<8x128xf32> to vector<8x96xf32>
    %106 = arith.negf %105 : vector<8x96xf32>
    %107 = math.exp %106 : vector<8x96xf32>
    %cst_30 = arith.constant 1.000000e+00 : f32
    %108 = vector.broadcast %cst_30 : f32 to vector<8x96xf32>
    %109 = arith.addf %108, %107 : vector<8x96xf32>
    %110 = arith.divf %108, %109 : vector<8x96xf32>
    %111 = vector.extract_strided_slice %104 {offsets = [0, 96], sizes = [8, 32], strides = [1, 1]} : vector<8x128xf32> to vector<8x32xf32>
    %112 = math.tanh %111 : vector<8x32xf32>
    %113 = vector.extract_strided_slice %110 {offsets = [0, 0], sizes = [8, 32], strides = [1, 1]} : vector<8x96xf32> to vector<8x32xf32>
    %114 = vector.extract_strided_slice %110 {offsets = [0, 32], sizes = [8, 32], strides = [1, 1]} : vector<8x96xf32> to vector<8x32xf32>
    %115 = vector.extract_strided_slice %110 {offsets = [0, 64], sizes = [8, 32], strides = [1, 1]} : vector<8x96xf32> to vector<8x32xf32>
    %116 = arith.mulf %114, %102 : vector<8x32xf32>
    %117 = arith.mulf %113, %112 : vector<8x32xf32>
    %118 = arith.addf %116, %117 : vector<8x32xf32>
    %119 = math.tanh %118 : vector<8x32xf32>
    %120 = arith.mulf %115, %119 : vector<8x32xf32>
    %121 = vector.extract_strided_slice %120 {offsets = [0, 16], sizes = [8, 16], strides = [1, 1]} : vector<8x32xf32> to vector<8x16xf32>
    %cst_31 = arith.constant dense<0.000000e+00> : vector<8x128xf32>
    %122 = tpu.matmul %120, %4, %cst_31 {dimension_numbers = #tpu.dot_dimension_numbers<[1], [0], [0], [1], [0, 0, 1, 1], [], []>} : vector<8x32xf32>, vector<32x128xf32>, vector<8x128xf32> -> vector<8x128xf32>
    %123 = arith.addf %94, %122 : vector<8x128xf32>
    %124 = vector.extract_strided_slice %123 {offsets = [0, 0], sizes = [8, 96], strides = [1, 1]} : vector<8x128xf32> to vector<8x96xf32>
    %125 = arith.negf %124 : vector<8x96xf32>
    %126 = math.exp %125 : vector<8x96xf32>
    %cst_32 = arith.constant 1.000000e+00 : f32
    %127 = vector.broadcast %cst_32 : f32 to vector<8x96xf32>
    %128 = arith.addf %127, %126 : vector<8x96xf32>
    %129 = arith.divf %127, %128 : vector<8x96xf32>
    %130 = vector.extract_strided_slice %123 {offsets = [0, 96], sizes = [8, 32], strides = [1, 1]} : vector<8x128xf32> to vector<8x32xf32>
    %131 = math.tanh %130 : vector<8x32xf32>
    %132 = vector.extract_strided_slice %129 {offsets = [0, 0], sizes = [8, 32], strides = [1, 1]} : vector<8x96xf32> to vector<8x32xf32>
    %133 = vector.extract_strided_slice %129 {offsets = [0, 32], sizes = [8, 32], strides = [1, 1]} : vector<8x96xf32> to vector<8x32xf32>
    %134 = vector.extract_strided_slice %129 {offsets = [0, 64], sizes = [8, 32], strides = [1, 1]} : vector<8x96xf32> to vector<8x32xf32>
    %135 = arith.mulf %133, %118 : vector<8x32xf32>
    %136 = arith.mulf %132, %131 : vector<8x32xf32>
    %137 = arith.addf %135, %136 : vector<8x32xf32>
    %138 = math.tanh %137 : vector<8x32xf32>
    %139 = arith.mulf %134, %138 : vector<8x32xf32>
    %140 = vector.extract_strided_slice %139 {offsets = [0, 0], sizes = [8, 16], strides = [1, 1]} : vector<8x32xf32> to vector<8x16xf32>
    %141 = vector.extract_strided_slice %139 {offsets = [0, 16], sizes = [8, 16], strides = [1, 1]} : vector<8x32xf32> to vector<8x16xf32>
    %cst_33 = arith.constant dense<0.000000e+00> : vector<8x128xf32>
    %142 = tpu.matmul %139, %4, %cst_33 {dimension_numbers = #tpu.dot_dimension_numbers<[1], [0], [0], [1], [0, 0, 1, 1], [], []>} : vector<8x32xf32>, vector<32x128xf32>, vector<8x128xf32> -> vector<8x128xf32>
    %143 = arith.addf %97, %142 : vector<8x128xf32>
    %144 = vector.extract_strided_slice %143 {offsets = [0, 0], sizes = [8, 96], strides = [1, 1]} : vector<8x128xf32> to vector<8x96xf32>
    %145 = arith.negf %144 : vector<8x96xf32>
    %146 = math.exp %145 : vector<8x96xf32>
    %cst_34 = arith.constant 1.000000e+00 : f32
    %147 = vector.broadcast %cst_34 : f32 to vector<8x96xf32>
    %148 = arith.addf %147, %146 : vector<8x96xf32>
    %149 = arith.divf %147, %148 : vector<8x96xf32>
    %150 = vector.extract_strided_slice %143 {offsets = [0, 96], sizes = [8, 32], strides = [1, 1]} : vector<8x128xf32> to vector<8x32xf32>
    %151 = math.tanh %150 : vector<8x32xf32>
    %152 = vector.extract_strided_slice %149 {offsets = [0, 0], sizes = [8, 32], strides = [1, 1]} : vector<8x96xf32> to vector<8x32xf32>
    %153 = vector.extract_strided_slice %149 {offsets = [0, 32], sizes = [8, 32], strides = [1, 1]} : vector<8x96xf32> to vector<8x32xf32>
    %154 = vector.extract_strided_slice %149 {offsets = [0, 64], sizes = [8, 32], strides = [1, 1]} : vector<8x96xf32> to vector<8x32xf32>
    %155 = arith.mulf %153, %137 : vector<8x32xf32>
    %156 = arith.mulf %152, %151 : vector<8x32xf32>
    %157 = arith.addf %155, %156 : vector<8x32xf32>
    %158 = math.tanh %157 : vector<8x32xf32>
    %159 = arith.mulf %154, %158 : vector<8x32xf32>
    %160 = vector.extract_strided_slice %159 {offsets = [0, 0], sizes = [8, 16], strides = [1, 1]} : vector<8x32xf32> to vector<8x16xf32>
    %161 = vector.extract_strided_slice %159 {offsets = [0, 16], sizes = [8, 16], strides = [1, 1]} : vector<8x32xf32> to vector<8x16xf32>
    %cst_35 = arith.constant dense<0.000000e+00> : vector<8x128xf32>
    %162 = tpu.matmul %159, %4, %cst_35 {dimension_numbers = #tpu.dot_dimension_numbers<[1], [0], [0], [1], [0, 0, 1, 1], [], []>} : vector<8x32xf32>, vector<32x128xf32>, vector<8x128xf32> -> vector<8x128xf32>
    %163 = arith.addf %100, %162 : vector<8x128xf32>
    %164 = vector.extract_strided_slice %163 {offsets = [0, 0], sizes = [8, 96], strides = [1, 1]} : vector<8x128xf32> to vector<8x96xf32>
    %165 = arith.negf %164 : vector<8x96xf32>
    %166 = math.exp %165 : vector<8x96xf32>
    %cst_36 = arith.constant 1.000000e+00 : f32
    %167 = vector.broadcast %cst_36 : f32 to vector<8x96xf32>
    %168 = arith.addf %167, %166 : vector<8x96xf32>
    %169 = arith.divf %167, %168 : vector<8x96xf32>
    %170 = vector.extract_strided_slice %163 {offsets = [0, 96], sizes = [8, 32], strides = [1, 1]} : vector<8x128xf32> to vector<8x32xf32>
    %171 = math.tanh %170 : vector<8x32xf32>
    %172 = vector.extract_strided_slice %169 {offsets = [0, 0], sizes = [8, 32], strides = [1, 1]} : vector<8x96xf32> to vector<8x32xf32>
    %173 = vector.extract_strided_slice %169 {offsets = [0, 32], sizes = [8, 32], strides = [1, 1]} : vector<8x96xf32> to vector<8x32xf32>
    %174 = vector.extract_strided_slice %169 {offsets = [0, 64], sizes = [8, 32], strides = [1, 1]} : vector<8x96xf32> to vector<8x32xf32>
    %175 = arith.mulf %173, %157 : vector<8x32xf32>
    %176 = arith.mulf %172, %171 : vector<8x32xf32>
    %177 = arith.addf %175, %176 : vector<8x32xf32>
    %178 = math.tanh %177 : vector<8x32xf32>
    %179 = arith.mulf %174, %178 : vector<8x32xf32>
    %180 = vector.extract_strided_slice %179 {offsets = [0, 0], sizes = [8, 16], strides = [1, 1]} : vector<8x32xf32> to vector<8x16xf32>
    %181 = arith.maximumf %21, %36 : vector<8x32xf32>
    %cst_37 = arith.constant dense<0.000000e+00> : vector<8x128xf32>
    %182 = tpu.matmul %140, %6, %cst_37 {dimension_numbers = #tpu.dot_dimension_numbers<[1], [0], [0], [1], [0, 0, 1, 1], [], []>} : vector<8x16xf32>, vector<16x128xf32>, vector<8x128xf32> -> vector<8x128xf32>
    %cst_38 = arith.constant dense<0.000000e+00> : vector<8x128xf32>
    %183 = tpu.matmul %161, %7, %cst_38 {dimension_numbers = #tpu.dot_dimension_numbers<[1], [0], [0], [1], [0, 0, 1, 1], [], []>} : vector<8x16xf32>, vector<16x128xf32>, vector<8x128xf32> -> vector<8x128xf32>
    %184 = arith.addf %182, %183 : vector<8x128xf32>
    %cst_39 = arith.constant dense<0.000000e+00> : vector<8x128xf32>
    %185 = tpu.matmul %181, %8, %cst_39 {dimension_numbers = #tpu.dot_dimension_numbers<[1], [0], [0], [1], [0, 0, 1, 1], [], []>} : vector<8x32xf32>, vector<32x128xf32>, vector<8x128xf32> -> vector<8x128xf32>
    %186 = arith.addf %184, %185 : vector<8x128xf32>
    %187 = vector.broadcast %9 : vector<1x128xf32> to vector<8x128xf32>
    %188 = arith.addf %186, %187 : vector<8x128xf32>
    %c0_40 = arith.constant 0 : index
    %c0_41 = arith.constant 0 : index
    %c0_42 = arith.constant 0 : index
    %189 = vector.load %arg4[%c0_40, %c0_41, %c0_42] : memref<3x8x128xf32, #tpu.memory_space<vmem>>, vector<1x8x128xf32>
    %190 = vector.shape_cast %189 : vector<1x8x128xf32> to vector<8x128xf32>
    %191 = vector.shape_cast %188 : vector<8x128xf32> to vector<1x8x128xf32>
    tpu.vector_store %arg4[%c0_40, %c0_41, %c0_42], %191 {strides = array<i32>} : memref<3x8x128xf32, #tpu.memory_space<vmem>>, vector<1x8x128xf32>,
    %192 = arith.maximumf %21, %51 : vector<8x32xf32>
    %cst_43 = arith.constant dense<0.000000e+00> : vector<8x128xf32>
    %193 = tpu.matmul %160, %6, %cst_43 {dimension_numbers = #tpu.dot_dimension_numbers<[1], [0], [0], [1], [0, 0, 1, 1], [], []>} : vector<8x16xf32>, vector<16x128xf32>, vector<8x128xf32> -> vector<8x128xf32>
    %cst_44 = arith.constant dense<0.000000e+00> : vector<8x128xf32>
    %194 = tpu.matmul %141, %7, %cst_44 {dimension_numbers = #tpu.dot_dimension_numbers<[1], [0], [0], [1], [0, 0, 1, 1], [], []>} : vector<8x16xf32>, vector<16x128xf32>, vector<8x128xf32> -> vector<8x128xf32>
    %195 = arith.addf %193, %194 : vector<8x128xf32>
    %cst_45 = arith.constant dense<0.000000e+00> : vector<8x128xf32>
    %196 = tpu.matmul %192, %8, %cst_45 {dimension_numbers = #tpu.dot_dimension_numbers<[1], [0], [0], [1], [0, 0, 1, 1], [], []>} : vector<8x32xf32>, vector<32x128xf32>, vector<8x128xf32> -> vector<8x128xf32>
    %197 = arith.addf %195, %196 : vector<8x128xf32>
    %198 = vector.broadcast %9 : vector<1x128xf32> to vector<8x128xf32>
    %199 = arith.addf %197, %198 : vector<8x128xf32>
    %c1 = arith.constant 1 : index
    %c0_46 = arith.constant 0 : index
    %c0_47 = arith.constant 0 : index
    %200 = vector.load %arg4[%c1, %c0_46, %c0_47] : memref<3x8x128xf32, #tpu.memory_space<vmem>>, vector<1x8x128xf32>
    %201 = vector.shape_cast %200 : vector<1x8x128xf32> to vector<8x128xf32>
    %202 = vector.shape_cast %199 : vector<8x128xf32> to vector<1x8x128xf32>
    tpu.vector_store %arg4[%c1, %c0_46, %c0_47], %202 {strides = array<i32>} : memref<3x8x128xf32, #tpu.memory_space<vmem>>, vector<1x8x128xf32>,
    %203 = arith.maximumf %21, %66 : vector<8x32xf32>
    %cst_48 = arith.constant dense<0.000000e+00> : vector<8x128xf32>
    %204 = tpu.matmul %180, %6, %cst_48 {dimension_numbers = #tpu.dot_dimension_numbers<[1], [0], [0], [1], [0, 0, 1, 1], [], []>} : vector<8x16xf32>, vector<16x128xf32>, vector<8x128xf32> -> vector<8x128xf32>
    %cst_49 = arith.constant dense<0.000000e+00> : vector<8x128xf32>
    %205 = tpu.matmul %121, %7, %cst_49 {dimension_numbers = #tpu.dot_dimension_numbers<[1], [0], [0], [1], [0, 0, 1, 1], [], []>} : vector<8x16xf32>, vector<16x128xf32>, vector<8x128xf32> -> vector<8x128xf32>
    %206 = arith.addf %204, %205 : vector<8x128xf32>
    %cst_50 = arith.constant dense<0.000000e+00> : vector<8x128xf32>
    %207 = tpu.matmul %203, %8, %cst_50 {dimension_numbers = #tpu.dot_dimension_numbers<[1], [0], [0], [1], [0, 0, 1, 1], [], []>} : vector<8x32xf32>, vector<32x128xf32>, vector<8x128xf32> -> vector<8x128xf32>
    %208 = arith.addf %206, %207 : vector<8x128xf32>
    %209 = vector.broadcast %9 : vector<1x128xf32> to vector<8x128xf32>
    %210 = arith.addf %208, %209 : vector<8x128xf32>
    %c2 = arith.constant 2 : index
    %c0_51 = arith.constant 0 : index
    %c0_52 = arith.constant 0 : index
    %211 = vector.load %arg4[%c2, %c0_51, %c0_52] : memref<3x8x128xf32, #tpu.memory_space<vmem>>, vector<1x8x128xf32>
    %212 = vector.shape_cast %211 : vector<1x8x128xf32> to vector<8x128xf32>
    %213 = vector.shape_cast %210 : vector<8x128xf32> to vector<1x8x128xf32>
    tpu.vector_store %arg4[%c2, %c0_51, %c0_52], %213 {strides = array<i32>} : memref<3x8x128xf32, #tpu.memory_space<vmem>>, vector<1x8x128xf32>,
    return
  }
  func.func @transform_0(%arg0: i32) -> (i32, i32, i32) {
    %c0_i32 = arith.constant 0 : i32
    %c0_i32_0 = arith.constant 0 : i32
    %c0_i32_1 = arith.constant 0 : i32
    return %arg0, %c0_i32, %c0_i32_0 : i32, i32, i32
  }
  func.func @transform_1(%arg0: i32) -> (i32, i32, i32) {
    %c0_i32 = arith.constant 0 : i32
    %c0_i32_0 = arith.constant 0 : i32
    %c0_i32_1 = arith.constant 0 : i32
    return %arg0, %c0_i32, %c0_i32_0 : i32, i32, i32
  }
  func.func @transform_2(%arg0: i32) -> (i32, i32) {
    %c0_i32 = arith.constant 0 : i32
    %c0_i32_0 = arith.constant 0 : i32
    %c0_i32_1 = arith.constant 0 : i32
    return %c0_i32, %c0_i32_0 : i32, i32
  }
  func.func @transform_3(%arg0: i32) -> (i32, i32, i32) {
    %c0_i32 = arith.constant 0 : i32
    %c0_i32_0 = arith.constant 0 : i32
    %c0_i32_1 = arith.constant 0 : i32
    return %c0_i32, %arg0, %c0_i32_0 : i32, i32, i32
  }
}

</mosaic_0001>

<bundles_post_ra>
// kernel: tpu_custom_call.1
= control target key start
LH: loop header
LB: loop body
LE: loop exit
PB: predicated region body
PF: predicated region fallthrough
CT: control target
= control target key end

     0   :  { %8 = vsyncpa [#allocation3], 0  ;;  %s6120_s0 = inlined_call_operand.vmem [shape: s32[16,4,2], index: 0, kind: input, shape index: {}]   ;;  %s6121_s1 = inlined_call_operand.hbm [shape: f32[16,32,32], index: 1, kind: input, shape index: {}]   ;;  %s6122_s2 = inlined_call_operand.hbm [shape: f32[144,128], index: 2, kind: input, shape index: {}]   ;;  %s6123_s3 = inlined_call_operand.hbm [shape: f32[3,16,128], index: 3, kind: output, shape index: {}]  }
   0x1   :  { %10 = vsyncpa [#allocation3 + $0x1], 0 }
   0x2   :  { %11 = vsyncpa [#allocation6], 0 }
   0x3   :  { %12 = vsyncpa [#allocation4], 0 }
   0x4   :  { %14 = vsyncpa [#allocation4 + $0x1], 0  ;;  %s3585_s12 = smov 0   ;;  %s3587_s13 = smov 0  }
   0x5   :  { %s3589_s14 = smov 0   ;;  %s3591_s15 = smov 0  }
   0x6 LB: > { %s3606_s16 = sadd.s32 4294967295, %s3551_s15   ;;  %s3234_s17 = sadd.s32 4294967294, %s3551_s15   ;;  %s3551_s15 = sphi %s3591_s15, %s6233_s15   ;;  %s3547_s14 = sphi %s3589_s14, %s6232_s14   ;;  %s3543_s13 = sphi %s3587_s13, %s6231_s13   ;;  %s3539_s12 = sphi %s3585_s12, %s6230_s12  }
   0x7   : > { %p66_p0 = scmp.ne.s32.totalorder %s3543_s13, %s3539_s12  ;;  %p67_p1 = scmp.eq.s32.totalorder %s3606_s16, 0 }
   0x8   : > { %p111_p2 = scmp.eq.s32.totalorder %s3606_s16, 1  ;;  %p117_p3 = scmp.eq.s32.totalorder %s3234_s17, 1 }
   0x9   : > { %p3615_p4 = por %p67_p1, %p66_p0  ;;  %p3235_p5 = scmp.ge.s32.totalorder %s3551_s15, 1 }
   0xa   : > { %p3620_p6 = por %p117_p3, %p66_p0  ;;  %p124_p7 = scmp.lt.s32.totalorder %s3551_s15, 3 }
   0xb   : > { %s135_s22 = sshll.u32 %s6122_s2, 4  ;;  %s3553_s24 = smov [#allocation5]   ;;  %s136_s22 = int_to_ptr.hbm [resolvable:$true] %s135_s22 }
   0xc   : > { %p3628_p8 = pnand %p3235_p5, %p124_p7  ;;  %s137_s25 = sshll.u32 %s3553_s24, 4  ;;  %s138_s25 = int_to_ptr.vmem [resolvable:$true] %s137_s25 }
   0xd   : > { %s3638_s26 = sadd.s32 1, %s3551_s15   ;;  %s3554_s27 = smov 128  }
   0xe   : > { %p3283_p9 = pneg %p3628_p8  ;;  %s3555_s28 = smov 8  }
   0xf   : > { %s50_s29 = ssub.s32 %s3551_s15, %s3638_s26  ;;  %s53_s30 = sadd.s32 1, %s3547_s14 }
  0x10   : > { %p3284_p10 = pnand %p3283_p9, %p67_p1  ;;  %p51_p12 = scmp.eq.s32.totalorder %s50_s29, 0 }
  0x11   : > { %p60_p13 = scmp.ne.s32.totalorder %s3547_s14, %s3543_s13  ;;  %p61_p0 = scmp.eq.s32.totalorder %s3551_s15, 0 }
  0x12   : > { %3286 = dma.hbm_to_vmem [thread:$0]  (!%p3284_p10), %s136_s22, 2304, %s138_s25, [#allocation6], %s3554_s27, %s3554_s27, %s3555_s28  }
  0x13   : > { %s3650_s4 = scalar_select %p51_p12, %s3547_s14, %s53_s30  }
  0x14   : > { %p3654_p3 = por %p111_p2, %p60_p13  ;;  %p3296_p5 = scmp.lt.s32.totalorder %s3551_s15, 2 }
  0x15   : > { %s160_s6 = sand.u32 1, %s3547_s14   ;;  %s3273_s7 = sshll.u32 %s3551_s15, 8 }
  0x16   : > { %p62_p7 = por %p61_p0, %p60_p13  ;;  %s3238_s8 = sshll.u32 %s160_s6, 8 }
  0x17   : > { %s170_s11 = scalar_lea.hbm %s6121_s1, %s3273_s7  ;;  %s164_s20 = scalar_lea.vmem [#allocation2], %s3238_s8 }
  0x18   : > { %s171_s17 = sshll.u32 %s170_s11, 4  ;;  %s173_s21 = sshll.u32 %s164_s20, 4  ;;  %s172_s17 = int_to_ptr.hbm [resolvable:$true] %s171_s17  ;;  %s174_s21 = int_to_ptr.vmem [resolvable:$true] %s173_s21 }
  0x19   : > { %p3664_p9 = pnand %p3296_p5, %p62_p7  ;;  %s161_s24 = scalar_lea.sflag [#allocation3], %s160_s6 }
  0x1a   : > { %s3451_s25 = sshra.s32 %s172_s17, 4  ;;  %s3458_s8 = scalar_lea.hbm %s6121_s1, 512  ;;  %s3452_s25 = int_to_ptr.hbm [resolvable:$true] %s3451_s25 }
  0x1b   : > { %s3453_s29 = scalar_lea.hbm %s3452_s25, 256  ;;  %p3455_p10 = pneg %p3664_p9 }
  0x1c   : > { %p3454_p2 = scmp.ne.s32.totalorder %s3452_s25, %s3453_s29  ;;  %p3459_p0 = scmp.lt.s32.totalorder %s3452_s25, %s6121_s1 }
  0x1d   : > { %p3460_p5 = scmp.lt.s32.totalorder %s3458_s8, %s3453_s29 }
  0x1e   : > { %p3456_p12 = pnand %p3455_p10, %p3454_p2 }
  0x1f   : > { %p3461_p7 = por %p3460_p5, %p3459_p0 }
  0x20   : > { %p3457_p13 = pneg %p3456_p12 }
  0x22   : > { %p3462_p11 = pnand %p3461_p7, %p3457_p13 }
  0x24   : > { %3465 = shalt.err (!%p3462_p11)
}
  0x25   : > { %3290 = dma.hbm_to_vmem [thread:$0]  (!%p3664_p9), %s172_s17, 4096, %s174_s21, %s161_s24, %s3554_s27, %s3554_s27, %s3555_s28  }
  0x26   : > { %185 = sbr.rel (%p3628_p8) target bundleno = 3006 (0xbbe), region = 32 }
  0x2b   : > { %s3684_s6 = sand.u32 1, %s3543_s13  }
  0x2c   : > { %s3243_s11 = sshll.u32 %s3684_s6, 8  ;;  %s188_s20 = scalar_lea.sflag [#allocation3], %s3684_s6 }
  0x2d   : > { %s3688_s25 = scalar_lea.vmem [#allocation2], %s3243_s11 }
  0x2e   : > { %3526 = dma.done.wait (%p3615_p4), %s188_s20, 4096  }
  0x2f   : > { %3528 = vsyncadd (%p3615_p4), %s188_s20, 4294963200 }
  0x30   : > { %3530 = dma.done.wait (%p67_p1), [#allocation6], 2304  }
  0x31   : > { %3532 = vsyncadd (%p67_p1), [#allocation6], 4294964992  ;;  %s3699_s23 = sshll.u32 %s3606_s16, 3  ;;  %v6125_v0 = vmov 0   ;;  %v6124_v1 = vlaneseq  ;;  %s3557_s16 = smov 127  }
  0x32   : > { %p226_p8 = scmp.lt.s32.totalorder %s3699_s23, 15  ;;  %3344 = vset.pattern.permute.xlu2 %v6125_v0  ;;  %3343 = vset.pattern.permute.xlu1 %v6125_v0  ;;  %s3559_s22 = smov 32  }
  0x33   : > { %3345 = vset.pattern.permute.xlu0 %v6125_v0  ;;  %v3712_v2 = vshrl.u32 %v6124_v1, 7  ;;  %s3560_s24 = smov 64   ;;  %s3561_s29 = smov 48  }
  0x34   : > { %s227_s18 = scalar_select %p226_p8, %s3699_s23, 15 }
  0x35   : > { %v3729_v8 = vadd.s32 8, %v3712_v2  ;;  %v3779_v26 = vadd.s32 16, %v3712_v2  ;;  %v3839_v44 = vadd.s32 24, %v3712_v2  ;;  %s3274_s30 = smul.u32 24, %s3684_s6  ;;  %s3135_s10 = scalar_lea.hbm %s6123_s3, %s3699_s23 }
  0x36   : > { %s3246_s27 = sshll.u32 %s227_s18, 2  ;;  %s3138_s20 = sshll.u32 %s3135_s10, 4  ;;  %s3139_s20 = int_to_ptr.hbm [resolvable:$true] %s3138_s20 }
  0x37   : > { %s3709_s21 = scalar_lea.vmem %s6120_s0, %s3246_s27  ;;  %s224_s7 = scalar_lea.vmem [#allocation7], %s3274_s30 }
  0x38   : > { %v265_v3 = vld [vmem:[%s3709_s21 + $0x4] sm:$0xf]  ;;  %v264_v4 = vld [vmem:[%s3709_s21] sm:$0xf]  ;;  %v266_v12 = vld [vmem:[%s3709_s21 + $0x8] sm:$0xf] }
  0x39   : > { %v3716_v5 = vperm.slane %v265_v3, 3  ;;  %v3718_v6 = vperm.slane %v264_v4, 3  ;;  %v3720_v7 = vperm.slane %v264_v4, 0  ;;  %v3747_v16 = vperm.slane %v265_v3, 0  ;;  %v267_v22 = vld [vmem:[%s3709_s21 + $0xc] sm:$0xf] }
  0x3a   : > { %v3749_v17 = vperm.slane %v266_v12, 3  ;;  %v3763_v21 = vperm.slane %v266_v12, 0  ;;  %v3781_v27 = vperm.slane %v267_v22, 3  ;;  %v3807_v34 = vperm.slane %v267_v22, 0  ;;  %v268_v35 = vld [vmem:[%s3709_s21 + $0x10] sm:$0xf] }
  0x3b   : > { %vm2043_vm0 = vcmp.le.s32.totalorder %v3712_v2, %v3716_v5  ;;  %vm2039_vm1 = vcmp.le.s32.totalorder %v3712_v2, %v3718_v6  ;;  %vm335_vm2 = vcmp.le.s32.totalorder %v3712_v2, %v3720_v7  ;;  %vm2044_vm3 = vcmp.le.s32.totalorder %v3729_v8, %v3716_v5  ;;  %v269_v45 = vld [vmem:[%s3709_s21 + $0x14] sm:$0xf]  ;;  %v270_v57 = vld [vmem:[%s3709_s21 + $0x18] sm:$0xf]  ;;  %s3136_s11 = sshll.u32 %s224_s7, 4  ;;  %s3495_s18 = sshra.s32 %s3139_s20, 4  ;;  %s3137_s11 = int_to_ptr.vmem [resolvable:$true] %s3136_s11  ;;  %s3496_s18 = int_to_ptr.hbm [resolvable:$true] %s3495_s18 }
  0x3c   : > { %v2075_v9 = vsel %vm2043_vm0, 1, %v6125_v0  ;;  %v2071_v10 = vsel %vm2039_vm1, 1, %v6125_v0  ;;  %v367_v11 = vsel %vm335_vm2, 1, %v6125_v0  ;;  %vm2040_vm4 = vcmp.le.s32.totalorder %v3729_v8, %v3718_v6  ;;  %s3497_s27 = scalar_lea.hbm %s3496_s18, 24  ;;  %s3501_s17 = scalar_lea.hbm %s6123_s3, 48 }
  0x3d   : > { %2111 = vrot.lane.b32.xlu1 %v2075_v9, %s3557_s16  ;;  %2103 = vrot.lane.b32.xlu0 %v2071_v10, %s3557_s16  ;;  %vm336_vm5 = vcmp.le.s32.totalorder %v3729_v8, %v3720_v7  ;;  %v2076_v13 = vsel %vm2044_vm3, 1, %v6125_v0  ;;  %v2072_v14 = vsel %vm2040_vm4, 1, %v6125_v0  ;;  %vm340_vm6 = vcmp.le.s32.totalorder %v3729_v8, %v3747_v16  ;;  %p3498_p1 = scmp.ne.s32.totalorder %s3496_s18, %s3497_s27  ;;  %p3502_p9 = scmp.lt.s32.totalorder %s3496_s18, %s6123_s3 }
  0x3e   : > { %399 = vrot.lane.b32.xlu2 %v367_v11, %s3557_s16  ;;  %v368_v15 = vsel %vm336_vm5, 1, %v6125_v0  ;;  %vm339_vm7 = vcmp.le.s32.totalorder %v3712_v2, %v3747_v16  ;;  %vm2047_vm8 = vcmp.le.s32.totalorder %v3712_v2, %v3749_v17  ;;  %v372_v18 = vsel %vm340_vm6, 1, %v6125_v0  ;;  %p3503_p2 = scmp.lt.s32.totalorder %s3501_s17, %s3497_s27 }
  0x3f   : > { %v371_v19 = vsel %vm339_vm7, 1, %v6125_v0  ;;  %v2079_v20 = vsel %vm2047_vm8, 1, %v6125_v0  ;;  %vm343_vm9 = vcmp.le.s32.totalorder %v3712_v2, %v3763_v21  ;;  %vm2048_vm10 = vcmp.le.s32.totalorder %v3729_v8, %v3749_v17  ;;  %p3499_p4 = pnand %p3498_p1, %p3654_p3 }
  0x40   : > { %vm344_vm11 = vcmp.le.s32.totalorder %v3729_v8, %v3763_v21  ;;  %v375_v23 = vsel %vm343_vm9, 1, %v6125_v0  ;;  %v2080_v24 = vsel %vm2048_vm10, 1, %v6125_v0  ;;  %vm2045_vm12 = vcmp.le.s32.totalorder %v3779_v26, %v3716_v5  ;;  %p3504_p10 = por %p3503_p2, %p3502_p9 }
  0x41   : > { %v376_v25 = vsel %vm344_vm11, 1, %v6125_v0  ;;  %vm2041_vm13 = vcmp.le.s32.totalorder %v3779_v26, %v3718_v6  ;;  %vm2051_vm14 = vcmp.le.s32.totalorder %v3712_v2, %v3781_v27  ;;  %v2077_v28 = vsel %vm2045_vm12, 1, %v6125_v0  ;;  %p3500_p11 = pneg %p3499_p4 }
  0x42   : > { %v2073_v29 = vsel %vm2041_vm13, 1, %v6125_v0  ;;  %v2083_v30 = vsel %vm2051_vm14, 1, %v6125_v0  ;;  %vm2052_vm15 = vcmp.le.s32.totalorder %v3729_v8, %v3781_v27  ;;  %vm337_vm0 = vcmp.le.s32.totalorder %v3779_v26, %v3720_v7 }
  0x43   : > { %vm341_vm1 = vcmp.le.s32.totalorder %v3779_v26, %v3747_v16  ;;  %v2084_v31 = vsel %vm2052_vm15, 1, %v6125_v0  ;;  %v369_v32 = vsel %vm337_vm0, 1, %v6125_v0  ;;  %vm347_vm2 = vcmp.le.s32.totalorder %v3712_v2, %v3807_v34  ;;  %p3505_p12 = pnand %p3504_p10, %p3500_p11 }
  0x44   : > { %v373_v33 = vsel %vm341_vm1, 1, %v6125_v0  ;;  %vm348_vm3 = vcmp.le.s32.totalorder %v3729_v8, %v3807_v34  ;;  %vm2049_vm4 = vcmp.le.s32.totalorder %v3779_v26, %v3749_v17  ;;  %v379_v36 = vsel %vm347_vm2, 1, %v6125_v0 }
  0x45   : > { %2113 = vrot.lane.b32.xlu1 %v2076_v13, %s3557_s16  ;;  %2105 = vrot.lane.b32.xlu0 %v2072_v14, %s3557_s16  ;;  %v380_v37 = vsel %vm348_vm3, 1, %v6125_v0  ;;  %v2081_v38 = vsel %vm2049_vm4, 1, %v6125_v0  ;;  %v3822_v39 = vperm.slane %v268_v35, 3  ;;  %vm345_vm7 = vcmp.le.s32.totalorder %v3779_v26, %v3763_v21 }
  0x46   : > { %401 = vrot.lane.b32.xlu2 %v368_v15, %s3557_s16  ;;  %v377_v42 = vsel %vm345_vm7, 1, %v6125_v0  ;;  %v3836_v43 = vperm.slane %v268_v35, 0  ;;  %vm2042_vm10 = vcmp.le.s32.totalorder %v3839_v44, %v3718_v6  ;;  %v3854_v49 = vperm.slane %v269_v45, 3  ;;  %v271_v15 = vld [vmem:[%s3709_s21 + $0x1c] sm:$0xf] }
  0x47   : > { %vm2055_vm5 = vcmp.le.s32.totalorder %v3712_v2, %v3822_v39  ;;  %vm2056_vm6 = vcmp.le.s32.totalorder %v3729_v8, %v3822_v39  ;;  %v2074_v48 = vsel %vm2042_vm10, 1, %v6125_v0  ;;  %vm2046_vm11 = vcmp.le.s32.totalorder %v3839_v44, %v3716_v5 }
  0x48   : > { %v2087_v40 = vsel %vm2055_vm5, 1, %v6125_v0  ;;  %v2088_v41 = vsel %vm2056_vm6, 1, %v6125_v0  ;;  %vm351_vm8 = vcmp.le.s32.totalorder %v3712_v2, %v3836_v43  ;;  %vm352_vm9 = vcmp.le.s32.totalorder %v3729_v8, %v3836_v43 }
  0x49   : > { %v383_v46 = vsel %vm351_vm8, 1, %v6125_v0  ;;  %v384_v47 = vsel %vm352_vm9, 1, %v6125_v0  ;;  %vm2053_vm12 = vcmp.le.s32.totalorder %v3779_v26, %v3781_v27  ;;  %vm2059_vm13 = vcmp.le.s32.totalorder %v3712_v2, %v3854_v49 }
  0x4a   : > { %v2078_v50 = vsel %vm2046_vm11, 1, %v6125_v0  ;;  %v2085_v51 = vsel %vm2053_vm12, 1, %v6125_v0  ;;  %v2091_v52 = vsel %vm2059_vm13, 1, %v6125_v0  ;;  %vm2060_vm14 = vcmp.le.s32.totalorder %v3729_v8, %v3854_v49 }
  0x4b   : > { %vm338_vm15 = vcmp.le.s32.totalorder %v3839_v44, %v3720_v7  ;;  %vm342_vm0 = vcmp.le.s32.totalorder %v3839_v44, %v3747_v16  ;;  %v2092_v53 = vsel %vm2060_vm14, 1, %v6125_v0  ;;  %v3880_v56 = vperm.slane %v269_v45, 0 }
  0x4c   : > { %v370_v54 = vsel %vm338_vm15, 1, %v6125_v0  ;;  %v374_v55 = vsel %vm342_vm0, 1, %v6125_v0  ;;  %vm349_vm1 = vcmp.le.s32.totalorder %v3779_v26, %v3807_v34  ;;  %v3895_v61 = vperm.slane %v270_v57, 3 }
  0x4d   : > { %409 = vrot.lane.b32.xlu1 %v372_v18, %s3557_s16  ;;  %407 = vrot.lane.b32.xlu0 %v371_v19, %s3557_s16  ;;  %vm355_vm2 = vcmp.le.s32.totalorder %v3712_v2, %v3880_v56  ;;  %vm356_vm3 = vcmp.le.s32.totalorder %v3729_v8, %v3880_v56  ;;  %v381_v58 = vsel %vm349_vm1, 1, %v6125_v0  ;;  %vm2050_vm4 = vcmp.le.s32.totalorder %v3839_v44, %v3749_v17 }
  0x4e   : > { %2119 = vrot.lane.b32.xlu2 %v2079_v20, %s3557_s16  ;;  %v387_v59 = vsel %vm355_vm2, 1, %v6125_v0  ;;  %v388_v60 = vsel %vm356_vm3, 1, %v6125_v0  ;;  %vm2057_vm5 = vcmp.le.s32.totalorder %v3779_v26, %v3822_v39  ;;  %vm2063_vm6 = vcmp.le.s32.totalorder %v3712_v2, %v3895_v61 }
  0x4f   : > { %v2082_v63 = vsel %vm2050_vm4, 1, %v6125_v0  ;;  %v2089_v3 = vsel %vm2057_vm5, 1, %v6125_v0  ;;  %v2095_v4 = vsel %vm2063_vm6, 1, %v6125_v0  ;;  %vm2064_vm7 = vcmp.le.s32.totalorder %v3729_v8, %v3895_v61 }
  0x50   : > { %vm346_vm8 = vcmp.le.s32.totalorder %v3839_v44, %v3763_v21  ;;  %vm353_vm9 = vcmp.le.s32.totalorder %v3779_v26, %v3836_v43  ;;  %v2096_v10 = vsel %vm2064_vm7, 1, %v6125_v0  ;;  %v3925_v13 = vperm.slane %v270_v57, 0 }
  0x51   : > { %v378_v11 = vsel %vm346_vm8, 1, %v6125_v0  ;;  %v385_v12 = vsel %vm353_vm9, 1, %v6125_v0  ;;  %vm2054_vm12 = vcmp.le.s32.totalorder %v3839_v44, %v3781_v27  ;;  %v3942_v22 = vperm.slane %v271_v15, 3 }
  0x52   : > { %vm359_vm10 = vcmp.le.s32.totalorder %v3712_v2, %v3925_v13  ;;  %vm360_vm11 = vcmp.le.s32.totalorder %v3729_v8, %v3925_v13  ;;  %v2086_v20 = vsel %vm2054_vm12, 1, %v6125_v0  ;;  %vm2061_vm13 = vcmp.le.s32.totalorder %v3779_v26, %v3854_v49 }
  0x53   : > { %v391_v18 = vsel %vm359_vm10, 1, %v6125_v0  ;;  %v392_v19 = vsel %vm360_vm11, 1, %v6125_v0  ;;  %vm2067_vm14 = vcmp.le.s32.totalorder %v3712_v2, %v3942_v22  ;;  %vm2068_vm15 = vcmp.le.s32.totalorder %v3729_v8, %v3942_v22 }
  0x54   : > { %vm350_vm0 = vcmp.le.s32.totalorder %v3839_v44, %v3807_v34  ;;  %vm357_vm1 = vcmp.le.s32.totalorder %v3779_v26, %v3880_v56  ;;  %vm2058_vm4 = vcmp.le.s32.totalorder %v3839_v44, %v3822_v39  ;;  %vm2065_vm5 = vcmp.le.s32.totalorder %v3779_v26, %v3895_v61 }
  0x55   : > { %415 = vrot.lane.b32.xlu1 %v375_v23, %s3557_s16  ;;  %2121 = vrot.lane.b32.xlu0 %v2080_v24, %s3557_s16  ;;  %vm354_vm6 = vcmp.le.s32.totalorder %v3839_v44, %v3836_v43  ;;  %vm361_vm7 = vcmp.le.s32.totalorder %v3779_v26, %v3925_v13  ;;  %vm2062_vm8 = vcmp.le.s32.totalorder %v3839_v44, %v3854_v49 }
  0x56   : > { %417 = vrot.lane.b32.xlu2 %v376_v25, %s3557_s16  ;;  %vm2069_vm9 = vcmp.le.s32.totalorder %v3779_v26, %v3942_v22  ;;  %vm358_vm10 = vcmp.le.s32.totalorder %v3839_v44, %v3880_v56  ;;  %vm2066_vm12 = vcmp.le.s32.totalorder %v3839_v44, %v3895_v61 }
  0x5d   : > { %2115 = vrot.lane.b32.xlu1 %v2077_v28, %s3557_s16  ;;  %2107 = vrot.lane.b32.xlu0 %v2073_v29, %s3557_s16  ;;  %v2093_v28 = vsel %vm2061_vm13, 1, %v6125_v0  ;;  %v2099_v29 = vsel %vm2067_vm14, 1, %v6125_v0  ;;  %vm362_vm13 = vcmp.le.s32.totalorder %v3839_v44, %v3925_v13  ;;  %vm2070_vm14 = vcmp.le.s32.totalorder %v3839_v44, %v3942_v22 }
  0x5e   : > { %2127 = vrot.lane.b32.xlu2 %v2083_v30, %s3557_s16  ;;  %v2100_v30 = vsel %vm2068_vm15, 1, %v6125_v0 }
  0x65   : > { %2129 = vrot.lane.b32.xlu0 %v2084_v31, %s3557_s16  ;;  %403 = vrot.lane.b32.xlu1 %v369_v32, %s3557_s16  ;;  %v3962_v31 = vperm.slane %v271_v15, 0  ;;  %v2102_v15 = vsel %vm2070_vm14, 1, %v6125_v0 }
  0x66   : > { %411 = vrot.lane.b32.xlu2 %v373_v33, %s3557_s16 }
  0x67   : > { %vm363_vm2 = vcmp.le.s32.totalorder %v3712_v2, %v3962_v31  ;;  %vm364_vm3 = vcmp.le.s32.totalorder %v3729_v8, %v3962_v31  ;;  %vm365_vm11 = vcmp.le.s32.totalorder %v3779_v26, %v3962_v31 }
  0x68   : > { %v396_v45 = vsel %vm364_vm3, 1, %v6125_v0  ;;  %vm2008_vm3 = vcmp.ge.s32.totalorder %v3729_v8, %v3718_v6 }
  0x6d   : > { %423 = vrot.lane.b32.xlu0 %v379_v36, %s3557_s16  ;;  %425 = vrot.lane.b32.xlu1 %v380_v37, %s3557_s16  ;;  %v382_v36 = vsel %vm350_vm0, 1, %v6125_v0  ;;  %v389_v37 = vsel %vm357_vm1, 1, %v6125_v0  ;;  %vm2007_vm0 = vcmp.ge.s32.totalorder %v3712_v2, %v3718_v6 }
  0x6e   : > { %2123 = vrot.lane.b32.xlu2 %v2081_v38, %s3557_s16  ;;  %v395_v38 = vsel %vm363_vm2, 1, %v6125_v0  ;;  %vm366_vm2 = vcmp.le.s32.totalorder %v3839_v44, %v3962_v31 }
  0x75   : > { %2135 = vrot.lane.b32.xlu0 %v2087_v40, %s3557_s16  ;;  %2137 = vrot.lane.b32.xlu1 %v2088_v41, %s3557_s16 }
  0x76   : > { %419 = vrot.lane.b32.xlu2 %v377_v42, %s3557_s16 }
  0x7d   : > { %431 = vrot.lane.b32.xlu0 %v383_v46, %s3557_s16  ;;  %433 = vrot.lane.b32.xlu1 %v384_v47, %s3557_s16  ;;  %v2090_v46 = vsel %vm2058_vm4, 1, %v6125_v0  ;;  %v2097_v47 = vsel %vm2065_vm5, 1, %v6125_v0 }
  0x7e   : > { %2109 = vrot.lane.b32.xlu2 %v2074_v48, %s3557_s16 }
  0x85   : > { %2117 = vrot.lane.b32.xlu0 %v2078_v50, %s3557_s16  ;;  %2131 = vrot.lane.b32.xlu1 %v2085_v51, %s3557_s16 }
  0x86   : > { %2143 = vrot.lane.b32.xlu2 %v2091_v52, %s3557_s16  ;;  %v386_v52 = vsel %vm354_vm6, 1, %v6125_v0 }
  0x8d   : > { %2145 = vrot.lane.b32.xlu0 %v2092_v53, %s3557_s16  ;;  %405 = vrot.lane.b32.xlu1 %v370_v54, %s3557_s16  ;;  %v393_v53 = vsel %vm361_vm7, 1, %v6125_v0  ;;  %v2094_v54 = vsel %vm2062_vm8, 1, %v6125_v0  ;;  %vm2011_vm7 = vcmp.ge.s32.totalorder %v3712_v2, %v3716_v5 }
  0x8e   : > { %413 = vrot.lane.b32.xlu2 %v374_v55, %s3557_s16 }
  0x95   : > { %427 = vrot.lane.b32.xlu0 %v381_v58, %s3557_s16  ;;  %439 = vrot.lane.b32.xlu1 %v387_v59, %s3557_s16  ;;  %v2101_v59 = vsel %vm2069_vm9, 1, %v6125_v0  ;;  %vm2012_vm9 = vcmp.ge.s32.totalorder %v3729_v8, %v3716_v5 }
  0x96   : > { %441 = vrot.lane.b32.xlu2 %v388_v60, %s3557_s16  ;;  %v390_v60 = vsel %vm358_vm10, 1, %v6125_v0 }
  0x98   : > { %v3904_v62 = vpop.permute.xlu2 %399 }
  0x99   : > { %vm463_vm10 = vcmp.ne.s32.totalorder %v3904_v62, 0 }
  0x9d   : > { %2125 = vrot.lane.b32.xlu0 %v2082_v63, %s3557_s16  ;;  %2139 = vrot.lane.b32.xlu1 %v2089_v3, %s3557_s16  ;;  %v397_v63 = vsel %vm365_vm11, 1, %v6125_v0  ;;  %vm303_vm11 = vcmp.ge.s32.totalorder %v3712_v2, %v3720_v7 }
  0x9e   : > { %2151 = vrot.lane.b32.xlu2 %v2095_v4, %s3557_s16  ;;  %vm495_vm14 = vmand %vm303_vm11, %vm463_vm10  ;;  %vm311_vm11 = vcmp.ge.s32.totalorder %v3712_v2, %v3763_v21 }
  0x9f   : > { %v527_v62 = vsel %vm495_vm14, 1, %v6125_v0 }
  0xa0   : > { %v3918_v9 = vpop.permute.xlu2 %401 }
  0xa5   : > { %2153 = vrot.lane.b32.xlu0 %v2096_v10, %s3557_s16  ;;  %421 = vrot.lane.b32.xlu1 %v378_v11, %s3557_s16  ;;  %v2098_v11 = vsel %vm2066_vm12, 1, %v6125_v0 }
  0xa6   : > { %435 = vrot.lane.b32.xlu2 %v385_v12, %s3557_s16  ;;  %v394_v12 = vsel %vm362_vm13, 1, %v6125_v0 }
  0xa8   : > { %v3934_v14 = vpop.permute.xlu2 %2119 }
  0xad   : > { %447 = vrot.lane.b32.xlu0 %v391_v18, %s3557_s16  ;;  %449 = vrot.lane.b32.xlu1 %v392_v19, %s3557_s16 }
  0xae   : > { %2133 = vrot.lane.b32.xlu2 %v2086_v20, %s3557_s16 }
  0xaf   : > { %v3947_v23 = vpop.permute.xlu1 %2111  ;;  %v3949_v24 = vpop.permute.xlu0 %2103 }
  0xb0   : > { %v3955_v25 = vpop.permute.xlu2 %417  ;;  %vm2167_vm15 = vcmp.ne.s32.totalorder %v3949_v24, 0  ;;  %v398_v24 = vsel %vm366_vm2, 1, %v6125_v0  ;;  %vm2171_vm6 = vcmp.ne.s32.totalorder %v3947_v23, 0  ;;  %vm308_vm2 = vcmp.ge.s32.totalorder %v3729_v8, %v3747_v16 }
  0xb1   : > { %vm2199_vm4 = vmand %vm2007_vm0, %vm2167_vm15  ;;  %vm464_vm15 = vcmp.ne.s32.totalorder %v3918_v9, 0  ;;  %vm304_vm0 = vcmp.ge.s32.totalorder %v3729_v8, %v3720_v7 }
  0xb2   : > { %vm2203_vm12 = vmand %vm2011_vm7, %vm2171_vm6 }
  0xb5   : > { %2147 = vrot.lane.b32.xlu0 %v2093_v28, %s3557_s16  ;;  %2159 = vrot.lane.b32.xlu1 %v2099_v29, %s3557_s16  ;;  %v2231_v28 = vsel %vm2199_vm4, 1, %v6125_v0  ;;  %vm307_vm4 = vcmp.ge.s32.totalorder %v3712_v2, %v3747_v16 }
  0xb6   : > { %2161 = vrot.lane.b32.xlu2 %v2100_v30, %s3557_s16 }
  0xb7   : > { %v3967_v32 = vpop.permute.xlu1 %2113  ;;  %v3969_v33 = vpop.permute.xlu0 %2105 }
  0xb8   : > { %v3975_v35 = vpop.permute.xlu2 %2127  ;;  %vm2168_vm1 = vcmp.ne.s32.totalorder %v3969_v33, 0  ;;  %vm2172_vm8 = vcmp.ne.s32.totalorder %v3967_v32, 0  ;;  %v2235_v32 = vsel %vm2203_vm12, 1, %v6125_v0 }
  0xb9   : > { %vm2200_vm5 = vmand %vm2008_vm3, %vm2168_vm1 }
  0xba   : > { %v2232_v29 = vsel %vm2200_vm5, 1, %v6125_v0  ;;  %vm2204_vm13 = vmand %vm2012_vm9, %vm2172_vm8  ;;  %vm2175_vm8 = vcmp.ne.s32.totalorder %v3934_v14, 0  ;;  %vm2015_vm9 = vcmp.ge.s32.totalorder %v3712_v2, %v3749_v17 }
  0xbb   : > { %vm496_vm5 = vmand %vm304_vm0, %vm464_vm15 }
  0xbc   : > { %vm2207_vm14 = vmand %vm2015_vm9, %vm2175_vm8 }
  0xbd   : > { %429 = vrot.lane.b32.xlu0 %v382_v36, %s3557_s16  ;;  %443 = vrot.lane.b32.xlu1 %v389_v37, %s3557_s16  ;;  %v2236_v36 = vsel %vm2204_vm13, 1, %v6125_v0  ;;  %vm2016_vm13 = vcmp.ge.s32.totalorder %v3729_v8, %v3749_v17 }
  0xbe   : > { %455 = vrot.lane.b32.xlu2 %v395_v38, %s3557_s16 }
  0xbf   : > { %v3985_v40 = vpop.permute.xlu1 %409  ;;  %v3987_v41 = vpop.permute.xlu0 %407 }
  0xc0   : > { %v3993_v42 = vpop.permute.xlu2 %411  ;;  %vm468_vm1 = vcmp.ne.s32.totalorder %v3985_v40, 0  ;;  %vm467_vm3 = vcmp.ne.s32.totalorder %v3987_v41, 0 }
  0xc1   : > { %vm500_vm6 = vmand %vm308_vm2, %vm468_vm1  ;;  %vm472_vm1 = vcmp.ne.s32.totalorder %v3955_v25, 0  ;;  %vm312_vm2 = vcmp.ge.s32.totalorder %v3729_v8, %v3763_v21 }
  0xc2   : > { %vm499_vm7 = vmand %vm307_vm4, %vm467_vm3  ;;  %v532_v40 = vsel %vm500_vm6, 1, %v6125_v0  ;;  %vm2013_vm4 = vcmp.ge.s32.totalorder %v3779_v26, %v3716_v5  ;;  %vm2009_vm6 = vcmp.ge.s32.totalorder %v3779_v26, %v3718_v6 }
  0xc3   : > { %v531_v41 = vsel %vm499_vm7, 1, %v6125_v0  ;;  %vm504_vm7 = vmand %vm312_vm2, %vm472_vm1 }
  0xc5   : > { %457 = vrot.lane.b32.xlu0 %v396_v45, %s3557_s16  ;;  %2141 = vrot.lane.b32.xlu1 %v2090_v46, %s3557_s16  ;;  %v528_v45 = vsel %vm496_vm5, 1, %v6125_v0 }
  0xc6   : > { %2155 = vrot.lane.b32.xlu2 %v2097_v47, %s3557_s16 }
  0xc7   : > { %v4003_v48 = vpop.permute.xlu1 %415  ;;  %v4005_v50 = vpop.permute.xlu0 %2121 }
  0xc8   : > { %v4011_v51 = vpop.permute.xlu2 %2123  ;;  %vm471_vm10 = vcmp.ne.s32.totalorder %v4003_v48, 0  ;;  %vm2176_vm12 = vcmp.ne.s32.totalorder %v4005_v50, 0 }
  0xc9   : > { %vm503_vm15 = vmand %vm311_vm11, %vm471_vm10  ;;  %vm2179_vm10 = vcmp.ne.s32.totalorder %v3975_v35, 0  ;;  %vm2019_vm11 = vcmp.ge.s32.totalorder %v3712_v2, %v3781_v27 }
  0xca   : > { %vm2208_vm0 = vmand %vm2016_vm13, %vm2176_vm12  ;;  %v535_v48 = vsel %vm503_vm15, 1, %v6125_v0  ;;  %vm305_vm13 = vcmp.ge.s32.totalorder %v3779_v26, %v3720_v7  ;;  %vm2020_vm15 = vcmp.ge.s32.totalorder %v3729_v8, %v3781_v27 }
  0xcb   : > { %v2240_v50 = vsel %vm2208_vm0, 1, %v6125_v0  ;;  %vm2211_vm0 = vmand %vm2019_vm11, %vm2179_vm10 }
  0xcd   : > { %437 = vrot.lane.b32.xlu0 %v386_v52, %s3557_s16  ;;  %451 = vrot.lane.b32.xlu1 %v393_v53, %s3557_s16  ;;  %v2239_v52 = vsel %vm2207_vm14, 1, %v6125_v0 }
  0xce   : > { %2149 = vrot.lane.b32.xlu2 %v2094_v54, %s3557_s16 }
  0xcf   : > { %v4021_v55 = vpop.permute.xlu1 %2115  ;;  %v4023_v57 = vpop.permute.xlu0 %2107 }
  0xd0   : > { %v4029_v58 = vpop.permute.xlu2 %419  ;;  %vm2173_vm3 = vcmp.ne.s32.totalorder %v4021_v55, 0  ;;  %vm2169_vm5 = vcmp.ne.s32.totalorder %v4023_v57, 0 }
  0xd1   : > { %vm2205_vm8 = vmand %vm2013_vm4, %vm2173_vm3  ;;  %vm469_vm3 = vcmp.ne.s32.totalorder %v3993_v42, 0  ;;  %vm309_vm4 = vcmp.ge.s32.totalorder %v3779_v26, %v3747_v16 }
  0xd2   : > { %vm2201_vm9 = vmand %vm2009_vm6, %vm2169_vm5  ;;  %v2237_v55 = vsel %vm2205_vm8, 1, %v6125_v0  ;;  %vm316_vm6 = vcmp.ge.s32.totalorder %v3729_v8, %v3807_v34  ;;  %vm315_vm8 = vcmp.ge.s32.totalorder %v3712_v2, %v3807_v34 }
  0xd3   : > { %v2233_v57 = vsel %vm2201_vm9, 1, %v6125_v0  ;;  %vm501_vm9 = vmand %vm309_vm4, %vm469_vm3 }
  0xd5   : > { %2163 = vrot.lane.b32.xlu0 %v2101_v59, %s3557_s16  ;;  %445 = vrot.lane.b32.xlu1 %v390_v60, %s3557_s16  ;;  %v536_v59 = vsel %vm504_vm7, 1, %v6125_v0 }
  0xd6   : > { %459 = vrot.lane.b32.xlu2 %v397_v63, %s3557_s16 }
  0xd7   : > { %v4039_v3 = vpop.permute.xlu0 %2129  ;;  %v4041_v4 = vpop.permute.xlu1 %403 }
  0xd8   : > { %v4047_v10 = vpop.permute.xlu2 %2109  ;;  %vm465_vm12 = vcmp.ne.s32.totalorder %v4041_v4, 0  ;;  %vm2180_vm14 = vcmp.ne.s32.totalorder %v4039_v3, 0 }
  0xd9   : > { %vm497_vm1 = vmand %vm305_vm13, %vm465_vm12  ;;  %vm2177_vm12 = vcmp.ne.s32.totalorder %v4011_v51, 0  ;;  %vm2017_vm13 = vcmp.ge.s32.totalorder %v3779_v26, %v3749_v17 }
  0xda   : > { %vm2212_vm2 = vmand %vm2020_vm15, %vm2180_vm14  ;;  %v529_v4 = vsel %vm497_vm1, 1, %v6125_v0  ;;  %vm2024_vm15 = vcmp.ge.s32.totalorder %v3729_v8, %v3822_v39  ;;  %vm2023_vm1 = vcmp.ge.s32.totalorder %v3712_v2, %v3822_v39 }
  0xdb   : > { %v2244_v3 = vsel %vm2212_vm2, 1, %v6125_v0  ;;  %vm2209_vm2 = vmand %vm2017_vm13, %vm2177_vm12 }
  0xdd   : > { %2157 = vrot.lane.b32.xlu0 %v2098_v11, %s3557_s16  ;;  %453 = vrot.lane.b32.xlu1 %v394_v12, %s3557_s16  ;;  %v2243_v11 = vsel %vm2211_vm0, 1, %v6125_v0 }
  0xde   : > { %2165 = vrot.lane.b32.xlu2 %v2102_v15, %s3557_s16 }
  0xdf   : > { %v4061_v18 = vpop.permute.xlu0 %423  ;;  %v4063_v19 = vpop.permute.xlu1 %425 }
  0xe0   : > { %v4069_v20 = vpop.permute.xlu2 %2143  ;;  %vm476_vm5 = vcmp.ne.s32.totalorder %v4063_v19, 0  ;;  %vm475_vm7 = vcmp.ne.s32.totalorder %v4061_v18, 0 }
  0xe1   : > { %vm508_vm10 = vmand %vm316_vm6, %vm476_vm5  ;;  %vm473_vm5 = vcmp.ne.s32.totalorder %v4029_v58, 0  ;;  %vm313_vm6 = vcmp.ge.s32.totalorder %v3779_v26, %v3763_v21 }
  0xe2   : > { %vm507_vm11 = vmand %vm315_vm8, %vm475_vm7  ;;  %v540_v19 = vsel %vm508_vm10, 1, %v6125_v0  ;;  %vm320_vm8 = vcmp.ge.s32.totalorder %v3729_v8, %v3836_v43  ;;  %vm319_vm10 = vcmp.ge.s32.totalorder %v3712_v2, %v3836_v43 }
  0xe3   : > { %v539_v18 = vsel %vm507_vm11, 1, %v6125_v0  ;;  %vm505_vm11 = vmand %vm313_vm6, %vm473_vm5 }
  0xe5   : > { %461 = vrot.lane.b32.xlu0 %v398_v24, %s3557_s16  ;;  %2264 = vperm.xlu1 %3343, %v2231_v28   ;;  %v533_v24 = vsel %vm501_vm9, 1, %v6125_v0 }
  0xe6   : > { %2267 = vperm.xlu2 %3344, %v2232_v29  }
  0xe7   : > { %v4082_v30 = vpop.permute.xlu0 %2135  ;;  %v4084_v33 = vpop.permute.xlu1 %2137 }
  0xe8   : > { %v4088_v23 = vpop.permute.xlu2 %413  ;;  %vm2184_vm14 = vcmp.ne.s32.totalorder %v4084_v33, 0  ;;  %vm2183_vm0 = vcmp.ne.s32.totalorder %v4082_v30, 0 }
  0xe9   : > { %vm2216_vm3 = vmand %vm2024_vm15, %vm2184_vm14  ;;  %vm2170_vm14 = vcmp.ne.s32.totalorder %v4047_v10, 0  ;;  %vm2010_vm15 = vcmp.ge.s32.totalorder %v3839_v44, %v3718_v6 }
  0xea   : > { %vm2215_vm4 = vmand %vm2023_vm1, %vm2183_vm0  ;;  %v2248_v33 = vsel %vm2216_vm3, 1, %v6125_v0  ;;  %vm2021_vm1 = vcmp.ge.s32.totalorder %v3779_v26, %v3781_v27  ;;  %vm2014_vm3 = vcmp.ge.s32.totalorder %v3839_v44, %v3716_v5 }
  0xeb   : > { %v2247_v30 = vsel %vm2215_vm4, 1, %v6125_v0  ;;  %vm2202_vm4 = vmand %vm2010_vm15, %vm2170_vm14 }
  0xed   : > { %2276 = vperm.xlu0 %3345, %v2235_v32   ;;  %2279 = vperm.xlu1 %3343, %v2236_v36   ;;  %v2241_v32 = vsel %vm2209_vm2, 1, %v6125_v0 }
  0xee   : > { %560 = vperm.xlu2 %3344, %v527_v62  }
  0xef   : > { %v4100_v37 = vpop.permute.xlu0 %431  ;;  %v4102_v38 = vpop.permute.xlu1 %433 }
  0xf0   : > { %v4106_v9 = vpop.permute.xlu2 %441  ;;  %vm480_vm7 = vcmp.ne.s32.totalorder %v4102_v38, 0  ;;  %vm479_vm9 = vcmp.ne.s32.totalorder %v4100_v37, 0 }
  0xf1   : > { %vm512_vm12 = vmand %vm320_vm8, %vm480_vm7  ;;  %vm2187_vm7 = vcmp.ne.s32.totalorder %v4069_v20, 0  ;;  %vm2027_vm8 = vcmp.ge.s32.totalorder %v3712_v2, %v3854_v49 }
  0xf2   : > { %vm511_vm13 = vmand %vm319_vm10, %vm479_vm9  ;;  %v544_v38 = vsel %vm512_vm12, 1, %v6125_v0  ;;  %vm306_vm10 = vcmp.ge.s32.totalorder %v3839_v44, %v3720_v7  ;;  %vm2028_vm12 = vcmp.ge.s32.totalorder %v3729_v8, %v3854_v49 }
  0xf3   : > { %v543_v37 = vsel %vm511_vm13, 1, %v6125_v0  ;;  %vm2219_vm13 = vmand %vm2027_vm8, %vm2187_vm7 }
  0xf5   : > { %575 = vperm.xlu0 %3345, %v532_v40   ;;  %563 = vperm.xlu1 %3343, %v528_v45   ;;  %v537_v40 = vsel %vm505_vm11, 1, %v6125_v0 }
  0xf6   : > { %572 = vperm.xlu2 %3344, %v531_v41  }
  0xf7   : > { %v4118_v46 = vpop.permute.xlu0 %2117  ;;  %v4120_v47 = vpop.permute.xlu1 %2131 }
  0xf8   : > { %v4124_v14 = vpop.permute.xlu2 %2151  ;;  %vm2181_vm0 = vcmp.ne.s32.totalorder %v4120_v47, 0  ;;  %vm2174_vm2 = vcmp.ne.s32.totalorder %v4118_v46, 0  ;;  %v2234_v47 = vsel %vm2202_vm4, 1, %v6125_v0 }
  0xf9   : > { %vm2213_vm5 = vmand %vm2021_vm1, %vm2181_vm0  ;;  %vm470_vm0 = vcmp.ne.s32.totalorder %v4088_v23, 0  ;;  %vm310_vm1 = vcmp.ge.s32.totalorder %v3839_v44, %v3747_v16 }
  0xfa   : > { %vm2206_vm6 = vmand %vm2014_vm3, %vm2174_vm2  ;;  %v2245_v6 = vsel %vm2213_vm5, 1, %v6125_v0  ;;  %vm323_vm3 = vcmp.ge.s32.totalorder %v3712_v2, %v3880_v56  ;;  %vm317_vm5 = vcmp.ge.s32.totalorder %v3779_v26, %v3807_v34 }
  0xfb   : > { %v2238_v46 = vsel %vm2206_vm6, 1, %v6125_v0  ;;  %vm502_vm6 = vmand %vm310_vm1, %vm470_vm0 }
  0xfd   : > { %584 = vperm.xlu0 %3345, %v535_v48   ;;  %2288 = vperm.xlu1 %3343, %v2239_v52  }
  0xfe   : > { %2291 = vperm.xlu2 %3344, %v2240_v50   ;;  %v2251_v50 = vsel %vm2219_vm13, 1, %v6125_v0 }
  0xff   : > { %v4136_v53 = vpop.permute.xlu0 %2145  ;;  %v4138_v54 = vpop.permute.xlu1 %405 }
 0x100   : > { %v4142_v25 = vpop.permute.xlu2 %435  ;;  %vm466_vm9 = vcmp.ne.s32.totalorder %v4138_v54, 0  ;;  %vm2188_vm11 = vcmp.ne.s32.totalorder %v4136_v53, 0 }
 0x101   : > { %vm498_vm14 = vmand %vm306_vm10, %vm466_vm9  ;;  %vm484_vm9 = vcmp.ne.s32.totalorder %v4106_v9, 0  ;;  %vm324_vm10 = vcmp.ge.s32.totalorder %v3729_v8, %v3880_v56 }
 0x102   : > { %vm2220_vm15 = vmand %vm2028_vm12, %vm2188_vm11  ;;  %v530_v52 = vsel %vm498_vm14, 1, %v6125_v0  ;;  %vm2025_vm12 = vcmp.ge.s32.totalorder %v3779_v26, %v3822_v39  ;;  %vm2018_vm14 = vcmp.ge.s32.totalorder %v3839_v44, %v3749_v17 }
 0x103   : > { %v2252_v7 = vsel %vm2220_vm15, 1, %v6125_v0  ;;  %vm516_vm15 = vmand %vm324_vm10, %vm484_vm9 }
 0x105   : > { %2282 = vperm.xlu0 %3345, %v2237_v55   ;;  %587 = vperm.xlu1 %3343, %v536_v59   ;;  %v534_v55 = vsel %vm502_vm6, 1, %v6125_v0 }
 0x106   : > { %2270 = vperm.xlu2 %3344, %v2233_v57  }
 0x107   : > { %v4154_v60 = vpop.permute.xlu0 %427  ;;  %v4156_v63 = vpop.permute.xlu1 %439 }
 0x108   : > { %v4160_v35 = vpop.permute.xlu2 %2133  ;;  %vm483_vm2 = vcmp.ne.s32.totalorder %v4156_v63, 0  ;;  %vm477_vm4 = vcmp.ne.s32.totalorder %v4154_v60, 0 }
 0x109   : > { %vm515_vm7 = vmand %vm323_vm3, %vm483_vm2  ;;  %vm2191_vm2 = vcmp.ne.s32.totalorder %v4124_v14, 0  ;;  %vm2031_vm3 = vcmp.ge.s32.totalorder %v3712_v2, %v3895_v61 }
 0x10a   : > { %vm509_vm8 = vmand %vm317_vm5, %vm477_vm4  ;;  %v547_v16 = vsel %vm515_vm7, 1, %v6125_v0  ;;  %vm314_vm5 = vcmp.ge.s32.totalorder %v3839_v44, %v3763_v21  ;;  %vm2032_vm7 = vcmp.ge.s32.totalorder %v3729_v8, %v3895_v61 }
 0x10b   : > { %v541_v59 = vsel %vm509_vm8, 1, %v6125_v0  ;;  %vm2223_vm8 = vmand %vm2031_vm3, %vm2191_vm2 }
 0x10d   : > { %566 = vperm.xlu0 %3345, %v529_v4   ;;  %2300 = vperm.xlu1 %3343, %v2243_v11   ;;  %v548_v4 = vsel %vm516_vm15, 1, %v6125_v0 }
 0x10e   : > { %2303 = vperm.xlu2 %3344, %v2244_v3  }
 0x10f   : > { %v4172_v12 = vpop.permute.xlu0 %2125  ;;  %v4174_v15 = vpop.permute.xlu1 %2139 }
 0x110   : > { %v4178_v42 = vpop.permute.xlu2 %2161  ;;  %vm2185_vm11 = vcmp.ne.s32.totalorder %v4174_v15, 0  ;;  %vm2178_vm13 = vcmp.ne.s32.totalorder %v4172_v12, 0  ;;  %v2255_v15 = vsel %vm2223_vm8, 1, %v6125_v0 }
 0x111   : > { %vm2217_vm0 = vmand %vm2025_vm12, %vm2185_vm11  ;;  %vm481_vm11 = vcmp.ne.s32.totalorder %v4142_v25, 0  ;;  %vm321_vm12 = vcmp.ge.s32.totalorder %v3779_v26, %v3836_v43 }
 0x112   : > { %vm2210_vm1 = vmand %vm2018_vm14, %vm2178_vm13  ;;  %v2249_v63 = vsel %vm2217_vm0, 1, %v6125_v0  ;;  %vm328_vm14 = vcmp.ge.s32.totalorder %v3729_v8, %v3925_v13  ;;  %vm327_vm0 = vcmp.ge.s32.totalorder %v3712_v2, %v3925_v13 }
 0x113   : > { %v2242_v11 = vsel %vm2210_vm1, 1, %v6125_v0  ;;  %vm513_vm1 = vmand %vm321_vm12, %vm481_vm11 }
 0x115   : > { %599 = vperm.xlu0 %3345, %v540_v19   ;;  %578 = vperm.xlu1 %3343, %v533_v24  }
 0x116   : > { %596 = vperm.xlu2 %3344, %v539_v18  }
 0x117   : > { %v4190_v28 = vpop.permute.xlu0 %2153  ;;  %v4192_v29 = vpop.permute.xlu1 %421 }
 0x118   : > { %v4196_v51 = vpop.permute.xlu2 %455  ;;  %vm474_vm4 = vcmp.ne.s32.totalorder %v4192_v29, 0  ;;  %vm2192_vm6 = vcmp.ne.s32.totalorder %v4190_v28, 0  ;;  %v545_v28 = vsel %vm513_vm1, 1, %v6125_v0 }
 0x119   : > { %vm506_vm9 = vmand %vm314_vm5, %vm474_vm4  ;;  %vm2182_vm4 = vcmp.ne.s32.totalorder %v4160_v35, 0  ;;  %vm2022_vm5 = vcmp.ge.s32.totalorder %v3839_v44, %v3781_v27 }
 0x11a   : > { %vm2224_vm10 = vmand %vm2032_vm7, %vm2192_vm6  ;;  %v538_v12 = vsel %vm506_vm9, 1, %v6125_v0  ;;  %vm2035_vm7 = vcmp.ge.s32.totalorder %v3712_v2, %v3942_v22  ;;  %vm2029_vm9 = vcmp.ge.s32.totalorder %v3779_v26, %v3854_v49 }
 0x11b   : > { %v2256_v21 = vsel %vm2224_vm10, 1, %v6125_v0  ;;  %vm2214_vm10 = vmand %vm2022_vm5, %vm2182_vm4 }
 0x11d   : > { %2315 = vperm.xlu0 %3345, %v2248_v33   ;;  %2294 = vperm.xlu1 %3343, %v2241_v32  }
 0x11e   : > { %2312 = vperm.xlu2 %3344, %v2247_v30   ;;  %v2246_v30 = vsel %vm2214_vm10, 1, %v6125_v0 }
 0x11f   : > { %v4208_v36 = vpop.permute.xlu0 %447  ;;  %v4210_v62 = vpop.permute.xlu1 %449 }
 0x120   : > { %v4214_v58 = vpop.permute.xlu2 %2155  ;;  %vm488_vm13 = vcmp.ne.s32.totalorder %v4210_v62, 0  ;;  %vm487_vm15 = vcmp.ne.s32.totalorder %v4208_v36, 0 }
 0x121   : > { %vm520_vm2 = vmand %vm328_vm14, %vm488_vm13  ;;  %vm2196_vm13 = vcmp.ne.s32.totalorder %v4178_v42, 0  ;;  %vm2036_vm14 = vcmp.ge.s32.totalorder %v3729_v8, %v3942_v22 }
 0x122   : > { %vm519_vm3 = vmand %vm327_vm0, %vm487_vm15  ;;  %v552_v18 = vsel %vm520_vm2, 1, %v6125_v0  ;;  %vm325_vm0 = vcmp.ge.s32.totalorder %v3779_v26, %v3880_v56  ;;  %vm318_vm2 = vcmp.ge.s32.totalorder %v3839_v44, %v3807_v34 }
 0x123   : > { %v551_v29 = vsel %vm519_vm3, 1, %v6125_v0  ;;  %vm2228_vm3 = vmand %vm2036_vm14, %vm2196_vm13 }
 0x125   : > { %611 = vperm.xlu0 %3345, %v544_v38   ;;  %590 = vperm.xlu1 %3343, %v537_v40  }
 0x126   : > { %608 = vperm.xlu2 %3344, %v543_v37   ;;  %v2260_v37 = vsel %vm2228_vm3, 1, %v6125_v0 }
 0x127   : > { %v4226_v45 = vpop.permute.xlu0 %2147  ;;  %v4228_v41 = vpop.permute.xlu1 %2159 }
 0x128   : > { %v4232_v10 = vpop.permute.xlu2 %2149  ;;  %vm2195_vm6 = vcmp.ne.s32.totalorder %v4228_v41, 0  ;;  %vm2189_vm8 = vcmp.ne.s32.totalorder %v4226_v45, 0 }
 0x129   : > { %vm2227_vm11 = vmand %vm2035_vm7, %vm2195_vm6  ;;  %vm491_vm6 = vcmp.ne.s32.totalorder %v4196_v51, 0  ;;  %vm331_vm7 = vcmp.ge.s32.totalorder %v3712_v2, %v3962_v31 }
 0x12a   : > { %vm2221_vm12 = vmand %vm2029_vm9, %vm2189_vm8  ;;  %v2259_v27 = vsel %vm2227_vm11, 1, %v6125_v0  ;;  %vm2026_vm9 = vcmp.ge.s32.totalorder %v3839_v44, %v3822_v39  ;;  %vm332_vm11 = vcmp.ge.s32.totalorder %v3729_v8, %v3962_v31 }
 0x12b   : > { %v2253_v36 = vsel %vm2221_vm12, 1, %v6125_v0  ;;  %vm523_vm12 = vmand %vm331_vm7, %vm491_vm6 }
 0x12d   : > { %2306 = vperm.xlu0 %3345, %v2245_v6   ;;  %2273 = vperm.xlu1 %3343, %v2234_v47   ;;  %v555_v47 = vsel %vm523_vm12, 1, %v6125_v0 }
 0x12e   : > { %2285 = vperm.xlu2 %3344, %v2238_v46  }
 0x12f   : > { %v4244_v5 = vpop.permute.xlu0 %429  ;;  %v4246_v48 = vpop.permute.xlu1 %443 }
 0x130   : > { %v4250_v20 = vpop.permute.xlu2 %459  ;;  %vm485_vm15 = vcmp.ne.s32.totalorder %v4246_v48, 0  ;;  %vm478_vm1 = vcmp.ne.s32.totalorder %v4244_v5, 0 }
 0x131   : > { %vm517_vm4 = vmand %vm325_vm0, %vm485_vm15  ;;  %vm2193_vm15 = vcmp.ne.s32.totalorder %v4214_v58, 0  ;;  %vm2033_vm0 = vcmp.ge.s32.totalorder %v3779_v26, %v3895_v61 }
 0x132   : > { %vm510_vm5 = vmand %vm318_vm2, %vm478_vm1  ;;  %v549_v40 = vsel %vm517_vm4, 1, %v6125_v0  ;;  %vm329_vm2 = vcmp.ge.s32.totalorder %v3779_v26, %v3925_v13  ;;  %vm322_vm4 = vcmp.ge.s32.totalorder %v3839_v44, %v3836_v43 }
 0x133   : > { %v542_v45 = vsel %vm510_vm5, 1, %v6125_v0  ;;  %vm2225_vm5 = vmand %vm2033_vm0, %vm2193_vm15 }
 0x135   : > { %569 = vperm.xlu0 %3345, %v530_v52   ;;  %2324 = vperm.xlu1 %3343, %v2251_v50   ;;  %v2257_v52 = vsel %vm2225_vm5, 1, %v6125_v0 }
 0x136   : > { %2327 = vperm.xlu2 %3344, %v2252_v7  }
 0x137   : > { %v4262_v53 = vpop.permute.xlu0 %457  ;;  %v4264_v54 = vpop.permute.xlu1 %2141 }
 0x138   : > { %v4268_v23 = vpop.permute.xlu2 %2165  ;;  %vm2186_vm8 = vcmp.ne.s32.totalorder %v4264_v54, 0  ;;  %vm492_vm10 = vcmp.ne.s32.totalorder %v4262_v53, 0 }
 0x139   : > { %vm2218_vm13 = vmand %vm2026_vm9, %vm2186_vm8  ;;  %vm2190_vm8 = vcmp.ne.s32.totalorder %v4232_v10, 0  ;;  %vm2030_vm9 = vcmp.ge.s32.totalorder %v3839_v44, %v3854_v49 }
 0x13a   : > { %vm524_vm14 = vmand %vm332_vm11, %vm492_vm10  ;;  %v2250_v6 = vsel %vm2218_vm13, 1, %v6125_v0  ;;  %vm326_vm11 = vcmp.ge.s32.totalorder %v3839_v44, %v3880_v56  ;;  %vm2037_vm13 = vcmp.ge.s32.totalorder %v3779_v26, %v3942_v22 }
 0x13b   : > { %v556_v39 = vsel %vm524_vm14, 1, %v6125_v0  ;;  %vm2222_vm14 = vmand %vm2030_vm9, %vm2190_vm8 }
 0x13c   : > { %v2254_v53 = vsel %vm2222_vm14, 1, %v6125_v0 }
 0x13d   : > { %620 = vperm.xlu0 %3345, %v547_v16   ;;  %581 = vperm.xlu1 %3343, %v534_v55  }
 0x13e   : > { %602 = vperm.xlu2 %3344, %v541_v59  }
 0x13f   : > { %v4280_v57 = vpop.permute.xlu0 %437  ;;  %v4282_v60 = vpop.permute.xlu1 %451 }
 0x140   : > { %v4286_v9 = vpop.permute.xlu2 %2267  ;;  %vm489_vm1 = vcmp.ne.s32.totalorder %v4282_v60, 0  ;;  %vm482_vm3 = vcmp.ne.s32.totalorder %v4280_v57, 0 }
 0x141   : > { %vm521_vm6 = vmand %vm329_vm2, %vm489_vm1  ;;  %vm493_vm1 = vcmp.ne.s32.totalorder %v4250_v20, 0  ;;  %vm333_vm2 = vcmp.ge.s32.totalorder %v3779_v26, %v3962_v31 }
 0x142   : > { %vm514_vm7 = vmand %vm322_vm4, %vm482_vm3  ;;  %v553_v48 = vsel %vm521_vm6, 1, %v6125_v0  ;;  %vm330_vm4 = vcmp.ge.s32.totalorder %v3839_v44, %v3925_v13  ;;  %vm2034_vm6 = vcmp.ge.s32.totalorder %v3839_v44, %v3895_v61 }
 0x143   : > { %v546_v50 = vsel %vm514_vm7, 1, %v6125_v0  ;;  %vm525_vm7 = vmand %vm333_vm2, %vm493_vm1  ;;  %vm2360_vm2 = vcmp.eq.s32.totalorder %v4286_v9, 1 }
 0x144   : > { %v557_v59 = vsel %vm525_vm7, 1, %v6125_v0  ;;  %vm719_vm7 = vcmask 261120  }
 0x145   : > { %2318 = vperm.xlu0 %3345, %v2249_v63   ;;  %623 = vperm.xlu1 %3343, %v548_v4   ;;  %v3380_v63 = vld [vmem:[%s3709_s21 + $0x4] sm:$0xf] }
 0x146   : > { %2297 = vperm.xlu2 %3344, %v2242_v11   ;;  %v4448_v4 = vperm.slane %v3380_v63, 2 }
 0x147   : > { %v4298_v17 = vpop.permute.xlu0 %2163  ;;  %v4300_v3 = vpop.permute.xlu1 %445 }
 0x148   : > { %v4304_v14 = vpop.permute.xlu2 %560  ;;  %vm486_vm10 = vcmp.ne.s32.totalorder %v4300_v3, 0  ;;  %vm2197_vm12 = vcmp.ne.s32.totalorder %v4298_v17, 0 }
 0x149   : > { %vm518_vm15 = vmand %vm326_vm11, %vm486_vm10  ;;  %vm2198_vm10 = vcmp.ne.s32.totalorder %v4268_v23, 0  ;;  %vm2038_vm11 = vcmp.ge.s32.totalorder %v3839_v44, %v3942_v22  ;;  %v3381_v22 = vld [vmem:[%s3709_s21] sm:$0xf] }
 0x14a   : > { %vm2229_vm0 = vmand %vm2037_vm13, %vm2197_vm12  ;;  %v550_v49 = vsel %vm518_vm15, 1, %v6125_v0  ;;  %vm334_vm13 = vcmp.ge.s32.totalorder %v3839_v44, %v3962_v31  ;;  %v4452_v11 = vperm.slane %v3381_v22, 2 }
 0x14b   : > { %v2261_v56 = vsel %vm2229_vm0, 1, %v6125_v0  ;;  %vm2230_vm14 = vmand %vm2038_vm11, %vm2198_vm10  ;;  %vm1478_vm0 = vcmp.le.s32.totalorder %v3712_v2, %v4448_v4 }
 0x14c   : > { %v2262_v23 = vsel %vm2230_vm14, 1, %v6125_v0  ;;  %vm1474_vm1 = vcmp.le.s32.totalorder %v3712_v2, %v4452_v11 }
 0x14d   : > { %593 = vperm.xlu0 %3345, %v538_v12   ;;  %2336 = vperm.xlu1 %3343, %v2255_v15   ;;  %v1510_v15 = vsel %vm1478_vm0, 1, %v6125_v0 }
 0x14e   : > { %2339 = vperm.xlu2 %3344, %v2256_v21   ;;  %v1506_v21 = vsel %vm1474_vm1, 1, %v6125_v0 }
 0x14f   : > { %v4316_v19 = vpop.permute.xlu0 %2157  ;;  %v4318_v24 = vpop.permute.xlu1 %453 }
 0x150   : > { %v4322_v25 = vpop.permute.xlu2 %572  ;;  %vm490_vm3 = vcmp.ne.s32.totalorder %v4318_v24, 0  ;;  %vm2194_vm5 = vcmp.ne.s32.totalorder %v4316_v19, 0  ;;  %v4467_v19 = vperm.slane %v3381_v22, 1  ;;  %v233_v24 = vld [vmem:[%s3688_s25 + $0x8] sm:$0xff] }
 0x151   : > { %vm522_vm8 = vmand %vm330_vm4, %vm490_vm3  ;;  %v2392_v9 = vsel %vm2360_vm2, %v233_v24, -3.4028235e+38 }
 0x152   : > { %vm2226_vm9 = vmand %vm2034_vm6, %vm2194_vm5  ;;  %v554_v55 = vsel %vm522_vm8, 1, %v6125_v0  ;;  %vm910_vm4 = vcmp.le.s32.totalorder %v3729_v8, %v4467_v19  ;;  %vm1479_vm6 = vcmp.le.s32.totalorder %v3729_v8, %v4448_v4  ;;  %vm655_vm8 = vcmp.eq.s32.totalorder %v4304_v14, 1 }
 0x153   : > { %v2258_v13 = vsel %vm2226_vm9, 1, %v6125_v0 }
 0x155   : > { %635 = vperm.xlu0 %3345, %v552_v18   ;;  %614 = vperm.xlu1 %3343, %v545_v28  }
 0x156   : > { %632 = vperm.xlu2 %3344, %v551_v29   ;;  %v4481_v29 = vld [vmem:[%s3688_s25 + $0x28] sm:$0xff] }
 0x157   : > { %v4334_v33 = vpop.permute.xlu0 %461  ;;  %v4336_v32 = vpop.permute.xlu1 %2264 }
 0x158   : > { %v4340_v35 = vpop.permute.xlu2 %2291  ;;  %vm494_vm12 = vcmp.ne.s32.totalorder %v4334_v33, 0  ;;  %vm2359_vm9 = vcmp.eq.s32.totalorder %v4336_v32, 1 }
 0x159   : > { %vm526_vm15 = vmand %vm334_vm13, %vm494_vm12  ;;  %vm659_vm12 = vcmp.eq.s32.totalorder %v4322_v25, 1 }
 0x15a   : > { %v558_v17 = vsel %vm526_vm15, 1, %v6125_v0  ;;  %vm2368_vm15 = vcmp.eq.s32.totalorder %v4340_v35, 1 }
 0x15d   : > { %2348 = vperm.xlu0 %3345, %v2259_v27   ;;  %2309 = vperm.xlu1 %3343, %v2246_v30   ;;  %v232_v27 = vld [vmem:[%s3688_s25] sm:$0xff] }
 0x15e   : > { %2330 = vperm.xlu2 %3344, %v2253_v36   ;;  %v236_v30 = vld [vmem:[%s3688_s25 + $0x20] sm:$0xff] }
 0x15f   : > { %v4352_v62 = vpop.permute.xlu0 %2276  ;;  %v4354_v38 = vpop.permute.xlu1 %2279 }
 0x160   : > { %v4358_v42 = vpop.permute.xlu2 %2270  ;;  %vm2363_vm3 = vcmp.eq.s32.totalorder %v4352_v62, 1  ;;  %vm2364_vm5 = vcmp.eq.s32.totalorder %v4354_v38, 1  ;;  %v4493_v62 = vld [vmem:[%s3688_s25 + $0x30] sm:$0xff]  ;;  %v942_v38 = vsel %vm910_vm4, 1, %v6125_v0 }
 0x161   : > { %v2395_v36 = vsel %vm2363_vm3, %v236_v30, -3.4028235e+38  ;;  %vm2361_vm11 = vcmp.eq.s32.totalorder %v4358_v42, 1  ;;  %v2391_v42 = vsel %vm2359_vm9, %v232_v27, -3.4028235e+38 }
 0x165   : > { %626 = vperm.xlu0 %3345, %v549_v40   ;;  %2351 = vperm.xlu1 %3343, %v2260_v37   ;;  %v2396_v40 = vsel %vm2364_vm5, %v4481_v29, -3.4028235e+38  ;;  %v234_v37 = vld [vmem:[%s3688_s25 + $0x10] sm:$0xff] }
 0x166   : > { %605 = vperm.xlu2 %3344, %v542_v45   ;;  %v1511_v45 = vsel %vm1479_vm6, 1, %v6125_v0  ;;  %v2437_v25 = vsel %vm719_vm7, %v2396_v40, -inf }
 0x167   : > { %v4370_v34 = vpop.permute.xlu0 %575  ;;  %v4372_v41 = vpop.permute.xlu1 %563 }
 0x168   : > { %v4376_v51 = vpop.permute.xlu2 %2303  ;;  %vm656_vm14 = vcmp.eq.s32.totalorder %v4372_v41, 1  ;;  %vm660_vm4 = vcmp.eq.s32.totalorder %v4370_v34, 1  ;;  %v240_v41 = vld [vmem:[%s3688_s25 + $0x40] sm:$0xff] }
 0x16d   : > { %2321 = vperm.xlu0 %3345, %v2250_v6   ;;  %644 = vperm.xlu1 %3343, %v555_v47   ;;  %v3382_v6 = vld [vmem:[%s3709_s21 + $0x8] sm:$0xf] }
 0x16e   : > { %647 = vperm.xlu2 %3344, %v556_v39   ;;  %v4502_v47 = vperm.slane %v3382_v6, 2  ;;  %v2424_v39 = vsel %vm719_vm7, %v2392_v9, -inf  ;;  %v4543_v9 = vld [vmem:[%s3688_s25 + $0x48] sm:$0xff] }
 0x16f   : > { %v4388_v46 = vpop.permute.xlu0 %584  ;;  %v4390_v5 = vpop.permute.xlu1 %2288 }
 0x170   : > { %v4394_v58 = vpop.permute.xlu2 %596  ;;  %vm1482_vm0 = vcmp.le.s32.totalorder %v3712_v2, %v4502_v47  ;;  %vm2367_vm5 = vcmp.eq.s32.totalorder %v4390_v5, 1 }
 0x175   : > { %638 = vperm.xlu0 %3345, %v553_v48   ;;  %2342 = vperm.xlu1 %3343, %v2257_v52   ;;  %v4507_v48 = vld [vmem:[%s3688_s25 + $0x38] sm:$0xff]  ;;  %v4510_v52 = vperm.slane %v3380_v63, 1  ;;  %v2423_v63 = vsel %vm719_vm7, %v2391_v42, -inf }
 0x176   : > { %617 = vperm.xlu2 %3344, %v546_v50   ;;  %v687_v50 = vsel %vm655_vm8, %v232_v27, -3.4028235e+38  ;;  %v2425_v40 = vmax.f32 %v2423_v63, %v2424_v39 }
 0x177   : > { %v4406_v43 = vpop.permute.xlu0 %2282  ;;  %v4408_v7 = vpop.permute.xlu1 %587  ;;  %vm913_vm3 = vcmp.le.s32.totalorder %v3712_v2, %v4510_v52  ;;  %v720_v34 = vsel %vm719_vm7, %v687_v50, -inf  ;;  %v2399_v50 = vsel %vm2367_vm5, %v240_v41, -3.4028235e+38 }
 0x178   : > { %v4412_v10 = vpop.permute.xlu2 %2312  ;;  %vm2365_vm10 = vcmp.eq.s32.totalorder %v4406_v43, 1 }
 0x179   : > { %v2397_v43 = vsel %vm2365_vm10, %v4493_v62, -3.4028235e+38  ;;  %vm1483_vm10 = vcmp.le.s32.totalorder %v3729_v8, %v4502_v47 }
 0x17d   : > { %629 = vperm.xlu0 %3345, %v550_v49   ;;  %2333 = vperm.xlu1 %3343, %v2254_v53   ;;  %v2436_v49 = vsel %vm719_vm7, %v2395_v36, -inf  ;;  %v2393_v53 = vsel %vm2361_vm11, %v234_v37, -3.4028235e+38  ;;  %v945_v36 = vsel %vm913_vm3, 1, %v6125_v0  ;;  %vm663_vm11 = vcmp.eq.s32.totalorder %v4388_v46, 1 }
 0x17e   : > { %2354 = vperm.xlu2 %3344, %v2261_v56   ;;  %v691_v56 = vsel %vm659_vm12, %v236_v30, -3.4028235e+38  ;;  %v2426_v22 = vsel %vm719_vm7, %v2393_v53, -inf }
 0x17f   : > { %v4424_v54 = vpop.permute.xlu0 %566  ;;  %v4426_v16 = vpop.permute.xlu1 %2300  ;;  %v2427_v39 = vmax.f32 %v2425_v40, %v2426_v22 }
 0x180   : > { %v4430_v20 = vpop.permute.xlu2 %608  ;;  %vm657_vm1 = vcmp.eq.s32.totalorder %v4424_v54, 1 }
 0x181   : > { %v689_v30 = vsel %vm657_vm1, %v234_v37, -3.4028235e+38  ;;  %v733_v37 = vsel %vm719_vm7, %v691_v56, -inf  ;;  %vm1476_vm1 = vcmp.le.s32.totalorder %v3779_v26, %v4452_v11 }
 0x185   : > { %641 = vperm.xlu0 %3345, %v554_v55   ;;  %650 = vperm.xlu1 %3343, %v557_v59   ;;  %v235_v59 = vld [vmem:[%s3688_s25 + $0x18] sm:$0xff] }
 0x186   : > { %2345 = vperm.xlu2 %3344, %v2258_v13   ;;  %v2439_v13 = vsel %vm719_vm7, %v2397_v43, -inf }
 0x187   : > { %v4439_v61 = vpop.permute.xlu0 %599  ;;  %v4441_v57 = vpop.permute.xlu1 %578 }
 0x188   : > { %v4445_v60 = vpop.permute.xlu2 %2285  ;;  %vm661_vm6 = vcmp.eq.s32.totalorder %v4441_v57, 1  ;;  %vm668_vm5 = vcmp.eq.s32.totalorder %v4439_v61, 1 }
 0x189   : > { %vm2366_vm13 = vcmp.eq.s32.totalorder %v4445_v60, 1  ;;  %v693_v63 = vsel %vm661_vm6, %v4493_v62, -3.4028235e+38 }
 0x18a   : > { %v2398_v14 = vsel %vm2366_vm13, %v4507_v48, -3.4028235e+38  ;;  %vm2372_vm13 = vcmp.eq.s32.totalorder %v4376_v51, 1 }
 0x18d   : > { %2357 = vperm.xlu1 %3343, %v2262_v23   ;;  %v2438_v23 = vmax.f32 %v2436_v49, %v2437_v25  ;;  %v723_v49 = vsel %vm719_vm7, %v689_v30, -inf }
 0x18e   : > { %653 = vperm.xlu2 %3344, %v558_v17   ;;  %v688_v17 = vsel %vm656_vm14, %v233_v24, -3.4028235e+38  ;;  %v692_v24 = vsel %vm660_vm4, %v4481_v29, -3.4028235e+38  ;;  %vm664_vm4 = vcmp.eq.s32.totalorder %v4408_v7, 1  ;;  %v1508_v7 = vsel %vm1476_vm1, 1, %v6125_v0 }
 0x18f   : > { %v4455_v3 = vpop.permute.xlu0 %2315  ;;  %v4457_v31 = vpop.permute.xlu1 %2294  ;;  %v2440_v27 = vmax.f32 %v2438_v23, %v2439_v13  ;;  %v734_v53 = vsel %vm719_vm7, %v692_v24, -inf  ;;  %v2449_v13 = vsel %vm719_vm7, %v2399_v50, -inf  ;;  %v245_v50 = vld [vmem:[%s3688_s25 + $0x68] sm:$0xff] }
 0x190   : > { %v4461_v12 = vpop.permute.xlu2 %2327  ;;  %vm2369_vm12 = vcmp.eq.s32.totalorder %v4457_v31, 1  ;;  %v735_v30 = vmax.f32 %v733_v37, %v734_v53  ;;  %v700_v61 = vsel %vm668_vm5, %v245_v50, -3.4028235e+38  ;;  %vm671_vm5 = vcmp.eq.s32.totalorder %v4430_v20, 1 }
 0x195   : > { %1546 = vrot.lane.b32.xlu1 %v1510_v15, %s3557_s16  ;;  %v2441_v15 = vsel %vm719_vm7, %v2398_v14, -inf }
 0x196   : > { %1538 = vrot.lane.b32.xlu2 %v1506_v21, %s3557_s16  ;;  %v1514_v21 = vsel %vm1482_vm0, 1, %v6125_v0  ;;  %v2442_v42 = vmax.f32 %v2440_v27, %v2441_v15 }
 0x197   : > { %v4474_v18 = vpop.permute.xlu0 %611  ;;  %v4476_v28 = vpop.permute.xlu1 %590 }
 0x198   : > { %v4484_v33 = vpop.permute.xlu2 %602  ;;  %v2443_v14 = vrot.slane %v2442_v42, 4  ;;  %vm665_vm6 = vcmp.eq.s32.totalorder %v4476_v28, 1 }
 0x19a   : > { %v2444_v40 = vmax.f32 %v2442_v42, %v2443_v14 }
 0x19c   : > { %v2445_v53 = vrot.slane %v2444_v40, 2 }
 0x19d   : > { %975 = vrot.lane.b32.xlu1 %v942_v38, %s3557_s16  ;;  %v4546_v38 = vperm.slane %v3382_v6, 1  ;;  %v2400_v6 = vsel %vm2368_vm15, %v4543_v9, -3.4028235e+38  ;;  %vm667_vm15 = vcmp.eq.s32.totalorder %v4394_v58, 1  ;;  %v696_v58 = vsel %vm664_vm4, %v4543_v9, -3.4028235e+38 }
 0x19e   : > { %1548 = vrot.lane.b32.xlu2 %v1511_v45, %s3557_s16  ;;  %v721_v45 = vsel %vm719_vm7, %v688_v17, -inf  ;;  %v4577_v17 = vld [vmem:[%s3688_s25 + $0x50] sm:$0xff]  ;;  %v2450_v27 = vsel %vm719_vm7, %v2400_v6, -inf  ;;  %v4611_v6 = vld [vmem:[%s3688_s25 + $0x60] sm:$0xff]  ;;  %v747_v9 = vsel %vm719_vm7, %v696_v58, -inf }
 0x19f   : > { %v4524_v32 = vpop.permute.xlu0 %2306  ;;  %v2274_v55 = vpop.permute.xlu1 %2273  ;;  %v722_v5 = vmax.f32 %v720_v34, %v721_v45  ;;  %vm918_vm8 = vcmp.le.s32.totalorder %v3729_v8, %v4546_v38  ;;  %v4592_v45 = vld [vmem:[%s3688_s25 + $0x58] sm:$0xff]  ;;  %v2451_v24 = vmax.f32 %v2449_v13, %v2450_v27  ;;  %v2401_v46 = vsel %vm2369_vm12, %v4577_v17, -3.4028235e+38 }
 0x1a0   : > { %vm2362_vm2 = vcmp.eq.s32.totalorder %v2274_v55, 1  ;;  %v4531_v60 = vpop.permute.xlu2 %2297  ;;  %v950_v22 = vsel %vm918_vm8, 1, %v6125_v0  ;;  %v699_v13 = vsel %vm667_vm15, %v4611_v6, -3.4028235e+38  ;;  %v2446_v27 = vmax.f32 %v2444_v40, %v2445_v53 }
 0x1a1   : > { %v2394_v54 = vsel %vm2362_vm2, %v235_v59, -3.4028235e+38  ;;  %v724_v57 = vmax.f32 %v722_v5, %v723_v49  ;;  %vm2370_vm14 = vcmp.eq.s32.totalorder %v4531_v60, 1  ;;  %vm1475_vm2 = vcmp.le.s32.totalorder %v3729_v8, %v4452_v11 }
 0x1a2   : > { %v2428_v43 = vsel %vm719_vm7, %v2394_v54, -inf  ;;  %v1515_v54 = vsel %vm1483_vm10, 1, %v6125_v0  ;;  %v2402_v31 = vsel %vm2370_vm14, %v4592_v45, -3.4028235e+38  ;;  %v1507_v5 = vsel %vm1475_vm2, 1, %v6125_v0 }
 0x1a3   : > { %v2429_v35 = vmax.f32 %v2427_v39, %v2428_v43  ;;  %v736_v43 = vsel %vm719_vm7, %v693_v63, -inf  ;;  %1540 = vrot.lane.b32.xlu0 %v1507_v5, %s3557_s16  ;;  %v2454_v63 = vsel %vm719_vm7, %v2402_v31, -inf  ;;  %vm915_vm8 = vcmp.le.s32.totalorder %v3779_v26, %v4510_v52  ;;  %v246_v5 = vld [vmem:[%s3688_s25 + $0x70] sm:$0xff] }
 0x1a4   : > { %v697_v31 = vsel %vm665_vm6, %v4577_v17, -3.4028235e+38  ;;  %vm2371_vm12 = vcmp.eq.s32.totalorder %v4426_v16, 1  ;;  %vm672_vm14 = vcmp.eq.s32.totalorder %v4474_v18, 1  ;;  %vm1484_vm15 = vcmp.le.s32.totalorder %v3779_v26, %v4502_v47 }
 0x1a5   : > { %1554 = vrot.lane.b32.xlu1 %v1514_v21, %s3557_s16  ;;  %v4582_v21 = vld [vmem:[%s3709_s21 + $0xc] sm:$0xf]  ;;  %v2430_v62 = vrot.slane %v2429_v35, 4  ;;  %vm2373_vm4 = vcmp.eq.s32.totalorder %v4524_v32, 1  ;;  %vm919_vm6 = vcmp.le.s32.totalorder %v3779_v26, %v4546_v38 }
 0x1a6   : > { %981 = vrot.lane.b32.xlu2 %v945_v36, %s3557_s16  ;;  %v695_v36 = vsel %vm663_vm11, %v240_v41, -3.4028235e+38  ;;  %vm669_vm11 = vcmp.eq.s32.totalorder %v4484_v33, 1  ;;  %v749_v33 = vsel %vm719_vm7, %v697_v31, -inf  ;;  %v249_v32 = vld [vmem:[%s3688_s25 + $0x88] sm:$0xff] }
 0x1a7   : > { %v570_v29 = vpop.permute.xlu0 %569  ;;  %v4562_v25 = vpop.permute.xlu1 %2324  ;;  %v2431_v39 = vmax.f32 %v2429_v35, %v2430_v62  ;;  %v4646_v62 = vsel %vm719_vm7, %v699_v13, -inf }
 0x1a8   : > { %vm658_vm9 = vcmp.eq.s32.totalorder %v570_v29, 1  ;;  %v4567_v56 = vpop.permute.xlu2 %2339  ;;  %v737_v29 = vmax.f32 %v735_v30, %v736_v43 }
 0x1a9   : > { %v690_v55 = vsel %vm658_vm9, %v235_v59, -3.4028235e+38  ;;  %v4585_v59 = vperm.slane %v4582_v21, 2  ;;  %vm909_vm9 = vcmp.le.s32.totalorder %v3712_v2, %v4467_v19 }
 0x1aa   : > { %v725_v23 = vsel %vm719_vm7, %v690_v55, -inf }
 0x1ab   : > { %v726_v15 = vmax.f32 %v724_v57, %v725_v23  ;;  %vm1486_vm0 = vcmp.le.s32.totalorder %v3712_v2, %v4585_v59  ;;  %v2452_v57 = vsel %vm719_vm7, %v2401_v46, -inf  ;;  %vm1487_vm10 = vcmp.le.s32.totalorder %v3729_v8, %v4585_v59 }
 0x1ac   : > { %v1518_v55 = vsel %vm1486_vm0, 1, %v6125_v0  ;;  %v1519_v17 = vsel %vm1487_vm10, 1, %v6125_v0  ;;  %vm914_vm0 = vcmp.le.s32.totalorder %v3729_v8, %v4510_v52  ;;  %vm2375_vm10 = vcmp.eq.s32.totalorder %v4412_v10, 1 }
 0x1ad   : > { %v727_v34 = vrot.slane %v726_v15, 4  ;;  %991 = vrot.lane.b32.xlu1 %v950_v22, %s3557_s16  ;;  %v2453_v22 = vmax.f32 %v2451_v24, %v2452_v57  ;;  %v947_v57 = vsel %vm915_vm8, 1, %v6125_v0 }
 0x1ae   : > { %1556 = vrot.lane.b32.xlu2 %v1515_v54, %s3557_s16  ;;  %v746_v54 = vsel %vm719_vm7, %v695_v36, -inf }
 0x1af   : > { %v728_v41 = vmax.f32 %v726_v15, %v727_v34  ;;  %v4602_v42 = vpop.permute.xlu0 %620  ;;  %v582_v37 = vpop.permute.xlu1 %581  ;;  %v2432_v15 = vrot.slane %v2431_v39, 2  ;;  %v2455_v51 = vmax.f32 %v2453_v22, %v2454_v63 }
 0x1b0   : > { %vm662_vm3 = vcmp.eq.s32.totalorder %v582_v37, 1  ;;  %v4616_v49 = vpop.permute.xlu2 %632  ;;  %v2447_v37 = vrot.slane %v2446_v27, 1 }
 0x1b1   : > { %v694_v14 = vsel %vm662_vm3, %v4507_v48, -3.4028235e+38  ;;  %v729_v35 = vrot.slane %v728_v41, 2  ;;  %v4639_v48 = vsel %vm2372_vm13, %v245_v50, -3.4028235e+38  ;;  %v2433_v40 = vmax.f32 %v2431_v39, %v2432_v15 }
 0x1b2   : > { %v738_v60 = vsel %vm719_vm7, %v694_v14, -inf  ;;  %v760_v39 = vsel %vm719_vm7, %v700_v61, -inf  ;;  %v748_v14 = vmax.f32 %v746_v54, %v747_v9  ;;  %v4682_v63 = vmax.f32 %v2446_v27, %v2447_v37 }
 0x1b3   : > { %v739_v23 = vmax.f32 %v737_v29, %v738_v60  ;;  %v730_v34 = vmax.f32 %v728_v41, %v729_v35  ;;  %v941_v41 = vsel %vm909_vm9, 1, %v6125_v0  ;;  %v2456_v29 = vrot.slane %v2455_v51, 4 }
 0x1b4   : > { %973 = vrot.lane.b32.xlu0 %v941_v41, %s3557_s16  ;;  %v701_v35 = vsel %vm669_vm11, %v246_v5, -3.4028235e+38  ;;  %v2434_v60 = vrot.slane %v2433_v40, 1  ;;  %v761_v13 = vmax.f32 %v4646_v62, %v760_v39  ;;  %vm833_vm13 = vcmask 1041409   ;;  %v3384_v39 = vld [vmem:[%s3709_s21 + $0x10] sm:$0xf] }
 0x1b5   : > { %v740_v30 = vrot.slane %v739_v23, 4  ;;  %1562 = vrot.lane.b32.xlu1 %v1518_v55, %s3557_s16  ;;  %v731_v53 = vrot.slane %v730_v34, 1  ;;  %v4679_v55 = vperm.slane %v4582_v21, 1  ;;  %v750_v21 = vmax.f32 %v748_v14, %v749_v33 }
 0x1b6   : > { %1542 = vrot.lane.b32.xlu2 %v1508_v7, %s3557_s16  ;;  %v2457_v7 = vmax.f32 %v2455_v51, %v2456_v29  ;;  %v762_v15 = vsel %vm719_vm7, %v701_v35, -inf  ;;  %v4701_v62 = vmax.f32 %v2433_v40, %v2434_v60  ;;  %v1516_v9 = vsel %vm1484_vm15, 1, %v6125_v0 }
 0x1b7   : > { %v741_v24 = vmax.f32 %v739_v23, %v740_v30  ;;  %v4650_v43 = vpop.permute.xlu0 %2318  ;;  %v4652_v36 = vpop.permute.xlu1 %623  ;;  %v4686_v22 = vmax.f32 %v730_v34, %v731_v53  ;;  %v4697_v30 = vld [vmem:[%s3688_s25 + $0x78] sm:$0xff]  ;;  %vm921_vm2 = vcmp.le.s32.totalorder %v3712_v2, %v4679_v55  ;;  %v946_v34 = vsel %vm914_vm0, 1, %v6125_v0 }
 0x1b8   : > { %v4659_v46 = vpop.permute.xlu2 %2330  ;;  %v2458_v40 = vrot.slane %v2457_v7, 2  ;;  %v4721_v29 = vperm.slane %v3384_v39, 2  ;;  %v2463_v53 = vsel %vm719_vm7, %v4639_v48, -inf  ;;  %v704_v35 = vsel %vm672_vm14, %v249_v32, -3.4028235e+38 }
 0x1b9   : > { %v742_v50 = vrot.slane %v741_v24, 2  ;;  %6158 = vst [vmem:[#allocation11_spill] sm:$0xff] %v4686_v22  ;;  %v3026_v41 = vmax.f32 %v4686_v22, %v4701_v62  ;;  %v2405_v48 = vsel %vm2373_vm4, %v246_v5, -3.4028235e+38  ;;  %vm917_vm9 = vcmp.le.s32.totalorder %v3712_v2, %v4546_v38 }
 0x1ba   : > { %v2459_v60 = vmax.f32 %v2457_v7, %v2458_v40  ;;  %vm1490_vm8 = vcmp.le.s32.totalorder %v3712_v2, %v4721_v29  ;;  %vm2376_vm11 = vcmp.eq.s32.totalorder %v4455_v3, 1  ;;  %vm1477_vm15 = vcmp.le.s32.totalorder %v3839_v44, %v4452_v11 }
 0x1bb   : > { %v743_v28 = vmax.f32 %v741_v24, %v742_v50  ;;  %v953_v50 = vsel %vm921_vm2, 1, %v6125_v0  ;;  %vm835_vm0 = vcmask 1042434   ;;  %vm1480_vm2 = vcmp.le.s32.totalorder %v3779_v26, %v4448_v4 }
 0x1bc   : > { %983 = vrot.lane.b32.xlu0 %v946_v34, %s3557_s16  ;;  %v4759_v34 = vld [vmem:[%s3688_s25 + $0xa8] sm:$0xff]  ;;  %v2460_v20 = vrot.slane %v2459_v60, 1 }
 0x1bd   : > { %v744_v23 = vrot.slane %v743_v28, 1  ;;  %985 = vrot.lane.b32.xlu1 %v947_v57, %s3557_s16 }
 0x1be   : > { %1564 = vrot.lane.b32.xlu2 %v1519_v17, %s3557_s16  ;;  %v763_v17 = vmax.f32 %v761_v13, %v762_v15  ;;  %v949_v15 = vsel %vm917_vm9, 1, %v6125_v0  ;;  %vm676_vm9 = vcmp.eq.s32.totalorder %v4652_v36, 1 }
 0x1bf   : > { %v4692_v54 = vmax.f32 %v743_v28, %v744_v23  ;;  %v594_v58 = vpop.permute.xlu0 %593  ;;  %v4694_v27 = vpop.permute.xlu1 %2336  ;;  %v2403_v28 = vsel %vm2371_vm12, %v4611_v6, -3.4028235e+38  ;;  %v248_v23 = vld [vmem:[%s3688_s25 + $0x80] sm:$0xff]  ;;  %vm2380_vm12 = vcmp.eq.s32.totalorder %v4461_v12, 1 }
 0x1c0   : > { %vm666_vm1 = vcmp.eq.s32.totalorder %v594_v58, 1  ;;  %v606_v51 = vpop.permute.xlu2 %605  ;;  %v2462_v18 = vsel %vm719_vm7, %v2403_v28, -inf  ;;  %v703_v5 = vsel %vm671_vm5, %v248_v23, -3.4028235e+38  ;;  %v773_v58 = vsel %vm719_vm7, %v704_v35, -inf }
 0x1c1   : > { %6159 = vst [vmem:[#allocation12_spill] sm:$0xff] %v4692_v54  ;;  %v3027_v61 = vmax.f32 %v4692_v54, %v4682_v63  ;;  %v698_v24 = vsel %vm666_vm1, %v4592_v45, -3.4028235e+38  ;;  %vm670_vm3 = vcmp.eq.s32.totalorder %v606_v51, 1  ;;  %v2412_v28 = vsel %vm2380_vm12, %v4759_v34, -3.4028235e+38 }
 0x1c2   : > { %v751_v37 = vsel %vm719_vm7, %v698_v24, -inf  ;;  %v702_v31 = vsel %vm670_vm3, %v4697_v30, -3.4028235e+38  ;;  %v951_v24 = vsel %vm919_vm6, 1, %v6125_v0  ;;  %vm2379_vm3 = vcmp.eq.s32.totalorder %v4562_v25, 1 }
 0x1c3   : > { %v752_v45 = vmax.f32 %v750_v21, %v751_v37  ;;  %v764_v57 = vsel %vm719_vm7, %v702_v31, -inf  ;;  %v4727_v14 = vsel %vm833_vm13, %v3027_v61, %v3026_v41  ;;  %v2465_v61 = vsel %vm719_vm7, %v2405_v48, -inf }
 0x1c4   : > { %v765_v6 = vmax.f32 %v763_v17, %v764_v57  ;;  %989 = vrot.lane.b32.xlu0 %v949_v15, %s3557_s16  ;;  %v4770_v37 = vperm.slane %v3384_v39, 1  ;;  %v2407_v31 = vsel %vm2375_vm10, %v248_v23, -3.4028235e+38  ;;  %v2408_v57 = vsel %vm2376_vm11, %v249_v32, -3.4028235e+38  ;;  %v250_v17 = vld [vmem:[%s3688_s25 + $0x90] sm:$0xff] }
 0x1c5   : > { %v753_v33 = vrot.slane %v752_v45, 4  ;;  %1558 = vrot.lane.b32.xlu1 %v1516_v9, %s3557_s16  ;;  %v1522_v9 = vsel %vm1490_vm8, 1, %v6125_v0  ;;  %v4792_v23 = vld [vmem:[%s3688_s25 + $0x98] sm:$0xff]  ;;  %v252_v15 = vld [vmem:[%s3688_s25 + $0xa0] sm:$0xff]  ;;  %vm2377_vm6 = vcmp.eq.s32.totalorder %v4650_v43, 1  ;;  %vm675_vm8 = vcmp.eq.s32.totalorder %v4602_v42, 1 }
 0x1c6   : > { %997 = vrot.lane.b32.xlu2 %v953_v50, %s3557_s16  ;;  %v766_v41 = vrot.slane %v765_v6, 4  ;;  %v772_v50 = vsel %vm719_vm7, %v703_v5, -inf  ;;  %vm925_vm1 = vcmp.le.s32.totalorder %v3712_v2, %v4770_v37  ;;  %vm911_vm11 = vcmp.le.s32.totalorder %v3779_v26, %v4467_v19 }
 0x1c7   : > { %v754_v16 = vmax.f32 %v752_v45, %v753_v33  ;;  %v4741_v21 = vpop.permute.xlu0 %635  ;;  %v615_v13 = vpop.permute.xlu1 %614  ;;  %v2464_v45 = vmax.f32 %v2462_v18, %v2463_v53  ;;  %v774_v10 = vmax.f32 %v772_v50, %v773_v58  ;;  %v4784_v53 = vmax.f32 %v2459_v60, %v2460_v20 }
 0x1c8   : > { %v4751_v7 = vpop.permute.xlu2 %647  ;;  %vm673_vm14 = vcmp.eq.s32.totalorder %v615_v13, 1  ;;  %v767_v12 = vmax.f32 %v765_v6, %v766_v41  ;;  %v1512_v6 = vsel %vm1480_vm2, 1, %v6125_v0  ;;  %v2475_v41 = vsel %vm719_vm7, %v2407_v31, -inf }
 0x1c9   : > { %v755_v51 = vrot.slane %v754_v16, 2  ;;  %v2466_v39 = vmax.f32 %v2464_v45, %v2465_v61  ;;  %v705_v35 = vsel %vm673_vm14, %v250_v17, -3.4028235e+38  ;;  %v957_v61 = vsel %vm925_vm1, 1, %v6125_v0 }
 0x1ca   : > { %v775_v18 = vsel %vm719_vm7, %v705_v35, -inf  ;;  %v768_v20 = vrot.slane %v767_v12, 2  ;;  %v4831_v35 = vsel %vm719_vm7, %v2412_v28, -inf  ;;  %v2409_v31 = vsel %vm2377_vm6, %v250_v17, -3.4028235e+38  ;;  %v257_v17 = vld [vmem:[%s3688_s25 + $0xc8] sm:$0xff] }
 0x1cb   : > { %v756_v40 = vmax.f32 %v754_v16, %v755_v51  ;;  %v1509_v16 = vsel %vm1477_vm15, 1, %v6125_v0  ;;  %v776_v45 = vmax.f32 %v774_v10, %v775_v18  ;;  %vm2384_vm12 = vcmp.eq.s32.totalorder %v4567_v56, 1  ;;  %v256_v18 = vld [vmem:[%s3688_s25 + $0xc0] sm:$0xff] }
 0x1cc   : > { %1550 = vrot.lane.b32.xlu0 %v1512_v6, %s3557_s16  ;;  %vm1481_vm14 = vcmp.le.s32.totalorder %v3839_v44, %v4448_v4  ;;  %vm679_vm15 = vcmp.eq.s32.totalorder %v4616_v49, 1  ;;  %v708_v6 = vsel %vm676_vm9, %v4759_v34, -3.4028235e+38  ;;  %vm2381_vm1 = vcmp.eq.s32.totalorder %v4659_v46, 1 }
 0x1cd   : > { %v757_v33 = vrot.slane %v756_v40, 1  ;;  %993 = vrot.lane.b32.xlu1 %v951_v24, %s3557_s16  ;;  %vm2383_vm2 = vcmp.eq.s32.totalorder %v4694_v27, 1  ;;  %v711_v27 = vsel %vm679_vm15, %v256_v18, -3.4028235e+38  ;;  %vm680_vm6 = vcmp.eq.s32.totalorder %v4741_v21, 1 }
 0x1ce   : > { %1570 = vrot.lane.b32.xlu2 %v1522_v9, %s3557_s16  ;;  %v2415_v56 = vsel %vm2383_vm2, %v256_v18, -3.4028235e+38  ;;  %vm1491_vm15 = vcmp.le.s32.totalorder %v3729_v8, %v4721_v29 }
 0x1cf   : > { %v4787_v3 = vmax.f32 %v756_v40, %v757_v33  ;;  %v4789_v32 = vpop.permute.xlu0 %2348  ;;  %v2310_v48 = vpop.permute.xlu1 %2309  ;;  %v2476_v33 = vsel %vm719_vm7, %v2408_v57, -inf  ;;  %v769_v57 = vmax.f32 %v767_v12, %v768_v20  ;;  %v4923_v21 = vsel %vm719_vm7, %v2415_v56, -inf }
 0x1d0   : > { %vm2374_vm4 = vcmp.eq.s32.totalorder %v2310_v48, 1  ;;  %v618_v60 = vpop.permute.xlu2 %617 }
 0x1d1   : > { %6160 = vst [vmem:[#allocation13_spill] sm:$0xff] %v4787_v3  ;;  %v3028_v13 = vmax.f32 %v4787_v3, %v4784_v53  ;;  %v2406_v5 = vsel %vm2374_vm4, %v4697_v30, -3.4028235e+38  ;;  %vm674_vm5 = vcmp.eq.s32.totalorder %v618_v60, 1  ;;  %v4819_v30 = vld [vmem:[%s3709_s21 + $0x14] sm:$0xf]  ;;  %vm916_vm4 = vcmp.le.s32.totalorder %v3839_v44, %v4510_v52 }
 0x1d2   : > { %v2467_v58 = vsel %vm719_vm7, %v2406_v5, -inf  ;;  %v706_v51 = vsel %vm674_vm5, %v4792_v23, -3.4028235e+38  ;;  %v4822_v40 = vperm.slane %v4819_v30, 2  ;;  %v943_v60 = vsel %vm911_vm11, 1, %v6125_v0 }
 0x1d3   : > { %v2468_v24 = vmax.f32 %v2466_v39, %v2467_v58  ;;  %v777_v9 = vsel %vm719_vm7, %v706_v51, -inf  ;;  %v4827_v50 = vsel %vm835_vm0, %v3028_v13, %v4727_v14  ;;  %v2411_v39 = vsel %vm2379_vm3, %v252_v15, -3.4028235e+38 }
 0x1d4   : > { %v778_v14 = vmax.f32 %v776_v45, %v777_v9  ;;  %vm1494_vm10 = vcmp.le.s32.totalorder %v3712_v2, %v4822_v40  ;;  %v4850_v43 = vsel %vm719_vm7, %v2411_v39, -inf  ;;  %977 = vrot.lane.b32.xlu0 %v943_v60, %s3557_s16  ;;  %v2478_v5 = vsel %vm719_vm7, %v2409_v31, -inf }
 0x1d5   : > { %v2469_v48 = vrot.slane %v2468_v24, 4  ;;  %1544 = vrot.lane.b32.xlu1 %v1509_v16, %s3557_s16  ;;  %v707_v16 = vsel %vm675_vm8, %v252_v15, -3.4028235e+38  ;;  %v1526_v42 = vsel %vm1494_vm10, 1, %v6125_v0  ;;  %v4874_v15 = vld [vmem:[%s3688_s25 + $0xb0] sm:$0xff]  ;;  %v770_v36 = vrot.slane %v769_v57, 1 }
 0x1d6   : > { %1005 = vrot.lane.b32.xlu2 %v957_v61, %s3557_s16  ;;  %v779_v58 = vrot.slane %v778_v14, 4  ;;  %v1513_v51 = vsel %vm1481_vm14, 1, %v6125_v0  ;;  %v2477_v61 = vmax.f32 %v2475_v41, %v2476_v33  ;;  %v2490_v20 = vmax.f32 %v4850_v43, %v4831_v35 }
 0x1d7   : > { %v2470_v28 = vmax.f32 %v2468_v24, %v2469_v48  ;;  %v4841_v10 = vpop.permute.xlu0 %626  ;;  %v4843_v25 = vpop.permute.xlu1 %2351  ;;  %v2416_v24 = vsel %vm2384_vm12, %v257_v17, -3.4028235e+38  ;;  %v4886_v9 = vsel %vm719_vm7, %v707_v16, -inf  ;;  %v4891_v45 = vsel %vm719_vm7, %v708_v6, -inf }
 0x1d8   : > { %v4854_v12 = vpop.permute.xlu2 %2354  ;;  %vm837_vm3 = vcmask 1043459   ;;  %v2479_v41 = vmax.f32 %v2477_v61, %v2478_v5  ;;  %v2413_v33 = vsel %vm2381_vm1, %v4874_v15, -3.4028235e+38  ;;  %v780_v35 = vmax.f32 %v778_v14, %v779_v58  ;;  %v4928_v58 = vld [vmem:[%s3688_s25 + $0xe8] sm:$0xff] }
 0x1d9   : > { %v2471_v13 = vrot.slane %v2470_v28, 2  ;;  %v4898_v48 = vmax.f32 %v769_v57, %v770_v36  ;;  %vm922_vm5 = vcmp.le.s32.totalorder %v3729_v8, %v4679_v55  ;;  %vm1495_vm9 = vcmp.le.s32.totalorder %v3729_v8, %v4822_v40 }
 0x1da   : > { %v954_v14 = vsel %vm922_vm5, 1, %v6125_v0  ;;  %v2491_v57 = vsel %vm719_vm7, %v2413_v33, -inf  ;;  %v4919_v16 = vperm.slane %v4819_v30, 1  ;;  %v781_v6 = vrot.slane %v780_v35, 2  ;;  %v280_v33 = vld [vmem:[#allocation5 + $0x18] sm:$0xff] }
 0x1db   : > { %v2472_v34 = vmax.f32 %v2470_v28, %v2471_v13  ;;  %6161 = vst [vmem:[#allocation14_spill] sm:$0xff] %v4898_v48  ;;  %v948_v18 = vsel %vm916_vm4, 1, %v6125_v0  ;;  %v712_v5 = vsel %vm680_vm6, %v257_v17, -3.4028235e+38  ;;  %vm684_vm10 = vcmp.eq.s32.totalorder %v4751_v7, 1  ;;  %861 = vmatpush.msra.mxu0 %v280_v33  ;;  %2556 = vmatpush.msra.mxu3 %v280_v33 }
 0x1dc   : > { %999 = vrot.lane.b32.xlu0 %v954_v14, %s3557_s16  ;;  %v1527_v30 = vsel %vm1495_vm9, 1, %v6125_v0  ;;  %v4934_v36 = vsel %vm719_vm7, %v711_v27, -inf  ;;  %v4942_v17 = vmax.f32 %v2490_v20, %v2491_v57  ;;  %vm930_vm11 = vcmp.le.s32.totalorder %v3729_v8, %v4919_v16  ;;  %v4948_v7 = vld [vmem:[%s3709_s21 + $0x18] sm:$0xf]  ;;  %1991 = vmatpush.msra.mxu2 %v280_v33 }
 0x1dd   : > { %v2473_v39 = vrot.slane %v2472_v34, 1  ;;  %1578 = vrot.lane.b32.xlu1 %v1526_v42, %s3557_s16  ;;  %v2502_v42 = vsel %vm719_vm7, %v2416_v24, -inf  ;;  %v4951_v24 = vperm.slane %v4948_v7, 2  ;;  %v782_v20 = vmax.f32 %v780_v35, %v781_v6  ;;  %1426 = vmatpush.msra.mxu1 %v280_v33 }
 0x1de   : > { %1552 = vrot.lane.b32.xlu2 %v1513_v51, %s3557_s16  ;;  %v2503_v27 = vmax.f32 %v4923_v21, %v2502_v42  ;;  %vm677_vm12 = vcmp.eq.s32.totalorder %v4841_v10, 1  ;;  %vm923_vm14 = vcmp.le.s32.totalorder %v3779_v26, %v4679_v55  ;;  %vm2387_vm1 = vcmp.eq.s32.totalorder %v4789_v32, 1  ;;  %v260_v21 = vld [vmem:[%s3688_s25 + $0xe0] sm:$0xff]  ;;  %v278_v42 = vld [vmem:[#allocation5 + $0x8] sm:$0xff] }
 0x1df   : > { %v4900_v49 = vmax.f32 %v2472_v34, %v2473_v39  ;;  %v2322_v31 = vpop.permute.xlu0 %2321  ;;  %v4902_v28 = vpop.permute.xlu1 %644  ;;  %v787_v34 = vmax.f32 %v4886_v9, %v4891_v45  ;;  %v4955_v39 = vsel %vm719_vm7, %v712_v5, -inf  ;;  %v962_v57 = vsel %vm930_vm11, 1, %v6125_v0  ;;  %v277_v10 = vld [vmem:[#allocation5] sm:$0xff] }
 0x1e0   : > { %vm2378_vm8 = vcmp.eq.s32.totalorder %v2322_v31, 1  ;;  %v4909_v46 = vpop.permute.xlu2 %2345  ;;  %vm1498_vm5 = vcmp.le.s32.totalorder %v3712_v2, %v4951_v24  ;;  %v783_v5 = vrot.slane %v782_v20, 1  ;;  %vm1485_vm6 = vcmp.le.s32.totalorder %v3839_v44, %v4502_v47 }
 0x1e1   : > { %v3029_v43 = vmax.f32 %v4898_v48, %v4900_v49  ;;  %v2410_v60 = vsel %vm2378_vm8, %v4792_v23, -3.4028235e+38  ;;  %vm2386_vm4 = vcmp.eq.s32.totalorder %v4909_v46, 1  ;;  %vm6152_vm8 = vcmask 1044484  }
 0x1e2   : > { %v2480_v13 = vsel %vm719_vm7, %v2410_v60, -inf  ;;  %v1523_v60 = vsel %vm1491_vm15, 1, %v6125_v0  ;;  %v1517_v32 = vsel %vm1485_vm6, 1, %v6125_v0  ;;  %v5016_v46 = vmax.f32 %v782_v20, %v783_v5 }
 0x1e3   : > { %v2481_v23 = vmax.f32 %v2479_v41, %v2480_v13  ;;  %v4940_v51 = vsel %vm837_vm3, %v3029_v43, %v4827_v50  ;;  %v716_v50 = vsel %vm684_vm10, %v4928_v58, -3.4028235e+38  ;;  %v4960_v41 = vld [vmem:[%s3688_s25 + $0xd0] sm:$0xff]  ;;  %v4979_v13 = vld [vmem:[%s3688_s25 + $0xd8] sm:$0xff]  ;;  %vm2388_vm9 = vcmp.eq.s32.totalorder %v4843_v25, 1 }
 0x1e4   : > { %v279_v43 = vld [vmem:[#allocation5 + $0x10] sm:$0xff]  ;;  %1572 = vrot.lane.b32.xlu0 %v1523_v60, %s3557_s16  ;;  %v2419_v60 = vsel %vm2387_vm1, %v260_v21, -3.4028235e+38  ;;  %6162 = vst [vmem:[#allocation15_spill] sm:$0xff] %v5016_v46  ;;  %vm683_vm10 = vcmp.eq.s32.totalorder %v4902_v28, 1  ;;  %vm926_vm11 = vcmp.le.s32.totalorder %v3729_v8, %v4770_v37  ;;  %vm2389_vm1 = vcmp.eq.s32.totalorder %v4854_v12, 1 }
 0x1e5   : > { %v2482_v61 = vrot.slane %v2481_v23, 4  ;;  %987 = vrot.lane.b32.xlu1 %v948_v18, %s3557_s16  ;;  %862 = vmatpush.msra.mxu0 %v279_v43  ;;  %v958_v5 = vsel %vm926_vm11, 1, %v6125_v0  ;;  %v2420_v9 = vsel %vm2388_vm9, %v4928_v58, -3.4028235e+38  ;;  %v262_v28 = vld [vmem:[%s3688_s25 + $0xf0] sm:$0xff] }
 0x1e6   : > { %1580 = vrot.lane.b32.xlu2 %v1527_v30, %s3557_s16  ;;  %2557 = vmatpush.msra.mxu3 %v279_v43  ;;  %v283_v25 = vld [vmem:[#allocation5 + $0x30] sm:$0xff] }
 0x1e7   : > { %v2483_v56 = vmax.f32 %v2481_v23, %v2482_v61  ;;  %v4963_v31 = vpop.permute.xlu0 %638  ;;  %v2343_v14 = vpop.permute.xlu1 %2342  ;;  %v709_v23 = vsel %vm677_vm12, %v4874_v15, -3.4028235e+38  ;;  %1992 = vmatpush.msra.mxu2 %v279_v43  ;;  %863 = vmatpush.msra.mxu0 %v278_v42  ;;  %v4999_v15 = vsel %vm719_vm7, %v716_v50, -inf  ;;  %v1530_v50 = vsel %vm1498_vm5, 1, %v6125_v0 }
 0x1e8   : > { %vm2385_vm2 = vcmp.eq.s32.totalorder %v2343_v14, 1  ;;  %v4970_v35 = vpop.permute.xlu2 %653  ;;  %v955_v14 = vsel %vm923_vm14, 1, %v6125_v0  ;;  %1427 = vmatpush.msra.mxu1 %v279_v43  ;;  %2558 = vmatpush.msra.mxu3 %v278_v42  ;;  %vm681_vm12 = vcmp.eq.s32.totalorder %v4963_v31, 1  ;;  %v5054_v31 = vld [vmem:[%s3688_s25 + $0xf8] sm:$0xff]  ;;  %vm1499_vm5 = vcmp.le.s32.totalorder %v3729_v8, %v4951_v24 }
 0x1e9   : > { %v2484_v6 = vrot.slane %v2483_v56, 2  ;;  %v2417_v18 = vsel %vm2385_vm2, %v4960_v41, -3.4028235e+38  ;;  %1993 = vmatpush.msra.mxu2 %v278_v42  ;;  %864 = vmatpush.msra.mxu0 %v277_v10  ;;  %v713_v45 = vsel %vm681_vm12, %v4960_v41, -3.4028235e+38  ;;  %vm927_vm2 = vcmp.le.s32.totalorder %v3779_v26, %v4770_v37 }
 0x1ea   : > { %v2504_v30 = vsel %vm719_vm7, %v2417_v18, -inf  ;;  %v788_v18 = vsel %vm719_vm7, %v709_v23, -inf  ;;  %2559 = vmatpush.msra.mxu3 %v277_v10  ;;  %1428 = vmatpush.msra.mxu1 %v278_v42  ;;  %v801_v41 = vsel %vm719_vm7, %v713_v45, -inf }
 0x1eb   : > { %v2485_v33 = vmax.f32 %v2483_v56, %v2484_v6  ;;  %v2418_v56 = vsel %vm2386_vm4, %v4979_v13, -3.4028235e+38  ;;  %v2505_v6 = vmax.f32 %v2503_v27, %v2504_v30  ;;  %v255_v27 = vld [vmem:[%s3688_s25 + $0xb8] sm:$0xff]  ;;  %1994 = vmatpush.msra.mxu2 %v277_v10  ;;  %v789_v30 = vmax.f32 %v787_v34, %v788_v18 }
 0x1ec   : > { %v2506_v43 = vsel %vm719_vm7, %v2418_v56, -inf  ;;  %v715_v56 = vsel %vm683_vm10, %v260_v21, -3.4028235e+38  ;;  %1007 = vrot.lane.b32.xlu0 %v958_v5, %s3557_s16  ;;  %1429 = vmatpush.msra.mxu1 %v277_v10  ;;  %v284_v10 = vld [vmem:[#allocation5 + $0x38] sm:$0xff]  ;;  %vm686_vm4 = vcmp.eq.s32.totalorder %v4970_v35, 1  ;;  %vm1489_vm10 = vcmp.le.s32.totalorder %v3839_v44, %v4585_v59 }
 0x1ed   : > { %v2486_v1 = vrot.slane %v2485_v33, 1  ;;  %1015 = vrot.lane.b32.xlu1 %v962_v57, %s3557_s16  ;;  %v811_v58 = vsel %vm719_vm7, %v715_v56, -inf  ;;  %2600 = vmatpush.msrb.mxu0 %v284_v10  ;;  %v718_v5 = vsel %vm686_vm4, %v5054_v31, -3.4028235e+38  ;;  %v6164_v56 = vmax.f32 %v4934_v36, %v4955_v39 }
 0x1ee   : > { %1001 = vrot.lane.b32.xlu2 %v955_v14, %s3557_s16  ;;  %v2507_v14 = vmax.f32 %v2505_v6, %v2506_v43  ;;  %2663 = vmatpush.msrb.mxu1 %v284_v10  ;;  %v2515_v43 = vsel %vm719_vm7, %v2420_v9, -inf  ;;  %v5093_v39 = vperm.slane %v4948_v7, 1  ;;  %vm1496_vm4 = vcmp.le.s32.totalorder %v3779_v26, %v4822_v40 }
 0x1ef   : > { %v5024_v57 = vmax.f32 %v2485_v33, %v2486_v1  ;;  %v630_v23 = vpop.permute.xlu0 %629  ;;  %v2334_v20 = vpop.permute.xlu1 %2333  ;;  %2726 = vmatpush.msrb.mxu2 %v284_v10  ;;  %2601 = vmatpush.msrb.mxu0 %v283_v25  ;;  %v802_v9 = vmax.f32 %v6164_v56, %v801_v41 }
 0x1f0   : > { %vm678_vm14 = vcmp.eq.s32.totalorder %v630_v23, 1  ;;  %vm2382_vm15 = vcmp.eq.s32.totalorder %v2334_v20, 1  ;;  %v5032_v1 = vpop.permute.xlu2 %1538  ;;  %v2508_v18 = vrot.slane %v2507_v14, 4  ;;  %v2421_v23 = vsel %vm2389_vm1, %v262_v28, -3.4028235e+38  ;;  %2664 = vmatpush.msrb.mxu1 %v283_v25  ;;  %2789 = vmatpush.msrb.mxu3 %v284_v10 }
 0x1f1   : > { %v3030_v33 = vmax.f32 %v5016_v46, %v5024_v57  ;;  %v710_v61 = vsel %vm678_vm14, %v255_v27, -3.4028235e+38  ;;  %v2414_v0 = vsel %vm2382_vm15, %v255_v27, -3.4028235e+38  ;;  %v6163_v20 = vmov 0   ;;  %2727 = vmatpush.msrb.mxu2 %v283_v25 }
 0x1f2   : > { %v790_v34 = vsel %vm719_vm7, %v710_v61, -inf  ;;  %v2493_v42 = vsel %vm719_vm7, %v2414_v0, -inf  ;;  %v2509_v45 = vmax.f32 %v2507_v14, %v2508_v18  ;;  %v1531_v36 = vsel %vm1499_vm5, 1, %v6163_v20  ;;  %2790 = vmatpush.msrb.mxu3 %v283_v25 }
 0x1f3   : > { %v791_v21 = vmax.f32 %v789_v30, %v790_v34  ;;  %v2494_v6 = vmax.f32 %v4942_v17, %v2493_v42  ;;  %v5059_v0 = vsel %vm6152_vm8, %v3030_v33, %v4940_v51  ;;  %v5062_v17 = vsel %vm719_vm7, %v2419_v60, -inf  ;;  %v282_v60 = vld [vmem:[#allocation5 + $0x28] sm:$0xff] }
 0x1f4   : > { %v959_v51 = vsel %vm927_vm2, 1, %v6163_v20  ;;  %2602 = vmatpush.msrb.mxu0 %v282_v60  ;;  %2665 = vmatpush.msrb.mxu1 %v282_v60  ;;  %v2516_v41 = vmax.f32 %v5062_v17, %v2515_v43  ;;  %v2517_v7 = vsel %vm719_vm7, %v2421_v23, -inf  ;;  %vm933_vm11 = vcmp.le.s32.totalorder %v3712_v2, %v5093_v39 }
 0x1f5   : > { %v792_v61 = vrot.slane %v791_v21, 4  ;;  %v2495_v27 = vrot.slane %v2494_v6, 4  ;;  %1586 = vrot.lane.b32.xlu1 %v1530_v50, %s3557_s16  ;;  %v813_v50 = vmax.f32 %v811_v58, %v4999_v15  ;;  %2728 = vmatpush.msrb.mxu2 %v282_v60  ;;  %v834_v25 = vsel %vm833_vm13, %v4692_v54, %v4686_v22 }
 0x1f6   : > { %1560 = vrot.lane.b32.xlu2 %v1517_v32, %s3557_s16  ;;  %2791 = vmatpush.msrb.mxu3 %v282_v60  ;;  %v2518_v23 = vmax.f32 %v2516_v41, %v2517_v7  ;;  %vm6151_vm14 = vcmask 1045509   ;;  %vm6150_vm15 = vcmask 1046534   ;;  %vm6148_vm2 = vcmask 1047559  }
 0x1f7   : > { %v793_v12 = vmax.f32 %v791_v21, %v792_v61  ;;  %v2496_v30 = vmax.f32 %v2494_v6, %v2495_v27  ;;  %v642_v33 = vpop.permute.xlu0 %641  ;;  %v651_v32 = vpop.permute.xlu1 %650  ;;  %v2510_v61 = vrot.slane %v2509_v45, 2  ;;  %v816_v27 = vsel %vm719_vm7, %v718_v5, -inf }
 0x1f8   : > { %vm682_vm6 = vcmp.eq.s32.totalorder %v642_v33, 1  ;;  %vm685_vm9 = vcmp.eq.s32.totalorder %v651_v32, 1  ;;  %v5083_v34 = vpop.permute.xlu2 %1548 }
 0x1f9   : > { %v794_v15 = vrot.slane %v793_v12, 2  ;;  %v2497_v35 = vrot.slane %v2496_v30, 2  ;;  %v714_v42 = vsel %vm682_vm6, %v4979_v13, -3.4028235e+38  ;;  %v717_v21 = vsel %vm685_vm9, %v262_v28, -3.4028235e+38 }
 0x1fa   : > { %v803_v6 = vsel %vm719_vm7, %v714_v42, -inf  ;;  %v814_v58 = vsel %vm719_vm7, %v717_v21, -inf  ;;  %v281_v28 = vld [vmem:[#allocation5 + $0x20] sm:$0xff]  ;;  %vm924_vm6 = vcmp.le.s32.totalorder %v3839_v44, %v4679_v55  ;;  %vm1500_vm9 = vcmp.le.s32.totalorder %v3779_v26, %v4951_v24 }
 0x1fb   : > { %v795_v14 = vmax.f32 %v793_v12, %v794_v15  ;;  %v2498_v10 = vmax.f32 %v2496_v30, %v2497_v35  ;;  %v804_v18 = vmax.f32 %v802_v9, %v803_v6  ;;  %v815_v13 = vmax.f32 %v813_v50, %v814_v58  ;;  %2603 = vmatpush.msrb.mxu0 %v281_v28 }
 0x1fc   : > { %2666 = vmatpush.msrb.mxu1 %v281_v28  ;;  %2729 = vmatpush.msrb.mxu2 %v281_v28  ;;  %v836_v30 = vsel %vm835_vm0, %v4787_v3, %v834_v25  ;;  %v2511_v9 = vmax.f32 %v2509_v45, %v2510_v61  ;;  %v1521_v6 = vsel %vm1489_vm10, 1, %v6163_v20  ;;  %v965_v58 = vsel %vm933_vm11, 1, %v6163_v20 }
 0x1fd   : > { %v796_v33 = vrot.slane %v795_v14, 1  ;;  %v2499_v32 = vrot.slane %v2498_v10, 1  ;;  %v805_v56 = vrot.slane %v804_v18, 4  ;;  %v817_v42 = vmax.f32 %v815_v13, %v816_v27  ;;  %1009 = vrot.lane.b32.xlu1 %v959_v51, %s3557_s16  ;;  %2792 = vmatpush.msrb.mxu3 %v281_v28 }
 0x1fe   : > { %1588 = vrot.lane.b32.xlu2 %v1531_v36, %s3557_s16  ;;  %v2512_v13 = vrot.slane %v2511_v9, 1  ;;  %vm1497_vm11 = vcmp.le.s32.totalorder %v3839_v44, %v4822_v40 }
 0x1ff   : > { %v5107_v17 = vmax.f32 %v795_v14, %v796_v33  ;;  %v806_v43 = vmax.f32 %v804_v18, %v805_v56  ;;  %v818_v51 = vrot.slane %v817_v42, 4  ;;  %v2358_v50 = vpop.permute.xlu1 %2357  ;;  %v2500_v5 = vmax.f32 %v2498_v10, %v2499_v32  ;;  %v3387_v18 = vld [vmem:[%s3709_s21 + $0x1c] sm:$0xf] }
 0x200   : > { %vm2390_vm12 = vcmp.eq.s32.totalorder %v2358_v50, 1  ;;  %v5109_v12 = vpop.permute.xlu2 %981  ;;  %v838_v33 = vsel %vm837_vm3, %v4898_v48, %v836_v30  ;;  %v2535_v56 = vsel %vm833_vm13, %v4682_v63, %v4701_v62  ;;  %v2513_v50 = vmax.f32 %v2511_v9, %v2512_v13 }
 0x201   : > { %6165 = vst [vmem:[#allocation16_spill] sm:$0xff] %v5107_v17  ;;  %v807_v15 = vrot.slane %v806_v43, 2  ;;  %v819_v35 = vmax.f32 %v817_v42, %v818_v51  ;;  %v2422_v60 = vsel %vm2390_vm12, %v5054_v31, -3.4028235e+38  ;;  %v3031_v45 = vmax.f32 %v5107_v17, %v2500_v5 }
 0x202   : > { %v2519_v21 = vsel %vm719_vm7, %v2422_v60, -inf  ;;  %v5125_v31 = vperm.slane %v3387_v18, 2  ;;  %v840_v32 = vsel %vm6152_vm8, %v5016_v46, %v838_v33  ;;  %v2536_v30 = vsel %vm835_vm0, %v4784_v53, %v2535_v56 }
 0x203   : > { %v808_v36 = vmax.f32 %v806_v43, %v807_v15  ;;  %v820_v14 = vrot.slane %v819_v35, 2  ;;  %v2520_v10 = vmax.f32 %v2518_v23, %v2519_v21  ;;  %v3095_v28 = vsel %vm6151_vm14, %v3031_v45, %v5059_v0 }
 0x204   : > { %vm1503_vm1 = vcmp.le.s32.totalorder %v3729_v8, %v5125_v31  ;;  %v842_v51 = vsel %vm6151_vm14, %v5107_v17, %v840_v32  ;;  %v1528_v9 = vsel %vm1496_vm4, 1, %v6163_v20  ;;  %v1532_v56 = vsel %vm1500_vm9, 1, %v6163_v20 }
 0x205   : > { %v809_v41 = vrot.slane %v808_v36, 1  ;;  %v821_v61 = vmax.f32 %v819_v35, %v820_v14  ;;  %v2521_v27 = vrot.slane %v2520_v10, 4  ;;  %1568 = vrot.lane.b32.xlu1 %v1521_v6, %s3557_s16  ;;  %v1535_v15 = vsel %vm1503_vm1, 1, %v6163_v20 }
 0x206   : > { %1021 = vrot.lane.b32.xlu2 %v965_v58, %s3557_s16  ;;  %v2537_v35 = vsel %vm837_vm3, %v4900_v49, %v2536_v30  ;;  %v5163_v58 = vperm.slane %v3387_v18, 1  ;;  %vm928_vm12 = vcmp.le.s32.totalorder %v3839_v44, %v4770_v37  ;;  %vm1504_vm4 = vcmp.le.s32.totalorder %v3779_v26, %v5125_v31 }
 0x207   : > { %v5138_v42 = vmax.f32 %v808_v36, %v809_v41  ;;  %v2522_v0 = vmax.f32 %v2520_v10, %v2521_v27  ;;  %v5140_v7 = vpop.permute.xlu1 %1546  ;;  %v822_v25 = vrot.slane %v821_v61, 1  ;;  %v2538_v53 = vsel %vm6152_vm8, %v5024_v57, %v2537_v35 }
 0x208   : > { %v5144_v43 = vpop.permute.xlu2 %1556  ;;  %v2539_v36 = vsel %vm6151_vm14, %v2500_v5, %v2538_v53  ;;  %vm937_vm5 = vcmp.le.s32.totalorder %v3712_v2, %v5163_v58  ;;  %v956_v41 = vsel %vm924_vm6, 1, %v6163_v20  ;;  %v3558_v27 = vmov 0.0  }
 0x209   : > { %6166 = vst [vmem:[#allocation17_spill] sm:$0xff] %v5138_v42  ;;  %v2523_v63 = vrot.slane %v2522_v0, 2  ;;  %v5150_v62 = vmax.f32 %v821_v61, %v822_v25  ;;  %v844_v23 = vsel %vm6150_vm15, %v5138_v42, %v842_v51  ;;  %v3032_v60 = vmax.f32 %v5138_v42, %v2513_v50 }
 0x20a   : > { %v2540_v13 = vsel %vm6150_vm15, %v2513_v50, %v2539_v36  ;;  %v969_v5 = vsel %vm937_vm5, 1, %v6163_v20  ;;  %vm938_vm10 = vcmp.le.s32.totalorder %v3729_v8, %v5163_v58  ;;  %v1529_v50 = vsel %vm1497_vm11, 1, %v6163_v20 }
 0x20b   : > { %6167 = vst [vmem:[#allocation18_spill] sm:$0xff] %v5150_v62  ;;  %v846_v21 = vsel %vm6148_vm2, %v5150_v62, %v844_v23  ;;  %v2524_v6 = vmax.f32 %v2522_v0, %v2523_v63  ;;  %v3096_v45 = vsel %vm6150_vm15, %v3032_v60, %v3095_v28  ;;  %v970_v0 = vsel %vm938_vm10, 1, %v6163_v20 }
 0x20c   : > { %3247 = vmatmul.msk.f32.vlgmr.msra.gmra.mxu0 %vm719_vm7, %v846_v21  ;;  %v960_v63 = vsel %vm928_vm12, 1, %v6163_v20  ;;  %vm939_vm1 = vcmp.le.s32.totalorder %v3779_v26, %v5163_v58  ;;  %v1536_v60 = vsel %vm1504_vm4, 1, %v6163_v20  ;;  %vm1505_vm5 = vcmp.le.s32.totalorder %v3839_v44, %v5125_v31 }
 0x20d   : > { %1596 = vrot.lane.b32.xlu1 %v1535_v15, %s3557_s16  ;;  %v2525_v49 = vrot.slane %v2524_v6, 1  ;;  %v971_v15 = vsel %vm939_vm1, 1, %v6163_v20  ;;  %vm1501_vm6 = vcmp.le.s32.totalorder %v3839_v44, %v4951_v24  ;;  %vm1442_vm9 = vcmp.ge.s32.totalorder %v3712_v2, %v4452_v11 }
 0x20e   : > { %1582 = vrot.lane.b32.xlu2 %v1528_v9, %s3557_s16  ;;  %v1533_v53 = vsel %vm1501_vm6, 1, %v6163_v20  ;;  %vm1602_vm10 = vcmp.ne.s32.totalorder %v5032_v1, 0  ;;  %vm940_vm12 = vcmp.le.s32.totalorder %v3839_v44, %v5163_v58  ;;  %vm1447_vm1 = vcmp.ge.s32.totalorder %v3729_v8, %v4448_v4 }
 0x20f   : > { %v5172_v14 = vpop.permute.xlu1 %975  ;;  %v2526_v10 = vmax.f32 %v2524_v6, %v2525_v49  ;;  %v1537_v6 = vsel %vm1505_vm5, 1, %v6163_v20  ;;  %vm1634_vm11 = vmand %vm1442_vm9, %vm1602_vm10  ;;  %vm1607_vm4 = vcmp.ne.s32.totalorder %v5083_v34, 0  ;;  %vm1443_vm5 = vcmp.ge.s32.totalorder %v3729_v8, %v4452_v11 }
 0x210   : > { %v5176_v18 = vpop.permute.xlu2 %1542  ;;  %vm1639_vm9 = vmand %vm1447_vm1, %vm1607_vm4  ;;  %vm882_vm4 = vcmp.ge.s32.totalorder %v3729_v8, %v4510_v52  ;;  %v6174_v46 = vlaneseq  ;;  %vm1611_vm8 = vcmp.ne.s32.totalorder %v5144_v43, 0 }
 0x211   : > { %v2541_v57 = vsel %vm6148_vm2, %v2526_v10, %v2540_v13  ;;  %v3033_v28 = vmax.f32 %v5150_v62, %v2526_v10  ;;  %v1666_v10 = vsel %vm1634_vm11, 1, %v6163_v20  ;;  %v972_v13 = vsel %vm940_vm12, 1, %v6163_v20 }
 0x212   : > { %3250 = vmatmul.msk.f32.vlgmr.msra.gmra.mxu3 %vm719_vm7, %v2541_v57  ;;  %vm877_vm11 = vcmp.ge.s32.totalorder %v3712_v2, %v4467_v19  ;;  %v2565_v48 = vand.u32 127, %v6174_v46 }
 0x213   : > { %v5187_v61 = vsel %vm6148_vm2, %v3033_v28, %v3096_v45 }
 0x214   : > { %6168 = vst [vmem:[#allocation19_spill] sm:$0xff] %v5187_v61  ;;  %2604 = vmatmul.f32.vlgmr.msrb.gmra.mxu0 %v3558_v27  ;;  %v2570_v22 = vand.u32 31, %v2565_v48 }
 0x215   : > { %1029 = vrot.lane.b32.xlu1 %v969_v5, %s3557_s16  ;;  %v1541_v35 = vpop.permute.xlu0 %1540  ;;  %v1671_v5 = vsel %vm1639_vm9, 1, %v6163_v20  ;;  %vm885_vm9 = vcmp.ge.s32.totalorder %v3712_v2, %v4546_v38 }
 0x216   : > { %1003 = vrot.lane.b32.xlu2 %v956_v41, %s3557_s16  ;;  %vm1603_vm6 = vcmp.ne.s32.totalorder %v1541_v35, 0 }
 0x217   : > { %v5191_v33 = vpop.permute.xlu1 %1554  ;;  %vm1635_vm10 = vmand %vm1443_vm5, %vm1603_vm6 }
 0x218   : > { %v5195_v32 = vpop.permute.xlu2 %1564  ;;  %v1667_v41 = vsel %vm1635_vm10, 1, %v6163_v20 }
 0x21d   : > { %1590 = vrot.lane.b32.xlu1 %v1532_v56, %s3557_s16 }
 0x21e   : > { %1031 = vrot.lane.b32.xlu2 %v970_v0, %s3557_s16 }
 0x21f   : > { %v5203_v25 = vpop.permute.xlu1 %991 }
 0x220   : > { %v5207_v51 = vpop.permute.xlu2 %997 }
 0x225   : > { %1584 = vrot.lane.b32.xlu1 %v1529_v50, %s3557_s16 }
 0x226   : > { %1011 = vrot.lane.b32.xlu2 %v960_v63, %s3557_s16  ;;  %v974_v45 = vpop.permute.xlu0 %973 }
 0x227   : > { %v5215_v23 = vpop.permute.xlu1 %1562  ;;  %vm1037_vm12 = vcmp.ne.s32.totalorder %v974_v45, 0 }
 0x228   : > { %v5219_v30 = vpop.permute.xlu2 %1570  ;;  %vm1069_vm1 = vmand %vm877_vm11, %vm1037_vm12  ;;  %vm1448_vm12 = vcmp.ge.s32.totalorder %v3779_v26, %v4448_v4 }
 0x229   : > { %v1101_v0 = vsel %vm1069_vm1, 1, %v6163_v20 }
 0x22d   : > { %1033 = vrot.lane.b32.xlu1 %v971_v15, %s3557_s16 }
 0x22e   : > { %1598 = vrot.lane.b32.xlu2 %v1536_v60, %s3557_s16  ;;  %v984_v1 = vpop.permute.xlu0 %983 }
 0x22f   : > { %v5227_v21 = vpop.permute.xlu1 %985  ;;  %vm1042_vm5 = vcmp.ne.s32.totalorder %v984_v1, 0 }
 0x230   : > { %v5231_v9 = vpop.permute.xlu2 %1005  ;;  %vm1074_vm6 = vmand %vm882_vm4, %vm1042_vm5  ;;  %vm879_vm5 = vcmp.ge.s32.totalorder %v3779_v26, %v4467_v19 }
 0x231   : > { %v1106_v35 = vsel %vm1074_vm6, 1, %v6163_v20 }
 0x235   : > { %1600 = vrot.lane.b32.xlu1 %v1537_v6, %s3557_s16 }
 0x236   : > { %1592 = vrot.lane.b32.xlu2 %v1533_v53, %s3557_s16  ;;  %v990_v56 = vpop.permute.xlu0 %989 }
 0x237   : > { %v5242_v49 = vpop.permute.xlu1 %1558  ;;  %vm1045_vm10 = vcmp.ne.s32.totalorder %v990_v56, 0 }
 0x238   : > { %v5244_v36 = vpop.permute.xlu2 %1552  ;;  %vm1077_vm11 = vmand %vm885_vm9, %vm1045_vm10  ;;  %vm890_vm10 = vcmp.ge.s32.totalorder %v3729_v8, %v4679_v55 }
 0x239   : > { %v1109_v53 = vsel %vm1077_vm11, 1, %v6163_v20 }
 0x23d   : > { %1699 = vperm.xlu1 %3343, %v1666_v10  }
 0x23e   : > { %1035 = vrot.lane.b32.xlu2 %v972_v13, %s3557_s16  ;;  %v1551_v15 = vpop.permute.xlu0 %1550 }
 0x23f   : > { %v5256_v57 = vpop.permute.xlu1 %993  ;;  %vm1608_vm1 = vcmp.ne.s32.totalorder %v1551_v15, 0 }
 0x240   : > { %v5258_v28 = vpop.permute.xlu2 %1580  ;;  %vm1640_vm4 = vmand %vm1448_vm12, %vm1608_vm1  ;;  %vm1459_vm1 = vcmp.ge.s32.totalorder %v3729_v8, %v4721_v29 }
 0x241   : > { %v1672_v1 = vsel %vm1640_vm4, 1, %v6163_v20 }
 0x245   : > { %1714 = vperm.xlu1 %3343, %v1671_v5  }
 0x246   : > { %1702 = vperm.xlu2 %3344, %v1667_v41   ;;  %v978_v45 = vpop.permute.xlu0 %977 }
 0x247   : > { %v5264_v34 = vpop.permute.xlu1 %1544  ;;  %vm1039_vm6 = vcmp.ne.s32.totalorder %v978_v45, 0 }
 0x248   : > { %v5266_v27 = vpop.permute.xlu2 %1001  ;;  %vm1071_vm9 = vmand %vm879_vm5, %vm1039_vm6  ;;  %vm894_vm6 = vcmp.ge.s32.totalorder %v3729_v8, %v4770_v37 }
 0x24e   : > { %1134 = vperm.xlu2 %3344, %v1101_v0   ;;  %v1000_v5 = vpop.permute.xlu0 %999  ;;  %v1103_v0 = vsel %vm1071_vm9, 1, %v6163_v20 }
 0x24f   : > { %v5271_v50 = vpop.permute.xlu1 %1578  ;;  %vm1050_vm11 = vcmp.ne.s32.totalorder %v1000_v5, 0 }
 0x250   : > { %v5273_v63 = vpop.permute.xlu2 %1560  ;;  %vm1082_vm12 = vmand %vm890_vm10, %vm1050_vm11  ;;  %vm5327_vm11 = vcmp.lt.s32.totalorder %v2570_v22, 16 }
 0x251   : > { %v1114_v45 = vsel %vm1082_vm12, 1, %v6163_v20  ;;  %vm1488_vm12 = vcmp.le.s32.totalorder %v3779_v26, %v4585_v59 }
 0x256   : > { %1149 = vperm.xlu2 %3344, %v1106_v35  }
 0x257   : > { %v5278_v60 = vpop.permute.xlu1 %987 }
 0x258   : > { %v5280_v6 = vpop.permute.xlu2 %1588 }
 0x25e   : > { %1158 = vperm.xlu2 %3344, %v1109_v53   ;;  %v1573_v53 = vpop.permute.xlu0 %1572 }
 0x25f   : > { %v5285_v10 = vpop.permute.xlu1 %1015  ;;  %vm1619_vm4 = vcmp.ne.s32.totalorder %v1573_v53, 0 }
 0x260   : > { %v5287_v13 = vpop.permute.xlu2 %1021  ;;  %vm1651_vm5 = vmand %vm1459_vm1, %vm1619_vm4  ;;  %vm912_vm4 = vcmp.le.s32.totalorder %v3839_v44, %v4467_v19 }
 0x266   : > { %1717 = vperm.xlu2 %3344, %v1672_v1   ;;  %v1008_v5 = vpop.permute.xlu0 %1007 }
 0x267   : > { %v5292_v41 = vpop.permute.xlu1 %1586  ;;  %vm1054_vm9 = vcmp.ne.s32.totalorder %v1008_v5, 0  ;;  %v3346_v5 = vld [vmem:[#allocation5 + $0x40] ss:$0 sm:$0xff] }
 0x268   : > { %v5294_v56 = vpop.permute.xlu2 %1582  ;;  %vm1086_vm10 = vmand %vm894_vm6, %vm1054_vm9  ;;  %vm929_vm6 = vcmp.le.s32.totalorder %v3712_v2, %v4919_v16  ;;  %vm1492_vm9 = vcmp.le.s32.totalorder %v3779_v26, %v4721_v29 }
 0x269   : > { %v1118_v53 = vsel %vm1086_vm10, 1, %v6163_v20  ;;  %vm920_vm10 = vcmp.le.s32.totalorder %v3839_v44, %v4546_v38 }
 0x26e   : > { %1140 = vperm.xlu2 %3344, %v1103_v0   ;;  %v1683_v0 = vsel %vm1651_vm5, 1, %v6163_v20 }
 0x26f   : > { %v5299_v15 = vpop.permute.xlu1 %1009 }
 0x270   : > { %v5301_v35 = vpop.permute.xlu2 %1003 }
 0x271   : > { %6169 = vst [vmem:[#allocation20_spill] sm:$0xff] %v5301_v35  ;;  %v6176_v35 = vmov 0 }
 0x272   : > { %v6177_v35 = vsel %vm5327_vm11, 4294967295, %v6176_v35 }
 0x273   : > { %6178 = vst [vmem:[#allocation26_spill] sm:$0xff] %v6177_v35  ;;  %v1520_v35 = vsel %vm1488_vm12, 1, %v6163_v20  ;;  %vm934_vm12 = vcmp.le.s32.totalorder %v3729_v8, %v5093_v39 }
 0x276   : > { %1173 = vperm.xlu2 %3344, %v1114_v45  }
 0x277   : > { %v5306_v1 = vpop.permute.xlu1 %1568 }
 0x278   : > { %v5308_v61 = vpop.permute.xlu2 %1031 }
 0x279   : > { %6170 = vst [vmem:[#allocation21_spill] sm:$0xff] %v5308_v61 }
 0x27e   : > { %1750 = vperm.xlu2 %3344, %v1683_v0  }
 0x27f   : > { %v5313_v62 = vpop.permute.xlu1 %1596 }
 0x280   : > { %v5315_v42 = vpop.permute.xlu2 %1011 }
 0x281   : > { %6171 = vst [vmem:[#allocation22_spill] sm:$0xff] %v5315_v42 }
 0x286   : > { %1185 = vperm.xlu2 %3344, %v1118_v53  }
 0x287   : > { %v5318_v45 = vpop.permute.xlu1 %1029 }
 0x288   : > { %6172 = vst [vmem:[#allocation23_spill] sm:$0xff] %v5318_v45  ;;  %v5320_v17 = vpop.permute.xlu2 %1598 }
 0x289   : > { %6173 = vst [vmem:[#allocation24_spill] sm:$0xff] %v5320_v17  ;;  %v866_v3 = vpop.f32.mrf.mxu0 }
 0x28a   : > { %v5331_v42 = vadd.f32 %v3346_v5, %v866_v3 }
 0x28c   : > { %6179 = vst [vmem:[#allocation27_spill] sm:$0xff] %v5331_v42 }
 0x28f   : > { %v5323_v54 = vpop.permute.xlu1 %1590 }
 0x290   : > { %v5325_v0 = vpop.permute.xlu2 %1592 }
 0x291   : > { %6175 = vst [vmem:[#allocation25_spill] sm:$0xff] %v5325_v0  ;;  %v2605_v45 = vpop.f32.mrf.mxu0 }
 0x295   : > { %v2561_v61 = vpop.f32.mrf.mxu3 }
 0x296   : > { %v5333_v53 = vadd.f32 %v3346_v5, %v2561_v61 }
 0x297   : > { %v5335_v17 = vpop.permute.xlu1 %1584 }
 0x298   : > { %6180 = vst [vmem:[#allocation28_spill] sm:$0xff] %v5333_v53  ;;  %v2581_v48 = vsel %vm5327_vm11, %v5331_v42, %v5333_v53  ;;  %v5345_v3 = vpop.permute.xlu2 %1035  ;;  %v5364_v42 = vld [vmem:[%s3688_s25] sm:$0xff] }
 0x299   : > { %6181 = vst [vmem:[#allocation29_spill] sm:$0xff] %v5335_v17  ;;  %v2608_v46 = vadd.f32 %v2605_v45, %v2581_v48  ;;  %v5359_v45 = vld [vmem:[%s3688_s25 + $0x8] sm:$0xff] }
 0x29a   : > { %6182 = vst [vmem:[#allocation30_spill] sm:$0xff] %v5345_v3 }
 0x29b   : > { %3348 = vtanh.f32 %v2608_v46 }
 0x29f   : > { %v5347_v61 = vpop.permute.xlu1 %1033 }
 0x2a0   : > { %6183 = vst [vmem:[#allocation31_spill] sm:$0xff] %v5347_v61  ;;  %v1703_v17 = vpop.permute.xlu2 %1702 }
 0x2a1   : > { %v3349_v5 = vpop.eup %3348  ;;  %vm1795_vm1 = vcmp.eq.s32.totalorder %v1703_v17, 1 }
 0x2a2   : > { %2631 = vrot.lane.b32.xlu0 %v3349_v5, %s3559_s22  ;;  %v1827_v48 = vsel %vm1795_vm1, %v5359_v45, -3.4028235e+38  ;;  %v944_v5 = vsel %vm912_vm4, 1, %v6163_v20  ;;  %vm1502_vm1 = vcmp.le.s32.totalorder %v3712_v2, %v5125_v31  ;;  %vm931_vm4 = vcmp.le.s32.totalorder %v3779_v26, %v4919_v16 }
 0x2a3   : > { %v5368_v3 = vsel %vm719_vm7, %v1827_v48, -inf  ;;  %v1524_v48 = vsel %vm1492_vm9, 1, %v6163_v20  ;;  %vm932_vm9 = vcmp.le.s32.totalorder %v3839_v44, %v4919_v16 }
 0x2a4   : > { %6185 = vst [vmem:[#allocation33_spill] sm:$0xff] %v5368_v3 }
 0x2a7   : > { %v5352_v0 = vpop.permute.xlu1 %1600 }
 0x2a8   : > { %6184 = vst [vmem:[#allocation32_spill] sm:$0xff] %v5352_v0 }
 0x2aa   : > { %1566 = vrot.lane.b32.xlu0 %v1520_v35, %s3557_s16 }
 0x2af   : > { %v1700_v22 = vpop.permute.xlu1 %1699 }
 0x2b0   : > { %vm1794_vm5 = vcmp.eq.s32.totalorder %v1700_v22, 1  ;;  %v961_v22 = vsel %vm929_vm6, 1, %v6163_v20  ;;  %vm935_vm6 = vcmp.le.s32.totalorder %v3779_v26, %v5093_v39 }
 0x2b1   : > { %v1826_v53 = vsel %vm1794_vm5, %v5364_v42, -3.4028235e+38  ;;  %vm1493_vm5 = vcmp.le.s32.totalorder %v3839_v44, %v4721_v29 }
 0x2b2   : > { %v5371_v17 = vsel %vm719_vm7, %v1826_v53, -inf  ;;  %979 = vrot.lane.b32.xlu0 %v944_v5, %s3557_s16  ;;  %v952_v53 = vsel %vm920_vm10, 1, %v6163_v20  ;;  %v966_v5 = vsel %vm934_vm12, 1, %v6163_v20  ;;  %vm936_vm10 = vcmp.le.s32.totalorder %v3839_v44, %v5093_v39 }
 0x2b3   : > { %6186 = vst [vmem:[#allocation34_spill] sm:$0xff] %v5371_v17  ;;  %vm1446_vm12 = vcmp.ge.s32.totalorder %v3712_v2, %v4448_v4 }
 0x2ba   : > { %1013 = vrot.lane.b32.xlu0 %v961_v22, %s3557_s16  ;;  %v1534_v22 = vsel %vm1502_vm1, 1, %v6163_v20  ;;  %vm1606_vm1 = vcmp.ne.s32.totalorder %v5140_v7, 0 }
 0x2c2   : > { %1574 = vrot.lane.b32.xlu0 %v1524_v48, %s3557_s16  ;;  %v963_v48 = vsel %vm931_vm4, 1, %v6163_v20  ;;  %vm1638_vm4 = vmand %vm1446_vm12, %vm1606_vm1  ;;  %vm1450_vm12 = vcmp.ge.s32.totalorder %v3712_v2, %v4502_v47  ;;  %vm1610_vm1 = vcmp.ne.s32.totalorder %v5191_v33, 0 }
 0x2ca   : > { %995 = vrot.lane.b32.xlu0 %v952_v53, %s3557_s16  ;;  %v3251_v53 = vmul.f32 -1.442695, %v2608_v46 }
 0x2cc   : > { %3350 = vpow2.f32 %v3251_v53  ;;  %v968_v53 = vsel %vm936_vm10, 1, %v6163_v20 }
 0x2d2   : > { %1023 = vrot.lane.b32.xlu0 %v966_v5, %s3557_s16  ;;  %v1525_v5 = vsel %vm1493_vm5, 1, %v6163_v20  ;;  %v3351_v35 = vpop.eup %3350  ;;  %vm878_vm5 = vcmp.ge.s32.totalorder %v3729_v8, %v4467_v19 }
 0x2d3   : > { %v2612_v0 = vadd.f32 1.0, %v3351_v35 }
 0x2d5   : > { %3352 = vrcp.f32 %v2612_v0  ;;  %vm2618_vm2 = vweird.f32 %v2612_v0  ;;  %v2622_v17 = vand.u32 2147483647, %v2612_v0 }
 0x2da   : > { %1594 = vrot.lane.b32.xlu0 %v1534_v22, %s3557_s16  ;;  %v967_v22 = vsel %vm935_vm6, 1, %v6163_v20  ;;  %vm1038_vm6 = vcmp.ne.s32.totalorder %v5172_v14, 0 }
 0x2db   : > { %v3353_v46 = vpop.eup %3352  ;;  %vm1070_vm10 = vmand %vm878_vm5, %vm1038_vm6  ;;  %vm886_vm6 = vcmp.ge.s32.totalorder %v3729_v8, %v4546_v38 }
 0x2dc   : > { %v1102_v7 = vsel %vm1070_vm10, 1, %v6163_v20  ;;  %vm1642_vm5 = vmand %vm1450_vm12, %vm1610_vm1 }
 0x2e2   : > { %1017 = vrot.lane.b32.xlu0 %v963_v48, %s3557_s16  ;;  %v964_v48 = vsel %vm932_vm9, 1, %v6163_v20  ;;  %vm2619_vm9 = vweird.f32 %v3353_v46 }
 0x2e3   : > { %vm2620_vm15 = vmor %vm2618_vm2, %vm2619_vm9  ;;  %vm881_vm2 = vcmp.ge.s32.totalorder %v3712_v2, %v4510_v52  ;;  %vm1046_vm9 = vcmp.ne.s32.totalorder %v5203_v25, 0 }
 0x2e4   : > { %vm1078_vm12 = vmand %vm886_vm6, %vm1046_vm9  ;;  %vm880_vm9 = vcmp.ge.s32.totalorder %v3839_v44, %v4467_v19  ;;  %v5462_v19 = vpop.permute.xlu2 %1134 }
 0x2e5   : > { %v1110_v25 = vsel %vm1078_vm12, 1, %v6163_v20  ;;  %vm1444_vm12 = vcmp.ge.s32.totalorder %v3779_v26, %v4452_v11 }
 0x2ea   : > { %1576 = vrot.lane.b32.xlu0 %v1525_v5, %s3557_s16  ;;  %v2614_v5 = vmul.f32 %v3353_v46, %v2612_v0 }
 0x2ec   : > { %v2615_v35 = vsub.f32 1.0, %v2614_v5 }
 0x2ee   : > { %v2616_v3 = vmul.f32 %v3353_v46, %v2615_v35 }
 0x2f2   : > { %1025 = vrot.lane.b32.xlu0 %v967_v22, %s3557_s16  ;;  %v1670_v22 = vsel %vm1638_vm4, 1, %v6163_v20  ;;  %vm2623_vm4 = vcmp.eq.f32.partialorder %v2622_v17, 8.507059e+37 }
 0x2fa   : > { %1019 = vrot.lane.b32.xlu0 %v964_v48, %s3557_s16  ;;  %v2617_v48 = vadd.f32 %v3353_v46, %v2616_v3 }
 0x2fc   : > { %v2621_v5 = vsel %vm2620_vm15, %v3353_v46, %v2617_v48  ;;  %vm1041_vm15 = vcmp.ne.s32.totalorder %v5109_v12, 0 }
 0x2fd   : > { %vm1073_vm10 = vmand %vm881_vm2, %vm1041_vm15  ;;  %vm1454_vm2 = vcmp.ge.s32.totalorder %v3712_v2, %v4585_v59  ;;  %vm1614_vm15 = vcmp.ne.s32.totalorder %v5215_v23, 0 }
 0x302   : > { %1027 = vrot.lane.b32.xlu0 %v968_v53, %s3557_s16  ;;  %v2624_v53 = vand.u32 2147483648, %v2612_v0  ;;  %v1674_v0 = vsel %vm1642_vm5, 1, %v6163_v20  ;;  %vm1451_vm5 = vcmp.ge.s32.totalorder %v3729_v8, %v4502_v47 }
 0x303   : > { %vm1643_vm6 = vmand %vm1451_vm5, %vm1611_vm8  ;;  %vm883_vm8 = vcmp.ge.s32.totalorder %v3779_v26, %v4510_v52  ;;  %vm1043_vm5 = vcmp.ne.s32.totalorder %v5227_v21, 0 }
 0x304   : > { %v2625_v61 = vor.u32 1.1754944e-38, %v2624_v53  ;;  %v1675_v46 = vsel %vm1643_vm6, 1, %v6163_v20  ;;  %vm1075_vm6 = vmand %vm883_vm8, %vm1043_vm5  ;;  %vm1460_vm5 = vcmp.ge.s32.totalorder %v3779_v26, %v4721_v29 }
 0x305   : > { %v1107_v21 = vsel %vm1075_vm6, 1, %v6163_v20  ;;  %vm889_vm6 = vcmp.ge.s32.totalorder %v3712_v2, %v4679_v55 }
 0x306   : > { %v5427_v14 = vsel %vm2623_vm4, %v2625_v61, %v2621_v5  ;;  %vm1456_vm4 = vcmp.ge.s32.totalorder %v3779_v26, %v4585_v59  ;;  %v1105_v61 = vsel %vm1073_vm10, 1, %v6163_v20  ;;  %v5476_v5 = vpop.permute.xlu2 %1149 }
 0x30a   : > { %1711 = vperm.xlu0 %3345, %v1670_v22  }
 0x312   : > { %1137 = vperm.xlu0 %3345, %v1102_v7  }
 0x314   : > { %v2632_v35 = vpop.permute.xlu0 %2631 }
 0x315   : > { %v2634_v3 = vmul.f32 %v2632_v35, %v5427_v14 }
 0x317   : > { %2636 = vrot.lane.b32.xlu1 %v2634_v3, %s3559_s22 }
 0x31a   : > { %1723 = vperm.xlu0 %3345, %v1674_v0  }
 0x31c   : > { %v1567_v33 = vpop.permute.xlu0 %1566 }
 0x31d   : > { %vm1616_vm1 = vcmp.ne.s32.totalorder %v1567_v33, 0 }
 0x31e   : > { %vm1648_vm14 = vmand %vm1456_vm4, %vm1616_vm1  ;;  %vm1604_vm1 = vcmp.ne.s32.totalorder %v5176_v18, 0 }
 0x31f   : > { %v1680_v12 = vsel %vm1648_vm14, 1, %v6163_v20  ;;  %1146 = vperm.xlu1 %3343, %v1105_v61   ;;  %vm1646_vm14 = vmand %vm1454_vm2, %vm1614_vm15  ;;  %vm897_vm15 = vcmp.ge.s32.totalorder %v3712_v2, %v4919_v16 }
 0x320   : > { %1741 = vperm.xlu2 %3344, %v1680_v12   ;;  %v1678_v23 = vsel %vm1646_vm14, 1, %v6163_v20  ;;  %vm1636_vm2 = vmand %vm1444_vm12, %vm1604_vm1  ;;  %vm1455_vm14 = vcmp.ge.s32.totalorder %v3729_v8, %v4585_v59  ;;  %vm1452_vm12 = vcmp.ge.s32.totalorder %v3779_v26, %v4502_v47  ;;  %vm1612_vm1 = vcmp.ne.s32.totalorder %v5242_v49, 0 }
 0x321   : > { %v1668_v18 = vsel %vm1636_vm2, 1, %v6163_v20  ;;  %vm1644_vm2 = vmand %vm1452_vm12, %vm1612_vm1  ;;  %vm888_vm1 = vcmp.ge.s32.totalorder %v3839_v44, %v4546_v38 }
 0x322   : > { %1161 = vperm.xlu0 %3345, %v1110_v25   ;;  %v1676_v49 = vsel %vm1644_vm2, 1, %v6163_v20  ;;  %vm1458_vm2 = vcmp.ge.s32.totalorder %v3712_v2, %v4721_v29 }
 0x324   : > { %v980_v17 = vpop.permute.xlu0 %979 }
 0x325   : > { %vm1040_vm10 = vcmp.ne.s32.totalorder %v980_v17, 0 }
 0x326   : > { %vm1072_vm4 = vmand %vm880_vm9, %vm1040_vm10 }
 0x327   : > { %v1104_v43 = vsel %vm1072_vm4, 1, %v6163_v20  ;;  %1726 = vperm.xlu1 %3343, %v1675_v46   ;;  %vm1615_vm4 = vcmp.ne.s32.totalorder %v5195_v32, 0 }
 0x328   : > { %1143 = vperm.xlu2 %3344, %v1104_v43   ;;  %vm1647_vm8 = vmand %vm1455_vm14, %vm1615_vm4  ;;  %vm887_vm14 = vcmp.ge.s32.totalorder %v3779_v26, %v4546_v38  ;;  %vm1047_vm4 = vcmp.ne.s32.totalorder %v5256_v57, 0  ;;  %v5493_v57 = vpop.permute.xlu2 %1158 }
 0x329   : > { %v1679_v7 = vsel %vm1647_vm8, 1, %v6163_v20  ;;  %vm1079_vm8 = vmand %vm887_vm14, %vm1047_vm4  ;;  %vm902_vm4 = vcmp.ge.s32.totalorder %v3729_v8, %v5093_v39 }
 0x32a   : > { %1735 = vperm.xlu0 %3345, %v1678_v23   ;;  %v1111_v0 = vsel %vm1079_vm8, 1, %v6163_v20  ;;  %vm893_vm8 = vcmp.ge.s32.totalorder %v3712_v2, %v4770_v37 }
 0x32c   : > { %v1014_v22 = vpop.permute.xlu0 %1013 }
 0x32d   : > { %vm1057_vm9 = vcmp.ne.s32.totalorder %v1014_v22, 0 }
 0x32e   : > { %vm1089_vm10 = vmand %vm897_vm15, %vm1057_vm9 }
 0x32f   : > { %v1121_v48 = vsel %vm1089_vm10, 1, %v6163_v20  ;;  %1705 = vperm.xlu1 %3343, %v1668_v18   ;;  %vm1049_vm10 = vcmp.ne.s32.totalorder %v5207_v51, 0 }
 0x330   : > { %1194 = vperm.xlu2 %3344, %v1121_v48   ;;  %vm1081_vm12 = vmand %vm889_vm6, %vm1049_vm10  ;;  %vm1445_vm6 = vcmp.ge.s32.totalorder %v3839_v44, %v4452_v11  ;;  %vm1605_vm10 = vcmp.ne.s32.totalorder %v5264_v34, 0  ;;  %v5510_v34 = vpop.permute.xlu2 %1717 }
 0x331   : > { %v1113_v3 = vsel %vm1081_vm12, 1, %v6163_v20  ;;  %vm1637_vm12 = vmand %vm1445_vm6, %vm1605_vm10  ;;  %vm1470_vm10 = vcmp.ge.s32.totalorder %v3712_v2, %v5125_v31 }
 0x332   : > { %1152 = vperm.xlu0 %3345, %v1107_v21   ;;  %v1669_v11 = vsel %vm1637_vm12, 1, %v6163_v20  ;;  %vm1449_vm12 = vcmp.ge.s32.totalorder %v3839_v44, %v4448_v4  ;;  %v1715_v21 = vpop.permute.xlu1 %1714 }
 0x334   : > { %v1575_v53 = vpop.permute.xlu0 %1574 }
 0x335   : > { %vm1620_vm15 = vcmp.ne.s32.totalorder %v1575_v53, 0 }
 0x336   : > { %vm1652_vm9 = vmand %vm1460_vm5, %vm1620_vm15 }
 0x337   : > { %v1684_v32 = vsel %vm1652_vm9, 1, %v6163_v20  ;;  %1738 = vperm.xlu1 %3343, %v1679_v7   ;;  %vm1618_vm9 = vcmp.ne.s32.totalorder %v5219_v30, 0 }
 0x338   : > { %1753 = vperm.xlu2 %3344, %v1684_v32   ;;  %vm1650_vm14 = vmand %vm1458_vm2, %vm1618_vm9  ;;  %vm1462_vm2 = vcmp.ge.s32.totalorder %v3712_v2, %v4822_v40  ;;  %vm1622_vm9 = vcmp.ne.s32.totalorder %v5271_v50, 0  ;;  %v5525_v25 = vpop.permute.xlu2 %1140 }
 0x339   : > { %v1682_v30 = vsel %vm1650_vm14, 1, %v6163_v20  ;;  %vm1654_vm14 = vmand %vm1462_vm2, %vm1622_vm9  ;;  %vm899_vm9 = vcmp.ge.s32.totalorder %v3779_v26, %v4919_v16 }
 0x33a   : > { %1729 = vperm.xlu0 %3345, %v1676_v49   ;;  %v1686_v50 = vsel %vm1654_vm14, 1, %v6163_v20  ;;  %vm1463_vm14 = vcmp.ge.s32.totalorder %v3729_v8, %v4822_v40  ;;  %v5592_v49 = vld [vmem:[%s3688_s25 + $0x30] sm:$0xff] }
 0x33c   : > { %v996_v35 = vpop.permute.xlu0 %995 }
 0x33d   : > { %vm1048_vm5 = vcmp.ne.s32.totalorder %v996_v35, 0 }
 0x33e   : > { %vm1080_vm15 = vmand %vm888_vm1, %vm1048_vm5 }
 0x33f   : > { %v1112_v51 = vsel %vm1080_vm15, 1, %v6163_v20  ;;  %1170 = vperm.xlu1 %3343, %v1113_v3   ;;  %vm1053_vm15 = vcmp.ne.s32.totalorder %v5231_v9, 0  ;;  %v3392_v3 = vld [vmem:[%s3688_s25 + $0x20] sm:$0xff] }
 0x340   : > { %1167 = vperm.xlu2 %3344, %v1112_v51   ;;  %vm1085_vm6 = vmand %vm893_vm8, %vm1053_vm15  ;;  %vm884_vm8 = vcmp.ge.s32.totalorder %v3839_v44, %v4510_v52  ;;  %vm1044_vm15 = vcmp.ne.s32.totalorder %v5278_v60, 0  ;;  %v5539_v43 = vpop.permute.xlu2 %1173 }
 0x341   : > { %v1117_v9 = vsel %vm1085_vm6, 1, %v6163_v20  ;;  %vm1076_vm6 = vmand %vm884_vm8, %vm1044_vm15  ;;  %vm1461_vm15 = vcmp.ge.s32.totalorder %v3839_v44, %v4721_v29 }
 0x342   : > { %1164 = vperm.xlu0 %3345, %v1111_v0   ;;  %v1108_v52 = vsel %vm1076_vm6, 1, %v6163_v20  ;;  %vm891_vm6 = vcmp.ge.s32.totalorder %v3779_v26, %v4679_v55 }
 0x344   : > { %v1024_v38 = vpop.permute.xlu0 %1023 }
 0x345   : > { %vm1062_vm1 = vcmp.ne.s32.totalorder %v1024_v38, 0 }
 0x346   : > { %vm1094_vm5 = vmand %vm902_vm4, %vm1062_vm1 }
 0x347   : > { %v1126_v33 = vsel %vm1094_vm5, 1, %v6163_v20  ;;  %1747 = vperm.xlu1 %3343, %v1682_v30   ;;  %vm1609_vm5 = vcmp.ne.s32.totalorder %v5244_v36, 0 }
 0x348   : > { %1209 = vperm.xlu2 %3344, %v1126_v33   ;;  %vm1641_vm2 = vmand %vm1449_vm12, %vm1609_vm5  ;;  %vm898_vm12 = vcmp.ge.s32.totalorder %v3729_v8, %v4919_v16  ;;  %vm1058_vm5 = vcmp.ne.s32.totalorder %v5285_v10, 0 }
 0x349   : > { %v1673_v4 = vsel %vm1641_vm2, 1, %v6163_v20  ;;  %vm1090_vm2 = vmand %vm898_vm12, %vm1058_vm5  ;;  %vm903_vm5 = vcmp.ge.s32.totalorder %v3779_v26, %v5093_v39 }
 0x34a   : > { %1708 = vperm.xlu0 %3345, %v1669_v11   ;;  %v1122_v10 = vsel %vm1090_vm2, 1, %v6163_v20  ;;  %vm1453_vm2 = vcmp.ge.s32.totalorder %v3839_v44, %v4502_v47 }
 0x34c   : > { %v1595_v61 = vpop.permute.xlu0 %1594 }
 0x34d   : > { %vm1630_vm4 = vcmp.ne.s32.totalorder %v1595_v61, 0  ;;  %v6187_v61 = vld [vmem:[#allocation23_spill] sm:$0xff] }
 0x34e   : > { %vm1662_vm1 = vmand %vm1470_vm10, %vm1630_vm4 }
 0x34f   : > { %v1694_v12 = vsel %vm1662_vm1, 1, %v6163_v20  ;;  %1182 = vperm.xlu1 %3343, %v1117_v9   ;;  %vm1623_vm1 = vcmp.ne.s32.totalorder %v5258_v28, 0 }
 0x350   : > { %1783 = vperm.xlu2 %3344, %v1694_v12   ;;  %vm1655_vm8 = vmand %vm1463_vm14, %vm1623_vm1  ;;  %vm1466_vm14 = vcmp.ge.s32.totalorder %v3712_v2, %v4951_v24  ;;  %vm1626_vm1 = vcmp.ne.s32.totalorder %v5292_v41, 0  ;;  %v5556_v41 = vpop.permute.xlu2 %1750  ;;  %v5613_v12 = vld [vmem:[%s3688_s25 + $0x10] sm:$0xff] }
 0x351   : > { %v1687_v46 = vsel %vm1655_vm8, 1, %v6163_v20  ;;  %vm1658_vm8 = vmand %vm1466_vm14, %vm1626_vm1  ;;  %vm900_vm1 = vcmp.ge.s32.totalorder %v3839_v44, %v4919_v16 }
 0x352   : > { %1759 = vperm.xlu0 %3345, %v1686_v50   ;;  %v1690_v22 = vsel %vm1658_vm8, 1, %v6163_v20  ;;  %vm1467_vm8 = vcmp.ge.s32.totalorder %v3729_v8, %v4951_v24 }
 0x354   : > { %v1018_v17 = vpop.permute.xlu0 %1017 }
 0x355   : > { %vm1059_vm10 = vcmp.ne.s32.totalorder %v1018_v17, 0 }
 0x356   : > { %vm1091_vm4 = vmand %vm899_vm9, %vm1059_vm10 }
 0x357   : > { %v1123_v36 = vsel %vm1091_vm4, 1, %v6163_v20  ;;  %1720 = vperm.xlu1 %3343, %v1673_v4   ;;  %vm1051_vm4 = vcmp.ne.s32.totalorder %v5266_v27, 0  ;;  %v5623_v4 = vld [vmem:[%s3688_s25 + $0x18] sm:$0xff] }
 0x358   : > { %1200 = vperm.xlu2 %3344, %v1123_v36   ;;  %vm1083_vm12 = vmand %vm891_vm6, %vm1051_vm4  ;;  %vm895_vm6 = vcmp.ge.s32.totalorder %v3779_v26, %v4770_v37  ;;  %vm1055_vm4 = vcmp.ne.s32.totalorder %v5299_v15, 0  ;;  %v5573_v16 = vpop.permute.xlu2 %1185 }
 0x359   : > { %v1115_v23 = vsel %vm1083_vm12, 1, %v6163_v20  ;;  %vm1087_vm12 = vmand %vm895_vm6, %vm1055_vm4  ;;  %vm904_vm4 = vcmp.ge.s32.totalorder %v3839_v44, %v5093_v39 }
 0x35a   : > { %1155 = vperm.xlu0 %3345, %v1108_v52   ;;  %v1119_v15 = vsel %vm1087_vm12, 1, %v6163_v20 }
 0x35c   : > { %v1577_v60 = vpop.permute.xlu0 %1576 }
 0x35d   : > { %vm1621_vm9 = vcmp.ne.s32.totalorder %v1577_v60, 0  ;;  %v2629_v60 = vmul.f32 0.0, %v5427_v14 }
 0x35e   : > { %vm1653_vm10 = vmand %vm1461_vm15, %vm1621_vm9 }
 0x35f   : > { %v1685_v28 = vsel %vm1653_vm10, 1, %v6163_v20  ;;  %1762 = vperm.xlu1 %3343, %v1687_v46   ;;  %vm1613_vm10 = vcmp.ne.s32.totalorder %v5273_v63, 0 }
 0x360   : > { %1756 = vperm.xlu2 %3344, %v1685_v28   ;;  %vm1645_vm14 = vmand %vm1453_vm2, %vm1613_vm10  ;;  %vm1457_vm2 = vcmp.ge.s32.totalorder %v3839_v44, %v4585_v59  ;;  %vm1617_vm10 = vcmp.ne.s32.totalorder %v5306_v1, 0 }
 0x361   : > { %v1677_v47 = vsel %vm1645_vm14, 1, %v6163_v20  ;;  %vm1649_vm14 = vmand %vm1457_vm2, %vm1617_vm10  ;;  %vm1471_vm2 = vcmp.ge.s32.totalorder %v3729_v8, %v5125_v31  ;;  %vm1631_vm10 = vcmp.ne.s32.totalorder %v5313_v62, 0 }
 0x362   : > { %1197 = vperm.xlu0 %3345, %v1122_v10   ;;  %v1681_v59 = vsel %vm1649_vm14, 1, %v6163_v20  ;;  %vm1663_vm14 = vmand %vm1471_vm2, %vm1631_vm10  ;;  %vm1231_vm2 = vcmp.eq.s32.totalorder %v5525_v25, 1 }
 0x363   : > { %v1695_v30 = vsel %vm1663_vm14, 1, %v6163_v20  ;;  %v1263_v50 = vsel %vm1231_vm2, %v5613_v12, -3.4028235e+38  ;;  %vm892_vm14 = vcmp.ge.s32.totalorder %v3839_v44, %v4679_v55 }
 0x364   : > { %v1026_v29 = vpop.permute.xlu0 %1025 }
 0x365   : > { %vm1063_vm15 = vcmp.ne.s32.totalorder %v1026_v29, 0 }
 0x366   : > { %vm1095_vm9 = vmand %vm903_vm5, %vm1063_vm15 }
 0x367   : > { %v1127_v27 = vsel %vm1095_vm9, 1, %v6163_v20  ;;  %1176 = vperm.xlu1 %3343, %v1115_v23   ;;  %vm1627_vm9 = vcmp.ne.s32.totalorder %v5280_v6, 0 }
 0x368   : > { %1212 = vperm.xlu2 %3344, %v1127_v27   ;;  %vm1659_vm6 = vmand %vm1467_vm8, %vm1627_vm9  ;;  %vm1799_vm8 = vcmp.eq.s32.totalorder %v1715_v21, 1 }
 0x369   : > { %v1691_v6 = vsel %vm1659_vm6, 1, %v6163_v20  ;;  %vm1800_vm6 = vcmp.eq.s32.totalorder %v5510_v34, 1 }
 0x36a   : > { %1771 = vperm.xlu0 %3345, %v1690_v22   ;;  %v1832_v35 = vsel %vm1800_vm6, %v5592_v49, -3.4028235e+38 }
 0x36b   : > { %v1874_v33 = vsel %vm719_vm7, %v1832_v35, -inf }
 0x36c   : > { %v1020_v18 = vpop.permute.xlu0 %1019 }
 0x36d   : > { %vm1060_vm5 = vcmp.ne.s32.totalorder %v1020_v18, 0 }
 0x36e   : > { %vm1092_vm15 = vmand %vm900_vm1, %vm1060_vm5  ;;  %vm901_vm5 = vcmp.ge.s32.totalorder %v3712_v2, %v5093_v39  ;;  %v3390_v39 = vld [vmem:[%s3688_s25 + $0x28] sm:$0xff] }
 0x36f   : > { %v1124_v63 = vsel %vm1092_vm15, 1, %v6163_v20  ;;  %1732 = vperm.xlu1 %3343, %v1677_v47   ;;  %vm1061_vm15 = vcmp.ne.s32.totalorder %v5287_v13, 0  ;;  %v1831_v7 = vsel %vm1799_vm8, %v3390_v39, -3.4028235e+38  ;;  %vm905_vm8 = vcmp.ge.s32.totalorder %v3712_v2, %v5163_v58  ;;  %v6189_v47 = vld [vmem:[#allocation21_spill] sm:$0xff] }
 0x370   : > { %1203 = vperm.xlu2 %3344, %v1124_v63   ;;  %vm1093_vm9 = vmand %vm901_vm5, %vm1061_vm15  ;;  %v1872_v0 = vsel %vm719_vm7, %v1831_v7, -inf  ;;  %vm1229_vm5 = vcmp.eq.s32.totalorder %v5462_v19, 1 }
 0x371   : > { %v1125_v32 = vsel %vm1093_vm9, 1, %v6163_v20  ;;  %vm1065_vm9 = vcmp.ne.s32.totalorder %v6187_v61, 0 }
 0x372   : > { %1188 = vperm.xlu0 %3345, %v1119_v15  }
 0x374   : > { %v1028_v48 = vpop.permute.xlu0 %1027 }
 0x375   : > { %vm1064_vm1 = vcmp.ne.s32.totalorder %v1028_v48, 0 }
 0x376   : > { %vm1096_vm12 = vmand %vm904_vm4, %vm1064_vm1  ;;  %vm1464_vm1 = vcmp.ge.s32.totalorder %v3779_v26, %v4822_v40 }
 0x377   : > { %v1128_v53 = vsel %vm1096_vm12, 1, %v6163_v20  ;;  %1774 = vperm.xlu1 %3343, %v1691_v6   ;;  %vm1624_vm12 = vcmp.ne.s32.totalorder %v5294_v56, 0  ;;  %v1261_v56 = vsel %vm1229_vm5, %v5364_v42, -3.4028235e+38  ;;  %v6188_v42 = vld [vmem:[#allocation20_spill] sm:$0xff]  ;;  %vm1234_vm5 = vcmp.eq.s32.totalorder %v5476_v5, 1 }
 0x378   : > { %1215 = vperm.xlu2 %3344, %v1128_v53   ;;  %vm1656_vm15 = vmand %vm1464_vm1, %vm1624_vm12  ;;  %v1293_v2 = vsel %vm719_vm7, %v1261_v56, -inf  ;;  %vm1052_vm1 = vcmp.ne.s32.totalorder %v6188_v42, 0  ;;  %v1266_v55 = vsel %vm1234_vm5, %v3390_v39, -3.4028235e+38  ;;  %v3395_v5 = vld [vmem:[%s3688_s25 + $0x40] sm:$0xff]  ;;  %v3396_v39 = vld [vmem:[%s3688_s25 + $0x48] sm:$0xff]  ;;  %vm896_vm5 = vcmp.ge.s32.totalorder %v3839_v44, %v4770_v37 }
 0x379   : > { %v1688_v19 = vsel %vm1656_vm15, 1, %v6163_v20  ;;  %vm1084_vm12 = vmand %vm892_vm14, %vm1052_vm1  ;;  %vm906_vm15 = vcmp.ge.s32.totalorder %v3729_v8, %v5163_v58  ;;  %v1307_v8 = vsel %vm719_vm7, %v1266_v55, -inf  ;;  %v6194_v42 = vld [vmem:[#allocation34_spill] sm:$0xff] }
 0x37a   : > { %1744 = vperm.xlu0 %3345, %v1681_v59   ;;  %v5583_v1 = vpop.permute.xlu2 %1741  ;;  %v1116_v18 = vsel %vm1084_vm12, 1, %v6163_v20 }
 0x37c   : > { %v1712_v13 = vpop.permute.xlu0 %1711 }
 0x37d   : > { %vm1798_vm4 = vcmp.eq.s32.totalorder %v1712_v13, 1 }
 0x37e   : > { %v1830_v51 = vsel %vm1798_vm4, %v3392_v3, -3.4028235e+38  ;;  %vm1097_vm4 = vmand %vm905_vm8, %vm1065_vm9  ;;  %vm1066_vm8 = vcmp.ne.s32.totalorder %v6189_v47, 0  ;;  %vm1237_vm9 = vcmp.eq.s32.totalorder %v5493_v57, 1  ;;  %v5707_v47 = vld [vmem:[%s3688_s25 + $0x70] sm:$0xff] }
 0x37f   : > { %v1871_v38 = vsel %vm719_vm7, %v1830_v51, -inf  ;;  %1206 = vperm.xlu1 %3343, %v1125_v32   ;;  %v1129_v46 = vsel %vm1097_vm4, 1, %v6163_v20  ;;  %vm1628_vm4 = vcmp.ne.s32.totalorder %v5323_v54, 0  ;;  %v1269_v6 = vsel %vm1237_vm9, %v3395_v5, -3.4028235e+38  ;;  %v6190_v32 = vld [vmem:[#allocation22_spill] sm:$0xff] }
 0x380   : > { %v1873_v62 = vmax.f32 %v1871_v38, %v1872_v0  ;;  %v5657_v54 = vsel %vm719_vm7, %v1269_v6, -inf }
 0x382   : > { %1786 = vperm.xlu0 %3345, %v1695_v30   ;;  %v1144_v11 = vpop.permute.xlu2 %1143  ;;  %v5604_v34 = vmax.f32 %v1873_v62, %v1874_v33  ;;  %v6191_v62 = vld [vmem:[#allocation29_spill] sm:$0xff] }
 0x383   : > { %vm1232_vm10 = vcmp.eq.s32.totalorder %v1144_v11, 1 }
 0x384   : > { %v1138_v9 = vpop.permute.xlu0 %1137  ;;  %v1264_v36 = vsel %vm1232_vm10, %v5623_v4, -3.4028235e+38  ;;  %vm1098_vm10 = vmand %vm906_vm15, %vm1066_vm8  ;;  %vm1056_vm15 = vcmp.ne.s32.totalorder %v6190_v32, 0 }
 0x385   : > { %vm1230_vm6 = vcmp.eq.s32.totalorder %v1138_v9, 1  ;;  %v1298_v23 = vsel %vm719_vm7, %v1264_v36, -inf  ;;  %v1130_v59 = vsel %vm1098_vm10, 1, %v6163_v20  ;;  %vm1088_vm9 = vmand %vm896_vm5, %vm1056_vm15  ;;  %vm1625_vm10 = vcmp.ne.s32.totalorder %v6191_v62, 0  ;;  %v6195_v36 = vld [vmem:[#allocation33_spill] sm:$0xff] }
 0x386   : > { %v1262_v17 = vsel %vm1230_vm6, %v5359_v45, -3.4028235e+38  ;;  %v1296_v45 = vsel %vm719_vm7, %v1263_v50, -inf  ;;  %vm1468_vm6 = vcmp.ge.s32.totalorder %v3779_v26, %v4951_v24  ;;  %v1120_v56 = vsel %vm1088_vm9, 1, %v6163_v20 }
 0x387   : > { %v1294_v25 = vsel %vm719_vm7, %v1262_v17, -inf  ;;  %1765 = vperm.xlu1 %3343, %v1688_v19   ;;  %vm1660_vm12 = vmand %vm1468_vm6, %vm1628_vm4  ;;  %vm1472_vm4 = vcmp.ge.s32.totalorder %v3779_v26, %v5125_v31  ;;  %vm907_vm5 = vcmp.ge.s32.totalorder %v3779_v26, %v5163_v58  ;;  %v6193_v17 = vld [vmem:[#allocation31_spill] sm:$0xff] }
 0x388   : > { %v1295_v52 = vmax.f32 %v1293_v2, %v1294_v25  ;;  %v1692_v0 = vsel %vm1660_vm12, 1, %v6163_v20  ;;  %vm1067_vm15 = vcmp.ne.s32.totalorder %v6193_v17, 0 }
 0x389   : > { %v2637_v28 = vpop.permute.xlu1 %2636 }
 0x38a   : > { %v1297_v10 = vmax.f32 %v1295_v52, %v1296_v45  ;;  %v5629_v29 = vadd.f32 %v2637_v28, %v2629_v60  ;;  %1218 = vperm.xlu0 %3345, %v1129_v46   ;;  %v5675_v11 = vpop.permute.xlu2 %1194  ;;  %v6196_v52 = vmax.f32 %v6194_v42, %v6195_v36  ;;  %v6197_v28 = vld [vmem:[#allocation25_spill] sm:$0xff] }
 0x38c   : > { %v5635_v27 = vmax.f32 %v1297_v10, %v1298_v23  ;;  %3354 = vtanh.f32 %v5629_v29  ;;  %v1724_v22 = vpop.permute.xlu0 %1723  ;;  %v3397_v23 = vld [vmem:[%s3688_s25 + $0x60] sm:$0xff] }
 0x38d   : > { %vm1802_vm1 = vcmp.eq.s32.totalorder %v1724_v22, 1 }
 0x38f   : > { %1179 = vperm.xlu1 %3343, %v1116_v18  }
 0x391   : > { %v1147_v63 = vpop.permute.xlu1 %1146 }
 0x392   : > { %v3355_v15 = vpop.eup %3354  ;;  %vm1233_vm2 = vcmp.eq.s32.totalorder %v1147_v63, 1  ;;  %v5695_v26 = vpop.permute.xlu2 %1753  ;;  %v3399_v63 = vld [vmem:[%s3688_s25 + $0x68] sm:$0xff] }
 0x393   : > { %v1265_v48 = vsel %vm1233_vm2, %v3392_v3, -3.4028235e+38  ;;  %2642 = vrot.lane.b32.xlu0 %v3355_v15, %s3559_s22  ;;  %v1834_v3 = vsel %vm1802_vm1, %v3395_v5, -3.4028235e+38  ;;  %vm1465_vm2 = vcmp.ge.s32.totalorder %v3839_v44, %v4822_v40  ;;  %v6192_v40 = vld [vmem:[#allocation24_spill] sm:$0xff] }
 0x394   : > { %v1306_v21 = vsel %vm719_vm7, %v1265_v48, -inf  ;;  %v1162_v57 = vpop.permute.xlu0 %1161  ;;  %v5672_v37 = vsel %vm719_vm7, %v1834_v3, -inf  ;;  %vm1657_vm6 = vmand %vm1465_vm2, %vm1625_vm10  ;;  %vm1469_vm10 = vcmp.ge.s32.totalorder %v3839_v44, %v4951_v24 }
 0x395   : > { %v1308_v53 = vmax.f32 %v1306_v21, %v1307_v8  ;;  %vm1238_vm14 = vcmp.eq.s32.totalorder %v1162_v57, 1  ;;  %v1689_v19 = vsel %vm1657_vm6, 1, %v6163_v20  ;;  %vm1099_vm2 = vmand %vm907_vm5, %vm1067_vm15  ;;  %vm1629_vm6 = vcmp.ne.s32.totalorder %v6197_v28, 0  ;;  %v3400_v57 = vld [vmem:[%s3688_s25 + $0x50] sm:$0xff] }
 0x396   : > { %v1270_v7 = vsel %vm1238_vm14, %v3396_v39, -3.4028235e+38  ;;  %vm1632_vm14 = vcmp.ne.s32.totalorder %v6192_v40, 0 }
 0x397   : > { %v5660_v13 = vsel %vm719_vm7, %v1270_v7, -inf  ;;  %1221 = vperm.xlu1 %3343, %v1130_v59   ;;  %vm1664_vm12 = vmand %vm1472_vm4, %vm1632_vm14  ;;  %vm1808_vm4 = vcmp.eq.s32.totalorder %v5583_v1, 1  ;;  %v6198_v1 = vld [vmem:[#allocation32_spill] sm:$0xff] }
 0x398   : > { %v1321_v35 = vmax.f32 %v5657_v54, %v5660_v13  ;;  %v1696_v46 = vsel %vm1664_vm12, 1, %v6163_v20  ;;  %v1840_v55 = vsel %vm1808_vm4, %v5707_v47, -3.4028235e+38  ;;  %vm1473_vm12 = vcmp.ge.s32.totalorder %v3839_v44, %v5125_v31 }
 0x399   : > { %v1727_v51 = vpop.permute.xlu1 %1726  ;;  %vm1633_vm5 = vcmp.ne.s32.totalorder %v6198_v1, 0  ;;  %v1900_v21 = vsel %vm719_vm7, %v1840_v55, -inf }
 0x39a   : > { %vm1803_vm8 = vcmp.eq.s32.totalorder %v1727_v51, 1  ;;  %v1168_v3 = vpop.permute.xlu2 %1167 }
 0x39b   : > { %v1835_v38 = vsel %vm1803_vm8, %v3396_v39, -3.4028235e+38  ;;  %1777 = vperm.xlu0 %3345, %v1692_v0   ;;  %v6199_v39 = vld [vmem:[#allocation30_spill] sm:$0xff] }
 0x39c   : > { %v1885_v30 = vsel %vm719_vm7, %v1835_v38, -inf  ;;  %v1736_v33 = vpop.permute.xlu0 %1735 }
 0x39d   : > { %v1886_v61 = vmax.f32 %v5672_v37, %v1885_v30  ;;  %vm1806_vm9 = vcmp.eq.s32.totalorder %v1736_v33, 1 }
 0x39e   : > { %v1838_v22 = vsel %vm1806_vm9, %v3397_v23, -3.4028235e+38  ;;  %vm1665_vm9 = vmand %vm1473_vm12, %vm1633_vm5  ;;  %vm1240_vm5 = vcmp.eq.s32.totalorder %v1168_v3, 1 }
 0x39f   : > { %1191 = vperm.xlu1 %3343, %v1120_v56   ;;  %v1897_v15 = vsel %vm719_vm7, %v1838_v22, -inf  ;;  %v1697_v51 = vsel %vm1665_vm9, 1, %v6163_v20  ;;  %v5744_v56 = vld [vmem:[%s3688_s25 + $0x88] sm:$0xff]  ;;  %v1300_v22 = vrot.slane %v5635_v27, 4 }
 0x3a1   : > { %v1706_v9 = vpop.permute.xlu1 %1705 }
 0x3a2   : > { %vm1796_vm1 = vcmp.eq.s32.totalorder %v1706_v9, 1 }
 0x3a3   : > { %v1828_v50 = vsel %vm1796_vm1, %v5613_v12, -3.4028235e+38  ;;  %1768 = vperm.xlu0 %3345, %v1689_v19   ;;  %vm1661_vm1 = vmand %vm1469_vm10, %vm1629_vm6  ;;  %vm1068_vm10 = vcmp.ne.s32.totalorder %v6199_v39, 0  ;;  %v5747_v19 = vpop.permute.xlu2 %1209 }
 0x3a4   : > { %v1861_v2 = vsel %vm719_vm7, %v1828_v50, -inf  ;;  %v1153_v25 = vpop.permute.xlu0 %1152  ;;  %v1693_v6 = vsel %vm1661_vm1, 1, %v6163_v20  ;;  %vm1811_vm1 = vcmp.eq.s32.totalorder %v5556_v41, 1 }
 0x3a5   : > { %v5691_v60 = vmax.f32 %v6196_v52, %v1861_v2  ;;  %vm1235_vm8 = vcmp.eq.s32.totalorder %v1153_v25, 1  ;;  %v1843_v40 = vsel %vm1811_vm1, %v5744_v56, -3.4028235e+38 }
 0x3a6   : > { %v1267_v12 = vsel %vm1235_vm8, %v5592_v49, -3.4028235e+38  ;;  %v1131_v49 = vsel %vm1099_vm2, 1, %v6163_v20  ;;  %vm1242_vm8 = vcmp.eq.s32.totalorder %v5539_v43, 1  ;;  %vm908_vm2 = vcmp.ge.s32.totalorder %v3839_v44, %v5163_v58 }
 0x3a7   : > { %v1309_v45 = vsel %vm719_vm7, %v1267_v12, -inf  ;;  %1789 = vperm.xlu1 %3343, %v1696_v46   ;;  %v1274_v32 = vsel %vm1242_vm8, %v3399_v63, -3.4028235e+38  ;;  %vm1100_vm4 = vmand %vm908_vm2, %vm1068_vm10  ;;  %v5754_v50 = vsel %vm719_vm7, %v1843_v40, -inf  ;;  %vm1249_vm10 = vcmp.eq.s32.totalorder %v5675_v11, 1 }
 0x3a8   : > { %v5702_v10 = vmax.f32 %v1308_v53, %v1309_v45  ;;  %v5730_v38 = vsel %vm719_vm7, %v1274_v32, -inf  ;;  %v1132_v37 = vsel %vm1100_vm4, 1, %v6163_v20  ;;  %v5750_v20 = vld [vmem:[%s3688_s25 + $0x80] sm:$0xff]  ;;  %vm1812_vm4 = vcmp.eq.s32.totalorder %v5695_v26, 1 }
 0x3a9   : > { %v1739_v18 = vpop.permute.xlu1 %1738  ;;  %v3405_v32 = vld [vmem:[%s3688_s25 + $0xa0] sm:$0xff] }
 0x3aa   : > { %vm1807_vm14 = vcmp.eq.s32.totalorder %v1739_v18, 1  ;;  %v1281_v40 = vsel %vm1249_vm10, %v3405_v32, -3.4028235e+38  ;;  %vm6205_vm10 = vcmask 1044484  }
 0x3ab   : > { %v1839_v24 = vsel %vm1807_vm14, %v3399_v63, -3.4028235e+38  ;;  %1224 = vperm.xlu0 %3345, %v1131_v49  }
 0x3ac   : > { %v1898_v48 = vsel %vm719_vm7, %v1839_v24, -inf  ;;  %v1730_v8 = vpop.permute.xlu0 %1729 }
 0x3ad   : > { %v1899_v5 = vmax.f32 %v1897_v15, %v1898_v48  ;;  %vm1804_vm15 = vcmp.eq.s32.totalorder %v1730_v8, 1 }
 0x3ae   : > { %v1836_v53 = vsel %vm1804_vm15, %v3400_v57, -3.4028235e+38 }
 0x3af   : > { %v1887_v31 = vsel %vm719_vm7, %v1836_v53, -inf  ;;  %1780 = vperm.xlu1 %3343, %v1693_v6   ;;  %v5721_v59 = vmax.f32 %v1899_v5, %v1900_v21 }
 0x3b0   : > { %v5726_v7 = vmax.f32 %v1886_v61, %v1887_v31 }
 0x3b1   : > { %v1171_v43 = vpop.permute.xlu1 %1170 }
 0x3b2   : > { %vm1241_vm6 = vcmp.eq.s32.totalorder %v1171_v43, 1 }
 0x3b3   : > { %v1273_v0 = vsel %vm1241_vm6, %v3397_v23, -3.4028235e+38  ;;  %1792 = vperm.xlu0 %3345, %v1697_v51   ;;  %v5771_v23 = vpop.permute.xlu2 %1783 }
 0x3b4   : > { %v5733_v62 = vsel %vm719_vm7, %v1273_v0, -inf  ;;  %v1165_v44 = vpop.permute.xlu0 %1164 }
 0x3b5   : > { %v1334_v58 = vmax.f32 %v5733_v62, %v5730_v38  ;;  %vm1239_vm14 = vcmp.eq.s32.totalorder %v1165_v44, 1 }
 0x3b6   : > { %v1271_v30 = vsel %vm1239_vm14, %v3400_v57, -3.4028235e+38 }
 0x3b7   : > { %v1322_v33 = vsel %vm719_vm7, %v1271_v30, -inf  ;;  %1227 = vperm.xlu1 %3343, %v1132_v37  }
 0x3b8   : > { %v1323_v61 = vmax.f32 %v1321_v35, %v1322_v33  ;;  %v5762_v35 = vld [vmem:[%s3688_s25 + $0x58] sm:$0xff]  ;;  %v3406_v33 = vld [vmem:[%s3688_s25 + $0xa8] sm:$0xff] }
 0x3b9   : > { %v1748_v9 = vpop.permute.xlu1 %1747  ;;  %v1272_v2 = vsel %vm1240_vm5, %v5762_v35, -3.4028235e+38 }
 0x3ba   : > { %vm1810_vm12 = vcmp.eq.s32.totalorder %v1748_v9, 1  ;;  %v1324_v52 = vsel %vm719_vm7, %v1272_v2, -inf }
 0x3bb   : > { %v1842_v41 = vsel %vm1810_vm12, %v5750_v20, -3.4028235e+38  ;;  %v1325_v12 = vmax.f32 %v1323_v61, %v1324_v52  ;;  %v5778_v57 = vpop.permute.xlu2 %1200 }
 0x3bc   : > { %v5757_v17 = vsel %vm719_vm7, %v1842_v41, -inf  ;;  %v1709_v54 = vpop.permute.xlu0 %1708 }
 0x3bd   : > { %v1912_v13 = vmax.f32 %v5757_v17, %v5754_v50  ;;  %vm1797_vm15 = vcmp.eq.s32.totalorder %v1709_v54, 1  ;;  %v1326_v18 = vrot.slane %v1325_v12, 4 }
 0x3be   : > { %v1829_v25 = vsel %vm1797_vm15, %v5623_v4, -3.4028235e+38  ;;  %v1301_v4 = vmax.f32 %v5635_v27, %v1300_v22 }
 0x3bf   : > { %v1863_v42 = vsel %vm719_vm7, %v1829_v25, -inf  ;;  %v1327_v63 = vmax.f32 %v1325_v12, %v1326_v18  ;;  %v5795_v12 = vsel %vm719_vm7, %v1281_v40, -inf }
 0x3c0   : > { %v1864_v36 = vmax.f32 %v5691_v60, %v1863_v42  ;;  %v3404_v60 = vld [vmem:[%s3688_s25 + $0x38] sm:$0xff]  ;;  %v1302_v5 = vrot.slane %v1301_v4, 2 }
 0x3c1   : > { %v5769_v46 = vpop.permute.xlu1 %1182  ;;  %v1328_v6 = vrot.slane %v1327_v63, 2 }
 0x3c2   : > { %v1865_v45 = vrot.slane %v1864_v36, 4  ;;  %v1303_v51 = vmax.f32 %v1301_v4, %v1302_v5 }
 0x3c3   : > { %v1329_v0 = vmax.f32 %v1327_v63, %v1328_v6  ;;  %v1757_v4 = vpop.permute.xlu2 %1756  ;;  %v6201_v6 = vld [vmem:[#allocation12_spill] sm:$0xff] }
 0x3c4   : > { %v1760_v28 = vpop.permute.xlu0 %1759  ;;  %v1866_v49 = vmax.f32 %v1864_v36, %v1865_v45  ;;  %v1304_v25 = vrot.slane %v1303_v51, 1  ;;  %vm1813_vm12 = vcmp.eq.s32.totalorder %v1757_v4, 1  ;;  %v3409_v4 = vld [vmem:[%s3688_s25 + $0x78] sm:$0xff] }
 0x3c5   : > { %vm1814_vm2 = vcmp.eq.s32.totalorder %v1760_v28, 1  ;;  %v1330_v42 = vrot.slane %v1329_v0, 1 }
 0x3c6   : > { %v1867_v24 = vrot.slane %v1866_v49, 2  ;;  %v1846_v3 = vsel %vm1814_vm2, %v3405_v32, -3.4028235e+38 }
 0x3c7   : > { %v5786_v9 = vsel %vm719_vm7, %v1846_v3, -inf }
 0x3c8   : > { %v1868_v27 = vmax.f32 %v1866_v49, %v1867_v24  ;;  %v5803_v49 = vld [vmem:[%s3688_s25 + $0x90] sm:$0xff] }
 0x3c9   : > { %v1721_v55 = vpop.permute.xlu1 %1720 }
 0x3ca   : > { %vm1801_vm8 = vcmp.eq.s32.totalorder %v1721_v55, 1  ;;  %v1869_v37 = vrot.slane %v1868_v27, 1  ;;  %v1844_v55 = vsel %vm1812_vm4, %v5803_v49, -3.4028235e+38  ;;  %vm6206_vm4 = vmmov %vm6205_vm10 }
 0x3cb   : > { %v1833_v1 = vsel %vm1801_vm8, %v3404_v60, -3.4028235e+38  ;;  %vm1254_vm8 = vcmp.eq.s32.totalorder %v5747_v19, 1 }
 0x3cc   : > { %v1876_v15 = vsel %vm719_vm7, %v1833_v1, -inf  ;;  %v1156_v48 = vpop.permute.xlu0 %1155  ;;  %v1870_v45 = vmax.f32 %v1868_v27, %v1869_v37  ;;  %v1331_v1 = vmax.f32 %v1329_v0, %v1330_v42  ;;  %v6202_v0 = vld [vmem:[#allocation13_spill] sm:$0xff]  ;;  %v5825_v37 = vld [vmem:[%s3688_s25 + $0x98] sm:$0xff] }
 0x3cd   : > { %v1877_v8 = vmax.f32 %v5604_v34, %v1876_v15  ;;  %vm1236_vm9 = vcmp.eq.s32.totalorder %v1156_v48, 1  ;;  %v6200_v48 = vld [vmem:[#allocation11_spill] sm:$0xff] }
 0x3ce   : > { %v1268_v21 = vsel %vm1236_vm9, %v3404_v60, -3.4028235e+38  ;;  %v1305_v60 = vmax.f32 %v1303_v51, %v1304_v25  ;;  %vm1251_vm9 = vcmp.eq.s32.totalorder %v5778_v57, 1 }
 0x3cf   : > { %v1878_v53 = vrot.slane %v1877_v8, 4  ;;  %v1311_v31 = vsel %vm719_vm7, %v1268_v21, -inf }
 0x3d0   : > { %v1312_v39 = vmax.f32 %v5702_v10, %v1311_v31 }
 0x3d1   : > { %v1879_v43 = vmax.f32 %v1877_v8, %v1878_v53  ;;  %v1763_v34 = vpop.permute.xlu1 %1762  ;;  %v2931_v8 = vmax.f32 %v6200_v48, %v1870_v45 }
 0x3d2   : > { %v1313_v44 = vrot.slane %v1312_v39, 4  ;;  %vm1815_vm6 = vcmp.eq.s32.totalorder %v1763_v34, 1  ;;  %v1913_v34 = vsel %vm719_vm7, %v1844_v55, -inf }
 0x3d3   : > { %v1880_v30 = vrot.slane %v1879_v43, 2  ;;  %v1847_v61 = vsel %vm1815_vm6, %v3406_v33, -3.4028235e+38  ;;  %v1914_v38 = vmax.f32 %v1912_v13, %v1913_v34 }
 0x3d4   : > { %v1314_v41 = vmax.f32 %v1312_v39, %v1313_v44  ;;  %v5789_v10 = vsel %vm719_vm7, %v1847_v61, -inf  ;;  %v1198_v11 = vpop.permute.xlu0 %1197  ;;  %v2837_v44 = vmax.f32 %v6202_v0, %v1331_v1 }
 0x3d5   : > { %v1881_v54 = vmax.f32 %v1879_v43, %v1880_v30  ;;  %v1925_v2 = vmax.f32 %v5786_v9, %v5789_v10  ;;  %vm1250_vm14 = vcmp.eq.s32.totalorder %v1198_v11, 1  ;;  %v2835_v43 = vmax.f32 %v6200_v48, %v1305_v60 }
 0x3d6   : > { %v1315_v36 = vrot.slane %v1314_v41, 2  ;;  %v1282_v52 = vsel %vm1250_vm14, %v3406_v33, -3.4028235e+38  ;;  %v1845_v30 = vsel %vm1813_vm12, %v5825_v37, -3.4028235e+38  ;;  %vm1246_vm12 = vcmp.eq.s32.totalorder %v5573_v16, 1 }
 0x3d7   : > { %v1882_v28 = vrot.slane %v1881_v54, 1  ;;  %v5798_v22 = vsel %vm719_vm7, %v1282_v52, -inf  ;;  %v1915_v40 = vsel %vm719_vm7, %v1845_v30, -inf  ;;  %v1213_v52 = vpop.permute.xlu2 %1212  ;;  %v5863_v30 = vld [vmem:[%s3688_s25 + $0xc8] sm:$0xff] }
 0x3d8   : > { %v1316_v18 = vmax.f32 %v1314_v41, %v1315_v36  ;;  %v1360_v26 = vmax.f32 %v5795_v12, %v5798_v22  ;;  %v1916_v41 = vmax.f32 %v1914_v38, %v1915_v40 }
 0x3d9   : > { %v1883_v63 = vmax.f32 %v1881_v54, %v1882_v28  ;;  %v1177_v24 = vpop.permute.xlu1 %1176 }
 0x3da   : > { %v1317_v15 = vrot.slane %v1316_v18, 1  ;;  %vm1243_vm1 = vcmp.eq.s32.totalorder %v1177_v24, 1  ;;  %v1917_v13 = vrot.slane %v1916_v41, 4 }
 0x3db   : > { %v1970_v5 = vsel %vm833_vm13, %v1883_v63, %v1870_v45  ;;  %v2932_v21 = vmax.f32 %v6201_v6, %v1883_v63  ;;  %v1275_v27 = vsel %vm1243_vm1, %v5707_v47, -3.4028235e+38  ;;  %vm1245_vm1 = vcmp.eq.s32.totalorder %v5769_v46, 1 }
 0x3dc   : > { %v1318_v53 = vmax.f32 %v1316_v18, %v1317_v15  ;;  %v1335_v31 = vsel %vm719_vm7, %v1275_v27, -inf  ;;  %v5811_v39 = vpop.permute.xlu0 %1771  ;;  %v1918_v45 = vmax.f32 %v1916_v41, %v1917_v13  ;;  %v1278_v46 = vsel %vm1246_vm12, %v5744_v56, -3.4028235e+38 }
 0x3dd   : > { %v2993_v32 = vsel %vm833_vm13, %v2932_v21, %v2931_v8  ;;  %v5817_v3 = vmax.f32 %v1334_v58, %v1335_v31  ;;  %v1346_v16 = vsel %vm719_vm7, %v1278_v46, -inf }
 0x3de   : > { %v1405_v51 = vsel %vm833_vm13, %v1318_v53, %v1305_v60  ;;  %v2836_v47 = vmax.f32 %v6201_v6, %v1318_v53 }
 0x3df   : > { %v5832_v62 = vsel %vm835_vm0, %v1331_v1, %v1405_v51  ;;  %v1204_v27 = vpop.permute.xlu2 %1203 }
 0x3e0   : > { %v2898_v58 = vsel %vm833_vm13, %v2836_v47, %v2835_v43  ;;  %vm1252_vm2 = vcmp.eq.s32.totalorder %v1204_v27, 1 }
 0x3e1   : > { %v1733_v33 = vpop.permute.xlu1 %1732  ;;  %v5836_v61 = vsel %vm835_vm0, %v2837_v44, %v2898_v58  ;;  %v5859_v44 = vld [vmem:[%s3688_s25 + $0xc0] sm:$0xff]  ;;  %v5867_v58 = vld [vmem:[%s3688_s25 + $0xb0] sm:$0xff] }
 0x3e2   : > { %vm1805_vm5 = vcmp.eq.s32.totalorder %v1733_v33, 1  ;;  %v1283_v19 = vsel %vm1251_vm9, %v5867_v58, -3.4028235e+38 }
 0x3e3   : > { %v1837_v11 = vsel %vm1805_vm5, %v5762_v35, -3.4028235e+38  ;;  %v1919_v35 = vrot.slane %v1918_v45, 2 }
 0x3e4   : > { %v1889_v54 = vsel %vm719_vm7, %v1837_v11, -inf  ;;  %v5841_v50 = vpop.permute.xlu0 %1188 }
 0x3e5   : > { %v1890_v17 = vmax.f32 %v5726_v7, %v1889_v54  ;;  %v1920_v8 = vmax.f32 %v1918_v45, %v1919_v35  ;;  %v6203_v54 = vld [vmem:[#allocation14_spill] sm:$0xff]  ;;  %vm1247_vm5 = vcmp.eq.s32.totalorder %v5841_v50, 1 }
 0x3e7   : > { %v1891_v25 = vrot.slane %v1890_v17, 4  ;;  %v1921_v51 = vrot.slane %v1920_v8, 1  ;;  %v1216_v11 = vpop.permute.xlu2 %1215 }
 0x3e8   : > { %vm1256_vm6 = vcmp.eq.s32.totalorder %v1216_v11, 1 }
 0x3e9   : > { %v1892_v42 = vmax.f32 %v1890_v17, %v1891_v25  ;;  %v5844_v36 = vpop.permute.xlu1 %1774  ;;  %v1922_v38 = vmax.f32 %v1920_v8, %v1921_v51  ;;  %v1361_v25 = vsel %vm719_vm7, %v1283_v19, -inf  ;;  %v1279_v19 = vsel %vm1247_vm5, %v5803_v49, -3.4028235e+38 }
 0x3ea   : > { %v1362_v35 = vmax.f32 %v1360_v26, %v1361_v25  ;;  %v1348_v50 = vsel %vm719_vm7, %v1279_v19, -inf  ;;  %vm1819_vm9 = vcmp.eq.s32.totalorder %v5844_v36, 1  ;;  %vm6208_vm5 = vcmask 1044484  }
 0x3eb   : > { %v1893_v28 = vrot.slane %v1892_v42, 2 }
 0x3ec   : > { %v1745_v18 = vpop.permute.xlu0 %1744 }
 0x3ed   : > { %v1894_v55 = vmax.f32 %v1892_v42, %v1893_v28  ;;  %vm1809_vm13 = vcmp.eq.s32.totalorder %v1745_v18, 1  ;;  %v6204_v42 = vld [vmem:[#allocation15_spill] sm:$0xff]  ;;  %v5879_v28 = vld [vmem:[%s3688_s25 + $0xd0] sm:$0xff] }
 0x3ee   : > { %v1841_v63 = vsel %vm1809_vm13, %v3409_v4, -3.4028235e+38  ;;  %v2935_v45 = vmax.f32 %v6204_v42, %v1922_v38 }
 0x3ef   : > { %v1895_v24 = vrot.slane %v1894_v55, 1  ;;  %v1902_v60 = vsel %vm719_vm7, %v1841_v63, -inf }
 0x3f0   : > { %v1903_v1 = vmax.f32 %v5721_v59, %v1902_v60 }
 0x3f1   : > { %v1896_v7 = vmax.f32 %v1894_v55, %v1895_v24  ;;  %v1207_v15 = vpop.permute.xlu1 %1206  ;;  %v5886_v55 = vld [vmem:[%s3688_s25 + $0xb8] sm:$0xff] }
 0x3f2   : > { %v1904_v48 = vrot.slane %v1903_v1, 4  ;;  %vm1253_vm15 = vcmp.eq.s32.totalorder %v1207_v15, 1  ;;  %v1284_v63 = vsel %vm1252_vm2, %v5886_v55, -3.4028235e+38 }
 0x3f3   : > { %v2933_v6 = vmax.f32 %v6202_v0, %v1896_v7  ;;  %v1971_v21 = vsel %vm835_vm0, %v1896_v7, %v1970_v5  ;;  %v1285_v5 = vsel %vm1253_vm15, %v5859_v44, -3.4028235e+38 }
 0x3f4   : > { %v1905_v53 = vmax.f32 %v1903_v1, %v1904_v48  ;;  %v5851_v31 = vpop.permute.xlu0 %1786  ;;  %v1371_v40 = vsel %vm719_vm7, %v1285_v5, -inf  ;;  %v1363_v48 = vsel %vm719_vm7, %v1284_v63, -inf }
 0x3f5   : > { %v2994_v43 = vsel %vm835_vm0, %v2933_v6, %v2993_v32  ;;  %v1286_v32 = vsel %vm1254_vm8, %v5863_v30, -3.4028235e+38  ;;  %vm1255_vm0 = vcmp.eq.s32.totalorder %v1213_v52, 1  ;;  %v5899_v6 = vld [vmem:[%s3688_s25 + $0xd8] sm:$0xff]  ;;  %v1364_v12 = vmax.f32 %v1362_v35, %v1363_v48 }
 0x3f6   : > { %v1906_v34 = vrot.slane %v1905_v53, 2  ;;  %v1372_v41 = vsel %vm719_vm7, %v1286_v32, -inf  ;;  %v1287_v52 = vsel %vm1255_vm0, %v5879_v28, -3.4028235e+38  ;;  %vm1822_vm8 = vcmp.eq.s32.totalorder %v5771_v23, 1 }
 0x3f7   : > { %v1373_v24 = vmax.f32 %v1371_v40, %v1372_v41  ;;  %v1374_v15 = vsel %vm719_vm7, %v1287_v52, -inf  ;;  %vm1823_vm2 = vcmp.eq.s32.totalorder %v5851_v31, 1  ;;  %v3416_v31 = vld [vmem:[%s3688_s25 + $0xe8] sm:$0xff] }
 0x3f8   : > { %v1907_v59 = vmax.f32 %v1905_v53, %v1906_v34 }
 0x3f9   : > { %v5856_v47 = vpop.permute.xlu1 %1765  ;;  %v1375_v22 = vmax.f32 %v1373_v24, %v1374_v15 }
 0x3fa   : > { %v1908_v0 = vrot.slane %v1907_v59, 1  ;;  %vm1816_vm13 = vcmp.eq.s32.totalorder %v5856_v47, 1 }
 0x3fb   : > { %v1848_v25 = vsel %vm1816_vm13, %v5867_v58, -3.4028235e+38  ;;  %vm6209_vm13 = vcmask 1045509  }
 0x3fc   : > { %v1909_v57 = vmax.f32 %v1907_v59, %v1908_v0  ;;  %v5870_v33 = vpop.permute.xlu0 %1218 }
 0x3fe   : > { %v2934_v17 = vmax.f32 %v6203_v54, %v1909_v57  ;;  %v1972_v13 = vsel %vm837_vm3, %v1909_v57, %v1971_v21  ;;  %v1288_v21 = vsel %vm1256_vm6, %v5899_v6, -3.4028235e+38 }
 0x3ff   : > { %v5883_v18 = vsel %vm6205_vm10, %v1922_v38, %v1972_v13  ;;  %v1376_v34 = vsel %vm719_vm7, %v1288_v21, -inf  ;;  %vm1818_vm10 = vcmp.eq.s32.totalorder %v5811_v39, 1 }
 0x400   : > { %v2995_v60 = vsel %vm837_vm3, %v2934_v17, %v2994_v43  ;;  %v1377_v59 = vmax.f32 %v1375_v22, %v1376_v34  ;;  %v1850_v10 = vsel %vm1818_vm10, %v5859_v44, -3.4028235e+38 }
 0x401   : > { %v1180_v1 = vpop.permute.xlu1 %1179  ;;  %v5894_v7 = vsel %vm6206_vm4, %v2935_v45, %v2995_v60  ;;  %v1926_v60 = vsel %vm719_vm7, %v1848_v25, -inf }
 0x402   : > { %vm1244_vm14 = vcmp.eq.s32.totalorder %v1180_v1, 1  ;;  %v1378_v38 = vrot.slane %v1377_v59, 4 }
 0x403   : > { %v1276_v8 = vsel %vm1244_vm14, %v3409_v4, -3.4028235e+38  ;;  %v1365_v4 = vrot.slane %v1364_v12, 4  ;;  %vm1257_vm14 = vcmp.eq.s32.totalorder %v5870_v33, 1 }
 0x404   : > { %v1337_v26 = vsel %vm719_vm7, %v1276_v8, -inf }
 0x405   : > { %v1338_v27 = vmax.f32 %v5817_v3, %v1337_v26  ;;  %v2643_v53 = vpop.permute.xlu0 %2642  ;;  %v1366_v32 = vmax.f32 %v1364_v12, %v1365_v4  ;;  %v1851_v26 = vsel %vm1819_vm9, %v5863_v30, -3.4028235e+38  ;;  %vm6212_vm9 = vmmov %vm6209_vm13 }
 0x406   : > { %v5905_v43 = vmul.f32 %v2643_v53, %v5427_v14  ;;  %v1277_v14 = vsel %vm1245_vm1, %v5750_v20, -3.4028235e+38  ;;  %v1379_v20 = vmax.f32 %v1377_v59, %v1378_v38  ;;  %v3417_v53 = vld [vmem:[%s3688_s25 + $0xe0] sm:$0xff]  ;;  %v1937_v4 = vsel %vm719_vm7, %v1851_v26, -inf  ;;  %v3418_v38 = vld [vmem:[%s3688_s25 + $0xf0] sm:$0xff] }
 0x407   : > { %v1339_v51 = vrot.slane %v1338_v27, 4  ;;  %v1345_v41 = vsel %vm719_vm7, %v1277_v14, -inf  ;;  %v1367_v17 = vrot.slane %v1366_v32, 2  ;;  %v1854_v9 = vsel %vm1822_vm8, %v3417_v53, -3.4028235e+38 }
 0x408   : > { %2647 = vrot.lane.b32.xlu2 %v5905_v43, %s3560_s24  ;;  %v1347_v13 = vmax.f32 %v1345_v41, %v1346_v16  ;;  %v1380_v24 = vrot.slane %v1379_v20, 2  ;;  %v1949_v23 = vsel %vm719_vm7, %v1854_v9, -inf  ;;  %v6207_v41 = vld [vmem:[#allocation16_spill] sm:$0xff] }
 0x409   : > { %v1340_v0 = vmax.f32 %v1338_v27, %v1339_v51  ;;  %v5911_v5 = vpop.permute.xlu1 %1221  ;;  %v1368_v35 = vmax.f32 %v1366_v32, %v1367_v17  ;;  %v1855_v27 = vsel %vm1823_vm2, %v3416_v31, -3.4028235e+38  ;;  %vm6214_vm2 = vcmask 1046534  }
 0x40a   : > { %v1349_v49 = vmax.f32 %v1347_v13, %v1348_v50  ;;  %v1381_v21 = vmax.f32 %v1379_v20, %v1380_v24  ;;  %v1950_v30 = vsel %vm719_vm7, %v1855_v27, -inf  ;;  %vm1258_vm4 = vcmp.eq.s32.totalorder %v5911_v5, 1 }
 0x40b   : > { %v1341_v3 = vrot.slane %v1340_v0, 2  ;;  %v1369_v8 = vrot.slane %v1368_v35, 1  ;;  %v1290_v16 = vsel %vm1258_vm4, %v3416_v31, -3.4028235e+38  ;;  %vm6217_vm4 = vmmov %vm6214_vm2 }
 0x40c   : > { %v1382_v51 = vrot.slane %v1381_v21, 1 }
 0x40d   : > { %v1342_v57 = vmax.f32 %v1340_v0, %v1341_v3  ;;  %v1778_v40 = vpop.permute.xlu0 %1777  ;;  %v1370_v34 = vmax.f32 %v1368_v35, %v1369_v8  ;;  %v1936_v3 = vsel %vm719_vm7, %v1850_v10, -inf  ;;  %v6210_v35 = vld [vmem:[#allocation17_spill] sm:$0xff] }
 0x40e   : > { %v1938_v19 = vmax.f32 %v1936_v3, %v1937_v4 }
 0x40f   : > { %v1343_v11 = vrot.slane %v1342_v57, 1 }
 0x411   : > { %v1344_v45 = vmax.f32 %v1342_v57, %v1343_v11  ;;  %v1192_v56 = vpop.permute.xlu1 %1191  ;;  %v1951_v57 = vmax.f32 %v1949_v23, %v1950_v30  ;;  %v2840_v11 = vmax.f32 %v6207_v41, %v1370_v34 }
 0x412   : > { %vm1248_vm15 = vcmp.eq.s32.totalorder %v1192_v56, 1 }
 0x413   : > { %v2838_v52 = vmax.f32 %v6203_v54, %v1344_v45  ;;  %v1280_v63 = vsel %vm1248_vm15, %v5825_v37, -3.4028235e+38  ;;  %v5927_v47 = vsel %vm837_vm3, %v1344_v45, %v5832_v62  ;;  %v1927_v37 = vmax.f32 %v1925_v2, %v1926_v60  ;;  %vm6211_vm15 = vmmov %vm6208_vm5 }
 0x414   : > { %v1350_v1 = vsel %vm719_vm7, %v1280_v63, -inf }
 0x415   : > { %v1351_v15 = vmax.f32 %v1349_v49, %v1350_v1  ;;  %v1769_v58 = vpop.permute.xlu0 %1768  ;;  %v5933_v48 = vsel %vm837_vm3, %v2838_v52, %v5836_v61  ;;  %vm1820_vm3 = vcmp.eq.s32.totalorder %v1778_v40, 1  ;;  %v5958_v40 = vmax.f32 %v1381_v21, %v1382_v51 }
 0x416   : > { %vm1817_vm0 = vcmp.eq.s32.totalorder %v1769_v58, 1  ;;  %v1289_v52 = vsel %vm1257_vm14, %v3417_v53, -3.4028235e+38  ;;  %vm6218_vm14 = vcmask 1047559  }
 0x417   : > { %v1352_v62 = vrot.slane %v1351_v15, 4  ;;  %v1849_v54 = vsel %vm1817_vm0, %v5886_v55, -3.4028235e+38  ;;  %v1852_v55 = vsel %vm1820_vm3, %v5879_v28, -3.4028235e+38  ;;  %v2841_v24 = vmax.f32 %v6210_v35, %v5958_v40  ;;  %vm6213_vm0 = vmmov %vm6212_vm9 }
 0x418   : > { %v1928_v61 = vsel %vm719_vm7, %v1849_v54, -inf  ;;  %v1939_v44 = vsel %vm719_vm7, %v1852_v55, -inf  ;;  %vm6215_vm10 = vmmov %vm6213_vm0 }
 0x419   : > { %v1353_v12 = vmax.f32 %v1351_v15, %v1352_v62  ;;  %v1929_v36 = vmax.f32 %v1927_v37, %v1928_v61  ;;  %v1790_v22 = vpop.permute.xlu1 %1789  ;;  %v1940_v13 = vmax.f32 %v1938_v19, %v1939_v44  ;;  %v3419_v61 = vld [vmem:[%s3688_s25 + $0xf8] sm:$0xff]  ;;  %s3125_s25 = scalar_lea.sflag [#allocation4], %s3684_s6 }
 0x41a   : > { %vm1824_vm6 = vcmp.eq.s32.totalorder %v1790_v22, 1 }
 0x41b   : > { %v1354_v2 = vrot.slane %v1353_v12, 2  ;;  %v1930_v39 = vrot.slane %v1929_v36, 4  ;;  %v1856_v46 = vsel %vm1824_vm6, %v3418_v38, -3.4028235e+38  ;;  %vm6216_vm6 = vmmov %vm6214_vm2 }
 0x41c   : > { %v1952_v5 = vsel %vm719_vm7, %v1856_v46, -inf }
 0x41d   : > { %v1355_v59 = vmax.f32 %v1353_v12, %v1354_v2  ;;  %v1931_v0 = vmax.f32 %v1929_v36, %v1930_v39  ;;  %v1225_v14 = vpop.permute.xlu0 %1224  ;;  %v1953_v37 = vmax.f32 %v1951_v57, %v1952_v5  ;;  %v1384_v12 = vsel %vm719_vm7, %v1289_v52, -inf  ;;  %v3420_v52 = vld [vmem:[#allocation5 + $0x40] ss:$0 sm:$0xff] }
 0x41e   : > { %vm1259_vm1 = vcmp.eq.s32.totalorder %v1225_v14, 1 }
 0x41f   : > { %v1356_v32 = vrot.slane %v1355_v59, 1  ;;  %v1932_v28 = vrot.slane %v1931_v0, 2  ;;  %v1291_v1 = vsel %vm1259_vm1, %v3418_v38, -3.4028235e+38  ;;  %vm6220_vm1 = vmmov %vm6218_vm14 }
 0x420   : > { %v1387_v36 = vsel %vm719_vm7, %v1291_v1, -inf }
 0x421   : > { %v1357_v17 = vmax.f32 %v1355_v59, %v1356_v32  ;;  %v1933_v50 = vmax.f32 %v1931_v0, %v1932_v28  ;;  %v1781_v20 = vpop.permute.xlu1 %1780 }
 0x422   : > { %vm1821_vm12 = vcmp.eq.s32.totalorder %v1781_v20, 1 }
 0x423   : > { %v2839_v25 = vmax.f32 %v6204_v42, %v1357_v17  ;;  %v1934_v45 = vrot.slane %v1933_v50, 1  ;;  %v1853_v56 = vsel %vm1821_vm12, %v5899_v6, -3.4028235e+38  ;;  %v1408_v49 = vsel %vm6208_vm5, %v1357_v17, %v5927_v47  ;;  %vm6221_vm12 = vmmov %vm6214_vm2 }
 0x424   : > { %v1941_v33 = vsel %vm719_vm7, %v1853_v56, -inf  ;;  %v1409_v63 = vsel %vm6209_vm13, %v1370_v34, %v1408_v49  ;;  %v1385_v6 = vsel %vm719_vm7, %v1290_v16, -inf  ;;  %vm6222_vm5 = vmmov %vm6220_vm1 }
 0x425   : > { %v1935_v60 = vmax.f32 %v1933_v50, %v1934_v45  ;;  %v1942_v15 = vmax.f32 %v1940_v13, %v1941_v33  ;;  %v1793_v58 = vpop.permute.xlu0 %1792  ;;  %v2901_v42 = vsel %vm6211_vm15, %v2839_v25, %v5933_v48  ;;  %v1386_v26 = vmax.f32 %v1384_v12, %v1385_v6  ;;  %vm6223_vm13 = vmmov %vm6220_vm1 }
 0x426   : > { %vm1825_vm8 = vcmp.eq.s32.totalorder %v1793_v58, 1  ;;  %v2902_v47 = vsel %vm6212_vm9, %v2840_v11, %v2901_v42  ;;  %v1410_v20 = vsel %vm6221_vm12, %v5958_v40, %v1409_v63 }
 0x427   : > { %v2936_v62 = vmax.f32 %v6207_v41, %v1935_v60  ;;  %v1943_v54 = vrot.slane %v1942_v15, 4  ;;  %v1857_v8 = vsel %vm1825_vm8, %v3419_v61, -3.4028235e+38  ;;  %v1974_v21 = vsel %vm6213_vm0, %v1935_v60, %v5883_v18  ;;  %v6219_v41 = vld [vmem:[#allocation18_spill] sm:$0xff] }
 0x428   : > { %v1954_v48 = vsel %vm719_vm7, %v1857_v8, -inf  ;;  %v2903_v22 = vsel %vm6214_vm2, %v2841_v24, %v2902_v47  ;;  %v1388_v10 = vmax.f32 %v1386_v26, %v1387_v36  ;;  %vm2845_vm2 = vcmask 130048  }
 0x429   : > { %v1944_v31 = vmax.f32 %v1942_v15, %v1943_v54  ;;  %v1955_v27 = vmax.f32 %v1953_v37, %v1954_v48  ;;  %v1228_v53 = vpop.permute.xlu1 %1227  ;;  %v2997_v9 = vsel %vm6215_vm10, %v2936_v62, %v5894_v7 }
 0x42a   : > { %vm1260_vm3 = vcmp.eq.s32.totalorder %v1228_v53, 1 }
 0x42b   : > { %v1945_v2 = vrot.slane %v1944_v31, 2  ;;  %v1956_v39 = vrot.slane %v1955_v27, 4  ;;  %v1292_v18 = vsel %vm1260_vm3, %v3419_v61, -3.4028235e+38 }
 0x42c   : > { %v1389_v55 = vsel %vm719_vm7, %v1292_v18, -inf }
 0x42d   : > { %v1946_v34 = vmax.f32 %v1944_v31, %v1945_v2  ;;  %v1957_v51 = vmax.f32 %v1955_v27, %v1956_v39  ;;  %v1390_v4 = vmax.f32 %v1388_v10, %v1389_v55  ;;  %v6020_v10 = vld [vmem:[#allocation5 + $0x50] sm:$0xff]  ;;  %v6022_v2 = vld [vmem:[#allocation5 + $0x48] sm:$0xff]  ;;  %v6032_v55 = vld [vmem:[#allocation5 + $0x78] sm:$0xff] }
 0x42f   : > { %v1947_v30 = vrot.slane %v1946_v34, 1  ;;  %v1958_v59 = vrot.slane %v1957_v51, 2  ;;  %v1391_v0 = vrot.slane %v1390_v4, 4 }
 0x431   : > { %v1959_v14 = vmax.f32 %v1957_v51, %v1958_v59  ;;  %v1392_v23 = vmax.f32 %v1390_v4, %v1391_v0  ;;  %v1948_v3 = vmax.f32 %v1946_v34, %v1947_v30  ;;  %v6036_v34 = vld [vmem:[#allocation5 + $0x70] sm:$0xff]  ;;  %v6040_v51 = vld [vmem:[#allocation5 + $0x68] sm:$0xff] }
 0x433   : > { %v1393_v44 = vrot.slane %v1392_v23, 2  ;;  %v1960_v32 = vrot.slane %v1959_v14, 1  ;;  %v1975_v7 = vsel %vm6216_vm6, %v1948_v3, %v1974_v21  ;;  %v2937_v28 = vmax.f32 %v6210_v35, %v1948_v3 }
 0x435   : > { %v1394_v38 = vmax.f32 %v1392_v23, %v1393_v44  ;;  %v1961_v46 = vmax.f32 %v1959_v14, %v1960_v32  ;;  %v2998_v19 = vsel %vm6217_vm4, %v2937_v28, %v2997_v9 }
 0x437   : > { %v1976_v57 = vsel %vm6218_vm14, %v1961_v46, %v1975_v7  ;;  %v2938_v11 = vmax.f32 %v6219_v41, %v1961_v46  ;;  %v1395_v16 = vrot.slane %v1394_v38, 1 }
 0x438   : > { %3249 = vmatmul.msk.f32.vlgmr.msra.gmra.mxu2 %vm719_vm7, %v1976_v57 }
 0x439   : > { %v1396_v17 = vmax.f32 %v1394_v38, %v1395_v16  ;;  %v5993_v50 = vsel %vm6220_vm1, %v2938_v11, %v2998_v19 }
 0x43b   : > { %v1411_v13 = vsel %vm6222_vm5, %v1396_v17, %v1410_v20  ;;  %v2842_v5 = vmax.f32 %v6219_v41, %v1396_v17 }
 0x43c   : > { %3248 = vmatmul.msk.f32.vlgmr.msra.gmra.mxu1 %vm719_vm7, %v1411_v13 }
 0x43d   : > { %v6001_v25 = vsel %vm6223_vm13, %v2842_v5, %v2903_v22  ;;  %2884 = vmatpush.msra.mxu1 %v6020_v10 }
 0x43f   : > { %2885 = vmatpush.msra.mxu1 %v6022_v2 }
 0x462   : > { %v2648_v45 = vpop.permute.xlu2 %2647 }
 0x463   : > { %3252 = vmatmul.msk.f32.vlgmr.msrb.gmra.mxu1 %vm719_vm7, %v2648_v45 }
 0x4b9   : > { %v1431_v56 = vpop.f32.mrf.mxu1 }
 0x4ba   : > { %v6004_v33 = vadd.f32 %v3420_v52, %v1431_v56 }
 0x4bb   : > { %v1996_v49 = vpop.f32.mrf.mxu2 }
 0x4bc   : > { %v6006_v35 = vadd.f32 %v3420_v52, %v1996_v49  ;;  %v6225_v52 = vld [vmem:[#allocation28_spill] sm:$0xff] }
 0x4be   : > { %v2583_v63 = vsel %vm5327_vm11, %v6006_v35, %v6004_v33  ;;  %v2582_v24 = vsel %vm5327_vm11, %v6004_v33, %v6006_v35  ;;  %v6226_v33 = vld [vmem:[#allocation27_spill] sm:$0xff] }
 0x4bf   : > { %v6227_v35 = vsel %vm5327_vm11, %v6225_v52, %v6226_v33 }
 0x4e0   : > { %v2668_v60 = vpop.f32.mrf.mxu1 }
 0x4e1   : > { %v2671_v1 = vadd.f32 %v2668_v60, %v2582_v24 }
 0x4e3   : > { %3356 = vtanh.f32 %v2671_v1  ;;  %v3253_v58 = vmul.f32 -1.442695, %v2671_v1 }
 0x4e5   : > { %3358 = vpow2.f32 %v3253_v58  ;;  %v289_v58 = vld [vmem:[#allocation5 + $0x60] sm:$0xff] }
 0x4e6   : > { %2862 = vmatpush.msra.mxu0 %v289_v58  ;;  %2957 = vmatpush.msra.mxu3 %v289_v58 }
 0x4e9   : > { %v3357_v15 = vpop.eup %3356 }
 0x4ea   : > { %2694 = vrot.lane.b32.xlu0 %v3357_v15, %s3559_s22 }
 0x4eb   : > { %v3359_v42 = vpop.eup %3358 }
 0x4ec   : > { %v2675_v6 = vadd.f32 1.0, %v3359_v42  ;;  %v288_v42 = vld [vmem:[#allocation5 + $0x58] sm:$0xff] }
 0x4ed   : > { %2863 = vmatpush.msra.mxu0 %v288_v42  ;;  %2958 = vmatpush.msra.mxu3 %v288_v42 }
 0x4ee   : > { %3360 = vrcp.f32 %v2675_v6  ;;  %v2687_v8 = vand.u32 2147483648, %v2675_v6  ;;  %vm2681_vm8 = vweird.f32 %v2675_v6  ;;  %v2685_v21 = vand.u32 2147483647, %v2675_v6 }
 0x4ef   : > { %2979 = vmatpush.msrb.mxu0 %v6020_v10 }
 0x4f0   : > { %v2688_v36 = vor.u32 1.1754944e-38, %v2687_v8  ;;  %vm2686_vm0 = vcmp.eq.f32.partialorder %v2685_v21, 8.507059e+37 }
 0x4f1   : > { %2980 = vmatpush.msrb.mxu0 %v6022_v2 }
 0x4f4   : > { %v3361_v37 = vpop.eup %3360 }
 0x4f5   : > { %v2677_v47 = vmul.f32 %v3361_v37, %v2675_v6  ;;  %vm2682_vm15 = vweird.f32 %v3361_v37 }
 0x4f6   : > { %vm2683_vm9 = vmor %vm2681_vm8, %vm2682_vm15 }
 0x4f7   : > { %v2678_v62 = vsub.f32 1.0, %v2677_v47 }
 0x4f9   : > { %v2679_v54 = vmul.f32 %v3361_v37, %v2678_v62 }
 0x4fb   : > { %v2680_v61 = vadd.f32 %v3361_v37, %v2679_v54 }
 0x4fd   : > { %v2684_v12 = vsel %vm2683_vm9, %v3361_v37, %v2680_v61 }
 0x4fe   : > { %v2689_v22 = vsel %vm2686_vm0, %v2688_v36, %v2684_v12 }
 0x4ff   : > { %v2692_v31 = vmul.f32 %v2689_v22, %v5629_v29  ;;  %v6030_v29 = vld [vmem:[#allocation5 + $0x80] sm:$0xff] }
 0x500   : > { %2919 = vmatpush.msra.mxu2 %v6030_v29  ;;  %3014 = vmatpush.msrb.mxu1 %v6030_v29 }
 0x502   : > { %2920 = vmatpush.msra.mxu2 %v6032_v55  ;;  %3015 = vmatpush.msrb.mxu1 %v6032_v55 }
 0x504   : > { %2921 = vmatpush.msra.mxu2 %v6036_v34  ;;  %3016 = vmatpush.msrb.mxu1 %v6036_v34 }
 0x506   : > { %2922 = vmatpush.msra.mxu2 %v6040_v51  ;;  %3017 = vmatpush.msrb.mxu1 %v6040_v51 }
 0x55c   : > { %v2695_v48 = vpop.permute.xlu0 %2694 }
 0x55d   : > { %v2697_v26 = vmul.f32 %v2695_v48, %v2689_v22 }
 0x55f   : > { %2699 = vrot.lane.b32.xlu1 %v2697_v26, %s3559_s22  ;;  %v6228_v26 = vld [vmem:[#allocation19_spill] sm:$0xff] }
 0x5d1   : > { %v2700_v27 = vpop.permute.xlu1 %2699 }
 0x5d2   : > { %v2702_v53 = vadd.f32 %v2700_v27, %v2692_v31 }
 0x5d4   : > { %3362 = vtanh.f32 %v2702_v53 }
 0x5da   : > { %v3363_v9 = vpop.eup %3362 }
 0x5db   : > { %2705 = vrot.lane.b32.xlu2 %v3363_v9, %s3559_s22 }
 0x635   : > { %v2706_v39 = vpop.permute.xlu2 %2705 }
 0x636   : > { %v6026_v18 = vmul.f32 %v2706_v39, %v2689_v22 }
 0x638   : > { %2710 = vrot.lane.b32.xlu0 %v6026_v18, %s3560_s24 }
 0x6aa   : > { %v2711_v4 = vpop.permute.xlu0 %2710 }
 0x6ab   : > { %3254 = vmatmul.msk.f32.vlgmr.msrb.gmra.mxu2 %vm719_vm7, %v2711_v4  ;;  %3259 = vmatmul.msk.f32.vlgmr.msra.gmra.mxu1 %vm2845_vm2, %v2711_v4 }
 0x6ac   : > { %3052 = vmatpush.msrb.mxu2 %v289_v58 }
 0x6ae   : > { %3053 = vmatpush.msrb.mxu2 %v288_v42 }
 0x6b3   : > { %3260 = vmatmul.msk.f32.vlgmr.msra.gmra.mxu2 %vm719_vm7, %v6001_v25  ;;  %3263 = vmatmul.msk.f32.vlgmr.msrb.gmra.mxu1 %vm719_vm7, %v5993_v50 }
 0x72e   : > { %v2731_v30 = vpop.f32.mrf.mxu2 }
 0x72f   : > { %v2734_v59 = vadd.f32 %v2731_v30, %v2583_v63 }
 0x731   : > { %3364 = vtanh.f32 %v2734_v59  ;;  %v3255_v14 = vmul.f32 -1.442695, %v2734_v59 }
 0x733   : > { %3366 = vpow2.f32 %v3255_v14 }
 0x737   : > { %v3365_v0 = vpop.eup %3364 }
 0x738   : > { %2757 = vrot.lane.b32.xlu1 %v3365_v0, %s3559_s22 }
 0x739   : > { %v3367_v23 = vpop.eup %3366 }
 0x73a   : > { %v2738_v3 = vadd.f32 1.0, %v3367_v23 }
 0x73c   : > { %3368 = vrcp.f32 %v2738_v3  ;;  %v2750_v46 = vand.u32 2147483648, %v2738_v3  ;;  %vm2744_vm3 = vweird.f32 %v2738_v3  ;;  %v2748_v19 = vand.u32 2147483647, %v2738_v3 }
 0x73e   : > { %v2751_v41 = vor.u32 1.1754944e-38, %v2750_v46  ;;  %vm2749_vm4 = vcmp.eq.f32.partialorder %v2748_v19, 8.507059e+37 }
 0x742   : > { %v3369_v44 = vpop.eup %3368 }
 0x743   : > { %v2740_v32 = vmul.f32 %v3369_v44, %v2738_v3  ;;  %vm2745_vm10 = vweird.f32 %v3369_v44 }
 0x744   : > { %vm2746_vm6 = vmor %vm2744_vm3, %vm2745_vm10 }
 0x745   : > { %v2741_v7 = vsub.f32 1.0, %v2740_v32 }
 0x747   : > { %v2742_v28 = vmul.f32 %v3369_v44, %v2741_v7 }
 0x749   : > { %v2743_v38 = vadd.f32 %v3369_v44, %v2742_v28 }
 0x74b   : > { %v2747_v57 = vsel %vm2746_vm6, %v3369_v44, %v2743_v38 }
 0x74c   : > { %v2752_v16 = vsel %vm2749_vm4, %v2751_v41, %v2747_v57 }
 0x74d   : > { %v2755_v50 = vmul.f32 %v2752_v16, %v2702_v53 }
 0x7aa   : > { %v2758_v11 = vpop.permute.xlu1 %2757 }
 0x7ab   : > { %v2760_v17 = vmul.f32 %v2758_v11, %v2752_v16 }
 0x7ad   : > { %2762 = vrot.lane.b32.xlu2 %v2760_v17, %s3559_s22 }
 0x807   : > { %v2763_v20 = vpop.permute.xlu2 %2762 }
 0x808   : > { %v2765_v13 = vadd.f32 %v2763_v20, %v2755_v50 }
 0x80a   : > { %3370 = vtanh.f32 %v2765_v13 }
 0x810   : > { %v3371_v5 = vpop.eup %3370 }
 0x811   : > { %2768 = vrot.lane.b32.xlu0 %v3371_v5, %s3559_s22 }
 0x883   : > { %v2769_v25 = vpop.permute.xlu0 %2768 }
 0x884   : > { %v2771_v45 = vmul.f32 %v2769_v25, %v2752_v16 }
 0x886   : > { %2773 = vrot.lane.b32.xlu1 %v2771_v45, %s3560_s24 }
 0x8f8   : > { %v2774_v56 = vpop.permute.xlu1 %2773 }
 0x8f9   : > { %3256 = vmatmul.msk.f32.vlgmr.msrb.gmra.mxu3 %vm719_vm7, %v2774_v56 }
 0x8fa   : > { %3077 = vmatpush.msrb.mxu3 %v6020_v10 }
 0x8fc   : > { %3078 = vmatpush.msrb.mxu3 %v6022_v2  ;;  %v2887_v2 = vpop.f32.mrf.mxu1 }
 0x904   : > { %v3019_v3 = vpop.f32.mrf.mxu1 }
 0x97c   : > { %v2794_v49 = vpop.f32.mrf.mxu3 }
 0x97d   : > { %v2797_v63 = vadd.f32 %v2794_v49, %v6227_v35 }
 0x97f   : > { %3372 = vtanh.f32 %v2797_v63  ;;  %v3257_v60 = vmul.f32 -1.442695, %v2797_v63 }
 0x981   : > { %3374 = vpow2.f32 %v3257_v60 }
 0x985   : > { %v3373_v24 = vpop.eup %3372 }
 0x986   : > { %2820 = vrot.lane.b32.xlu2 %v3373_v24, %s3559_s22 }
 0x987   : > { %v3375_v1 = vpop.eup %3374 }
 0x988   : > { %v2801_v15 = vadd.f32 1.0, %v3375_v1 }
 0x98a   : > { %3376 = vrcp.f32 %v2801_v15  ;;  %v2813_v54 = vand.u32 2147483648, %v2801_v15  ;;  %vm2807_vm14 = vweird.f32 %v2801_v15  ;;  %v2811_v61 = vand.u32 2147483647, %v2801_v15 }
 0x98c   : > { %v2814_v21 = vor.u32 1.1754944e-38, %v2813_v54  ;;  %vm2812_vm12 = vcmp.eq.f32.partialorder %v2811_v61, 8.507059e+37 }
 0x98e   : > { %2843 = vrot.lane.b32.xlu2 %v2771_v45, %s3561_s29 }
 0x990   : > { %v3377_v40 = vpop.eup %3376 }
 0x991   : > { %v2803_v6 = vmul.f32 %v3377_v40, %v2801_v15  ;;  %vm2808_vm11 = vweird.f32 %v3377_v40 }
 0x992   : > { %vm2809_vm1 = vmor %vm2807_vm14, %vm2808_vm11 }
 0x993   : > { %v2804_v37 = vsub.f32 1.0, %v2803_v6 }
 0x995   : > { %v2805_v47 = vmul.f32 %v3377_v40, %v2804_v37 }
 0x997   : > { %v2806_v62 = vadd.f32 %v3377_v40, %v2805_v47 }
 0x999   : > { %v2810_v8 = vsel %vm2809_vm1, %v3377_v40, %v2806_v62 }
 0x99a   : > { %v2815_v36 = vsel %vm2812_vm12, %v2814_v21, %v2810_v8 }
 0x99b   : > { %v2818_v31 = vmul.f32 %v2815_v36, %v2765_v13 }
 0x9e0   : > { %v2821_v12 = vpop.permute.xlu2 %2820 }
 0x9e1   : > { %v2823_v48 = vmul.f32 %v2821_v12, %v2815_v36 }
 0x9e3   : > { %2825 = vrot.lane.b32.xlu0 %v2823_v48, %s3559_s22 }
 0x9e8   : > { %v2844_v22 = vpop.permute.xlu2 %2843 }
 0x9e9   : > { %3258 = vmatmul.msk.f32.vlgmr.msra.gmra.mxu0 %vm2845_vm2, %v2844_v22 }
 0x9ea   : > { %3112 = vmatpush.msra.mxu0 %v6030_v29  ;;  %v3347_v29 = vld [vmem:[#allocation5 + $0x88] ss:$0 sm:$0xff] }
 0x9eb   : > { %2939 = vrot.lane.b32.xlu0 %v6026_v18, %s3561_s29 }
 0x9ec   : > { %3113 = vmatpush.msra.mxu0 %v6032_v55  ;;  %v2924_v55 = vpop.f32.mrf.mxu2 }
 0x9ee   : > { %3114 = vmatpush.msra.mxu0 %v6036_v34 }
 0x9f0   : > { %3115 = vmatpush.msra.mxu0 %v6040_v51 }
 0x9f1   : > { %3262 = vmatmul.msk.f32.vlgmr.msrb.gmra.mxu0 %vm2845_vm2, %v2774_v56 }
 0x9f9   : > { %3267 = vmatmul.msk.f32.vlgmr.msra.gmra.mxu0 %vm719_vm7, %v6228_v26 }
 0xa55   : > { %v2826_v27 = vpop.permute.xlu0 %2825 }
 0xa56   : > { %v2828_v53 = vadd.f32 %v2826_v27, %v2818_v31 }
 0xa58   : > { %3378 = vtanh.f32 %v2828_v53 }
 0xa5d   : > { %v2940_v9 = vpop.permute.xlu0 %2939 }
 0xa5e   : > { %v3379_v10 = vpop.eup %3378  ;;  %3261 = vmatmul.msk.f32.vlgmr.msra.gmra.mxu3 %vm2845_vm2, %v2940_v9 }
 0xa5f   : > { %2831 = vrot.lane.b32.xlu1 %v3379_v10, %s3559_s22 }
 0xa66   : > { %v2865_v39 = vpop.f32.mrf.mxu0 }
 0xa67   : > { %v2888_v18 = vadd.f32 %v2887_v2, %v2865_v39  ;;  %3034 = vrot.lane.b32.xlu1 %v5905_v43, %s3561_s29 }
 0xa69   : > { %v2927_v34 = vadd.f32 %v2924_v55, %v2888_v18 }
 0xa6b   : > { %v2929_v51 = vadd.f32 %v3347_v29, %v2927_v34 }
 0xa6d   : > { %2930 = vst [vmem:[%s224_s7] sm:$0xff] %v2929_v51 }
 0xa6e   : > { %v2982_v0 = vpop.f32.mrf.mxu0 }
 0xa76   : > { %v3117_v46 = vpop.f32.mrf.mxu0 }
 0xad1   : > { %v2832_v4 = vpop.permute.xlu1 %2831 }
 0xad2   : > { %v2834_v30 = vmul.f32 %v2832_v4, %v2815_v36 }
 0xad4   : > { %3059 = vrot.lane.b32.xlu2 %v2834_v30, %s3560_s24 }
 0xad9   : > { %v3035_v59 = vpop.permute.xlu1 %3034 }
 0xada   : > { %3265 = vmatmul.msk.f32.vlgmr.msrb.gmra.mxu2 %vm2845_vm2, %v3035_v59 }
 0xae1   : > { %v2960_v14 = vpop.f32.mrf.mxu3 }
 0xae2   : > { %v2983_v23 = vadd.f32 %v2982_v0, %v2960_v14 }
 0xae4   : > { %v3022_v44 = vadd.f32 %v3019_v3, %v2983_v23 }
 0xae6   : > { %v3023_v32 = vadd.f32 %v3347_v29, %v3022_v44 }
 0xae8   : > { %3264 = vst [vmem:[%s224_s7 + $0x8] sm:$0xff] %v3023_v32 }
 0xb2e   : > { %v3060_v43 = vpop.permute.xlu2 %3059 }
 0xb2f   : > { %3266 = vmatmul.msk.f32.vlgmr.msrb.gmra.mxu3 %vm2845_vm2, %v3060_v43 }
 0xb5d   : > { %v3055_v7 = vpop.f32.mrf.mxu2 }
 0xbb2   : > { %v3080_v28 = vpop.f32.mrf.mxu3 }
 0xbb3   : > { %v3081_v38 = vadd.f32 %v3080_v28, %v3055_v7 }
 0xbb5   : > { %v3120_v19 = vadd.f32 %v3117_v46, %v3081_v38 }
 0xbb7   : > { %v3121_v57 = vadd.f32 %v3347_v29, %v3120_v19 }
 0xbb9   : > { %3268 = vst [vmem:[%s224_s7 + $0x10] sm:$0xff] %v3121_v57 }
 0xbba   : > { %3508 = shalt.err (!%p3505_p12)
}
 0xbbb   : > { %s3562_s6 = smov 128   ;;  %s3563_s22 = smov 256  }
 0xbbc   : > { %s3564_s24 = smov 8  }
 0xbbd   : > { %3281 = dma.vmem_to_hbm [thread:$0]  (%p3654_p3), %s3137_s11, 384, %s3139_s20, %s3125_s25, %s3562_s6, %s3563_s22, %s3564_s24  }
 0xbbe PF: > { %s3153_s29 = sand.u32 1, %s3539_s12   ;;  %p6229_p13 = scmp.ge.s32.totalorder %s3551_s15, 2 }
 0xbbf   : > { %s3154_s30 = scalar_lea.sflag [#allocation4], %s3153_s29 }
 0xbc0   : > { %p3292_p0 = pnand %p6229_p13, %p3620_p6 }
 0xbc2   : > { %p3293_p5 = pneg %p3292_p0 }
 0xbc4   : > { %3534 = dma.done.wait (%p3293_p5), %s3154_s30, 384  }
 0xbc5   : > { %3536 = vsyncadd (%p3293_p5), %s3154_s30, 4294966912  ;;  %p17_p7 = scmp.ge.s32.totalorder %s3638_s26, 4   ;;  %s6230_s12 = smov %s3543_s13 }
 0xbc6   : > { %s6231_s13 = smov %s3547_s14  ;;  %s6232_s14 = smov %s3650_s4 }
 0xbc7   : > { %s6233_s15 = smov %s3638_s26  ;;  %19 = sbr.rel (!%p17_p7) target bundleno = 6 (0x6), region = 86 }
 0xbcc   :  { %3160 = vsyncpa [#allocation3], 1 }
 0xbcd   :  { %3162 = vsyncpa [#allocation3 + $0x1], 1 }
 0xbce   :  { %3163 = vsyncpa [#allocation6], 1 }
 0xbcf   :  { %3164 = vsyncpa [#allocation4], 1 }
 0xbd0   :  { %3166 = vsyncpa [#allocation4 + $0x1], 1 }

</bundles_post_ra>
